<compile_context>
chip_gen: v6e
topology: v6e:2x2x1
jax: 0.10.0
libtpu: 0.0.40
codegen_flags: <defaults>
</compile_context>

<pallas_src>
import numpy as np
import jax
import jax.numpy as jnp
from jax.experimental import pallas as pl
from jax.experimental.pallas import tpu as pltpu


# -----------------------------------------------------------------------------
# Static LeNet geometry (fc1 = 16*5*5 pins the input to 3x32x32).
# -----------------------------------------------------------------------------
K = 5
H1, W1, C1 = 32, 32, 3                    # conv1 input (per image)
CO1 = 6
PW1 = (W1 - K + 1) // 2                   # 14  (pooled conv1 width/height)
W2, C2 = PW1, CO1                         # conv2 input: 14 x 14 x 6
CO2 = 16
PW2 = (W2 - K + 1) // 2                   # 5   (pooled conv2 width/height)
PH2 = PW2                                 # 5
LANE = 128                                # lane-dense width for everything

# Batched slab layout: images are stacked along sublanes with fixed row pitches.
B_TILE = 8                                # images per grid step
ROWS1 = H1 // 2                           # 16: per-image row pitch of pooled conv1 slab
ROWS2 = ROWS1 // 2                        # 8 : per-image row pitch of pooled conv2 slab
M1 = B_TILE * ROWS1 - 2                   # 126: conv1 matmul M (last image needs 14 rows)
M2 = B_TILE * ROWS2 - 3                   # 61 : conv2 matmul M (last image needs 5 rows)


# -----------------------------------------------------------------------------
# The fused kernel: one grid step == B_TILE images, end to end.
# -----------------------------------------------------------------------------
def _lenet_kernel(x_ref, band1_ref, b1_ref, band2_ref, b2_ref,
                  fw1_ref, fb1_ref, fw2_ref, fb2_ref, fw3_ref, fb3_ref,
                  out_ref, a1_ref, a2_ref):
    f32 = jnp.float32
    bf16 = jnp.bfloat16

    def conv_relu_pool(src_ref, band_ref, bias_ref, m_rows):
        """valid 5x5 conv (stride 1) + bias + ReLU + 2x2/2 max-pool, fused.

        src_ref rows hold images stacked with a fixed even row pitch; a global
        stride-2 sublane read therefore yields, per image, the conv input rows
        of one output-row parity.  band_ref is (5*128, 2*128): the five
        kernel-row taps stacked along K (wide-K) and the two output-column
        parities as two 128-lane halves; max(half0, half1, rp=0, rp=1) IS the
        2x2 max-pool of the conv output (bias + ReLU applied once after).
        """
        band = band_ref[...]                     # (640, 256) bf16, loaded once
        bias = bias_ref[...]                     # (1, 128) f32, hoisted

        def parity(rp):
            lhs = jnp.concatenate(               # 128-aligned lane concat: free
                [src_ref[pl.ds(rp + ki, m_rows, stride=2), :] for ki in range(K)],
                axis=-1).astype(bf16)            # (m, 640)
            y = jnp.dot(lhs, band, preferred_element_type=f32)   # (m, 256)
            return jnp.maximum(y[:, :LANE], y[:, LANE:])         # col-parity max

        m = jnp.maximum(parity(0), parity(1))    # row-parity max -> pooled
        return jnp.maximum(m + bias, 0.0)        # bias + ReLU (f32 epilogue)

    # conv1 + ReLU + pool: image b pooled row p lands at slab row 16*b + p.
    a1_ref[...] = conv_relu_pool(x_ref, band1_ref, b1_ref, M1)
    # conv2 + ReLU + pool: image b pooled row p lands at slab row 8*b + p.
    a2_ref[...] = conv_relu_pool(a1_ref, band2_ref, b2_ref, M2)

    # fc1/fc2/fc3 with M = B_TILE.  The NCHW flatten is folded into fw1's row
    # order; the 5 spatial rows per image are gathered with stride-8 sublane
    # reads and lane-concatenated into a (B_TILE, 640) slab.
    flat = jnp.concatenate(
        [a2_ref[pl.ds(r, B_TILE, stride=ROWS2), :] for r in range(PH2)],
        axis=-1).astype(bf16)                                    # (B_TILE, 640)
    h = jnp.dot(flat, fw1_ref[...], preferred_element_type=f32) + fb1_ref[...]
    h = jnp.maximum(h, 0.0).astype(bf16)                         # (B_TILE, 128)
    h = jnp.dot(h, fw2_ref[...], preferred_element_type=f32) + fb2_ref[...]
    h = jnp.maximum(h, 0.0).astype(bf16)                         # (B_TILE, 128)
    out = jnp.dot(h, fw3_ref[...], preferred_element_type=f32) + fb3_ref[...]
    out_ref[...] = out.astype(out_ref.dtype)                     # (B_TILE, 128)


# -----------------------------------------------------------------------------
# One-time parameter repacking (numpy, outside the jitted hot path).
# -----------------------------------------------------------------------------
def _conv_band(w_oihw, w_in, cin, cout):
    """(Cout,Cin,5,5) -> merged-parity, wide-K band of shape (5*128, 2*128).

    Row index : ki*128 + w*cin + ci     (kernel-row tap ki, input col w, chan ci)
    Col index : cp*128 + pw*cout + co   (output col parity cp, pooled col pw, chan co)
    so that  out[p, cp*128 + pw*cout + co] = conv(row 2p+rp, col 2pw+cp, co).
    """
    w_np = np.asarray(w_oihw, np.float32)
    k = w_np.shape[2]
    pw = (w_in - k + 1) // 2
    sel = np.zeros((2, pw, k, w_in), np.float32)
    for cp in range(2):
        for p in range(pw):
            for kj in range(k):
                sel[cp, p, kj, 2 * p + cp + kj] = 1.0
    # band6[ki, w, ci, cp, pw, co] = W[co, ci, ki, w - 2*pw - cp] (when valid)
    band6 = np.einsum("cpjw,oikj->kwicpo", sel, w_np)
    band = np.zeros((k, LANE, 2, LANE), np.float32)
    band[:, :w_in * cin, :, :pw * cout] = band6.reshape(k, w_in * cin, 2, pw * cout)
    return jnp.asarray(band.reshape(k * LANE, 2 * LANE)).astype(jnp.bfloat16)


def _row_bias(b, reps):
    out = np.zeros((1, LANE), np.float32)
    out[0, :reps * b.shape[0]] = np.tile(np.asarray(b, np.float32), reps)
    return jnp.asarray(out)


def prepare_params(p):
    """Repack PyTorch-layout LeNet params into the kernel layout (run once)."""
    prep = {}
    prep["band1"] = _conv_band(p["conv1_w"], W1, C1, CO1)        # (640, 256) bf16
    prep["b1"] = _row_bias(p["conv1_b"], PW1)                    # (1, 128) f32
    prep["band2"] = _conv_band(p["conv2_w"], W2, C2, CO2)        # (640, 256) bf16
    prep["b2"] = _row_bias(p["conv2_b"], PW2)

    # fc1: fold the torch flatten order (c, h, w) into the weight row order that
    # matches the kernel's (spatial-row-block, lane = w*16 + c) activation slab.
    fw1 = np.zeros((PH2 * LANE, LANE), np.float32)
    w1 = np.asarray(p["fc1_w"], np.float32)                      # (400, 120)
    for r in range(PH2):
        for w in range(PW2):
            for c in range(CO2):
                fw1[r * LANE + w * CO2 + c, :120] = w1[c * (PH2 * PW2) + r * PW2 + w, :]
    prep["fw1"] = jnp.asarray(fw1).astype(jnp.bfloat16)          # (640, 128)
    fb1 = np.zeros((1, LANE), np.float32); fb1[0, :120] = np.asarray(p["fc1_b"])
    prep["fb1"] = jnp.asarray(fb1)

    fw2 = np.zeros((LANE, LANE), np.float32); fw2[:120, :84] = np.asarray(p["fc2_w"])
    prep["fw2"] = jnp.asarray(fw2).astype(jnp.bfloat16)
    fb2 = np.zeros((1, LANE), np.float32); fb2[0, :84] = np.asarray(p["fc2_b"])
    prep["fb2"] = jnp.asarray(fb2)

    fw3 = np.zeros((LANE, LANE), np.float32); fw3[:84, :10] = np.asarray(p["fc3_w"])
    prep["fw3"] = jnp.asarray(fw3).astype(jnp.bfloat16)
    fb3 = np.zeros((1, LANE), np.float32); fb3[0, :10] = np.asarray(p["fc3_b"])
    prep["fb3"] = jnp.asarray(fb3)
    return prep


# -----------------------------------------------------------------------------
# Forward wrapper.
# -----------------------------------------------------------------------------
@jax.jit
def lenet_forward(prep, x_nchw):
    """x_nchw: (B, 3, 32, 32) float32 -> logits (B, 10)."""
    B = x_nchw.shape[0]
    n_tiles = (B + B_TILE - 1) // B_TILE
    Bp = n_tiles * B_TILE

    # Only XLA-side glue: NCHW -> (H, W*C) image rows, 128-lane padded, stacked
    # along sublanes with a 32-row pitch per image.
    # TODO(synk): in a real pipeline feed the activations already in this
    # (B*32, 128) layout so this transpose never round-trips HBM.
    x = jnp.transpose(x_nchw, (0, 2, 3, 1)).reshape(B, H1, W1 * C1)
    x = jnp.pad(x, ((0, Bp - B), (0, 0), (0, LANE - W1 * C1)))
    x2d = x.reshape(Bp * H1, LANE)                               # (Bp*32, 128) f32

    weights = (prep["band1"], prep["b1"], prep["band2"], prep["b2"],
               prep["fw1"], prep["fb1"], prep["fw2"], prep["fb2"],
               prep["fw3"], prep["fb3"])

    def _resident(a):                      # same block every grid step -> stays in VMEM
        return pl.BlockSpec(a.shape, lambda b: (0,) * a.ndim)

    in_specs = [pl.BlockSpec((B_TILE * H1, LANE), lambda b: (b, 0))]
    in_specs += [_resident(a) for a in weights]

    flops = n_tiles * (
        2 * 2 * M1 * (K * LANE) * (2 * LANE)      # conv1: 2 row parities
        + 2 * 2 * M2 * (K * LANE) * (2 * LANE)    # conv2
        + 2 * B_TILE * (K * LANE) * LANE          # fc1
        + 2 * 2 * B_TILE * LANE * LANE)           # fc2 + fc3
    bytes_accessed = (int(x2d.size) * 4 + Bp * LANE * 4
                      + sum(int(a.size) * a.dtype.itemsize for a in weights))

    out = pl.pallas_call(
        _lenet_kernel,
        grid=(n_tiles,),
        in_specs=in_specs,
        out_specs=pl.BlockSpec((B_TILE, LANE), lambda b: (b, 0)),
        out_shape=jax.ShapeDtypeStruct((Bp, LANE), jnp.float32),
        scratch_shapes=[pltpu.VMEM((M1, LANE), jnp.float32),     # pooled conv1 slab
                        pltpu.VMEM((M2, LANE), jnp.float32)],    # pooled conv2 slab
        compiler_params=pltpu.CompilerParams(
            dimension_semantics=("parallel",)),
        cost_estimate=pl.CostEstimate(
            flops=flops, transcendentals=0, bytes_accessed=bytes_accessed),
    )(x2d, *weights)
    return out[:B, :10]


# -----------------------------------------------------------------------------
# Parameters + pure-JAX reference (for the correctness check in __main__).
# -----------------------------------------------------------------------------
def init_lenet_params(key):
    ks = jax.random.split(key, 10)
    scale = 0.05
    p = {}
    p["conv1_w"] = scale * jax.random.normal(ks[0], (6, 3, 5, 5), jnp.float32)
    p["conv1_b"] = scale * jax.random.normal(ks[1], (6,), jnp.float32)
    p["conv2_w"] = scale * jax.random.normal(ks[2], (16, 6, 5, 5), jnp.float32)
    p["conv2_b"] = scale * jax.random.normal(ks[3], (16,), jnp.float32)
    p["fc1_w"] = scale * jax.random.normal(ks[4], (16 * 5 * 5, 120), jnp.float32)
    p["fc1_b"] = scale * jax.random.normal(ks[5], (120,), jnp.float32)
    p["fc2_w"] = scale * jax.random.normal(ks[6], (120, 84), jnp.float32)
    p["fc2_b"] = scale * jax.random.normal(ks[7], (84,), jnp.float32)
    p["fc3_w"] = scale * jax.random.normal(ks[8], (84, 10), jnp.float32)
    p["fc3_b"] = scale * jax.random.normal(ks[9], (10,), jnp.float32)
    return p


def lenet_reference(p, x_nchw):
    """Plain-JAX reference matching the PyTorch module semantics."""
    x = jnp.transpose(x_nchw, (0, 2, 3, 1))

    def conv_relu(x, w, b):
        y = jax.lax.conv_general_dilated(
            x, jnp.transpose(w, (2, 3, 1, 0)), (1, 1), "VALID",
            dimension_numbers=("NHWC", "HWIO", "NHWC"))
        return jax.nn.relu(y + b)

    def pool(x):
        return jax.lax.reduce_window(x, -jnp.inf, jax.lax.max,
                                     (1, 2, 2, 1), (1, 2, 2, 1), "VALID")

    x = pool(conv_relu(x, p["conv1_w"], p["conv1_b"]))
    x = pool(conv_relu(x, p["conv2_w"], p["conv2_b"]))
    B = x.shape[0]
    x = jnp.transpose(x, (0, 3, 1, 2)).reshape(B, 16 * 5 * 5)   # torch.flatten
    x = jax.nn.relu(x @ p["fc1_w"] + p["fc1_b"])
    x = jax.nn.relu(x @ p["fc2_w"] + p["fc2_b"])
    return x @ p["fc3_w"] + p["fc3_b"]


if __name__ == "__main__":
    key = jax.random.PRNGKey(0)
    k_param, k_x = jax.random.split(key)
    params = init_lenet_params(k_param)
    prep = prepare_params(params)            # one-time weight repack (host-side)

    # LeNet's fc1 (16*5*5) fixes the spatial size to 32x32 with 3 channels.
    # Batch 10 exercises both a full tile and the zero-padded remainder tile.
    x = jax.random.normal(k_x, (10, 3, 32, 32), jnp.float32)

    logits = lenet_forward(prep, x)
    jax.block_until_ready(logits)
    assert logits.shape == (10, 10)

    ref = lenet_reference(params, x)
    # bf16 matmul operands -> slightly looser tolerance than pure f32.
    np.testing.assert_allclose(np.asarray(logits), np.asarray(ref),
                               rtol=5e-2, atol=2e-2)
    print("KERNEL_OK")
</pallas_src>

<mosaic_0001>
module attributes {stable_mosaic.version = 11 : i64} {
  func.func @_lenet_kernel(%arg0: i32, %arg1: memref<256x128xf32, #tpu.memory_space<vmem>>, %arg2: memref<640x256xbf16, #tpu.memory_space<vmem>>, %arg3: memref<1x128xf32, #tpu.memory_space<vmem>>, %arg4: memref<640x256xbf16, #tpu.memory_space<vmem>>, %arg5: memref<1x128xf32, #tpu.memory_space<vmem>>, %arg6: memref<640x128xbf16, #tpu.memory_space<vmem>>, %arg7: memref<1x128xf32, #tpu.memory_space<vmem>>, %arg8: memref<128x128xbf16, #tpu.memory_space<vmem>>, %arg9: memref<1x128xf32, #tpu.memory_space<vmem>>, %arg10: memref<128x128xbf16, #tpu.memory_space<vmem>>, %arg11: memref<1x128xf32, #tpu.memory_space<vmem>>, %arg12: memref<8x128xf32, #tpu.memory_space<vmem>>, %arg13: memref<126x128xf32, #tpu.memory_space<vmem>>, %arg14: memref<61x128xf32, #tpu.memory_space<vmem>>) attributes {dimension_semantics = [#tpu.dimension_semantics<parallel>], iteration_bounds = array<i64: 2>, scalar_prefetch = 0 : i64, scratch_operands = 2 : i64, tpu.core_type = #tpu.core_type<tc>, window_params = [{transform_indices = @transform_0, window_bounds = array<i64: 256, 128>}, {pipeline_mode = #tpu.pipeline_mode<synchronous>, transform_indices = @transform_1, window_bounds = array<i64: 640, 256>}, {pipeline_mode = #tpu.pipeline_mode<synchronous>, transform_indices = @transform_2, window_bounds = array<i64: 1, 128>}, {pipeline_mode = #tpu.pipeline_mode<synchronous>, transform_indices = @transform_3, window_bounds = array<i64: 640, 256>}, {pipeline_mode = #tpu.pipeline_mode<synchronous>, transform_indices = @transform_4, window_bounds = array<i64: 1, 128>}, {pipeline_mode = #tpu.pipeline_mode<synchronous>, transform_indices = @transform_5, window_bounds = array<i64: 640, 128>}, {pipeline_mode = #tpu.pipeline_mode<synchronous>, transform_indices = @transform_6, window_bounds = array<i64: 1, 128>}, {pipeline_mode = #tpu.pipeline_mode<synchronous>, transform_indices = @transform_7, window_bounds = array<i64: 128, 128>}, {pipeline_mode = #tpu.pipeline_mode<synchronous>, transform_indices = @transform_8, window_bounds = array<i64: 1, 128>}, {pipeline_mode = #tpu.pipeline_mode<synchronous>, transform_indices = @transform_9, window_bounds = array<i64: 128, 128>}, {pipeline_mode = #tpu.pipeline_mode<synchronous>, transform_indices = @transform_10, window_bounds = array<i64: 1, 128>}, {transform_indices = @transform_11, window_bounds = array<i64: 8, 128>}]} {
    %c0 = arith.constant 0 : index
    %c0_0 = arith.constant 0 : index
    %0 = vector.load %arg2[%c0, %c0_0] : memref<640x256xbf16, #tpu.memory_space<vmem>>, vector<640x256xbf16>
    %c0_1 = arith.constant 0 : index
    %c0_2 = arith.constant 0 : index
    %1 = vector.load %arg3[%c0_1, %c0_2] : memref<1x128xf32, #tpu.memory_space<vmem>>, vector<1x128xf32>
    %c0_3 = arith.constant 0 : index
    %c0_4 = arith.constant 0 : index
    %2 = tpu.strided_load %arg1[%c0_3, %c0_4] {strides = array<i32: 2, 1>} : memref<256x128xf32, #tpu.memory_space<vmem>>, vector<126x128xf32>
    %c1 = arith.constant 1 : index
    %c0_5 = arith.constant 0 : index
    %3 = tpu.strided_load %arg1[%c1, %c0_5] {strides = array<i32: 2, 1>} : memref<256x128xf32, #tpu.memory_space<vmem>>, vector<126x128xf32>
    %c2 = arith.constant 2 : index
    %c0_6 = arith.constant 0 : index
    %4 = tpu.strided_load %arg1[%c2, %c0_6] {strides = array<i32: 2, 1>} : memref<256x128xf32, #tpu.memory_space<vmem>>, vector<126x128xf32>
    %c3 = arith.constant 3 : index
    %c0_7 = arith.constant 0 : index
    %5 = tpu.strided_load %arg1[%c3, %c0_7] {strides = array<i32: 2, 1>} : memref<256x128xf32, #tpu.memory_space<vmem>>, vector<126x128xf32>
    %c4 = arith.constant 4 : index
    %c0_8 = arith.constant 0 : index
    %6 = tpu.strided_load %arg1[%c4, %c0_8] {strides = array<i32: 2, 1>} : memref<256x128xf32, #tpu.memory_space<vmem>>, vector<126x128xf32>
    %7 = tpu.concatenate %2, %3, %4, %5, %6 in 1 : vector<126x128xf32>, vector<126x128xf32>, vector<126x128xf32>, vector<126x128xf32>, vector<126x128xf32> -> vector<126x640xf32>
    %8 = arith.truncf %7 : vector<126x640xf32> to vector<126x640xbf16>
    %cst = arith.constant dense<0.000000e+00> : vector<126x256xf32>
    %9 = tpu.matmul %8, %0, %cst {dimension_numbers = #tpu.dot_dimension_numbers<[1], [0], [0], [1], [0, 0, 1, 1], [], []>} : vector<126x640xbf16>, vector<640x256xbf16>, vector<126x256xf32> -> vector<126x256xf32>
    %10 = vector.extract_strided_slice %9 {offsets = [0, 0], sizes = [126, 128], strides = [1, 1]} : vector<126x256xf32> to vector<126x128xf32>
    %11 = vector.extract_strided_slice %9 {offsets = [0, 128], sizes = [126, 128], strides = [1, 1]} : vector<126x256xf32> to vector<126x128xf32>
    %12 = arith.maximumf %10, %11 : vector<126x128xf32>
    %c1_9 = arith.constant 1 : index
    %c0_10 = arith.constant 0 : index
    %13 = tpu.strided_load %arg1[%c1_9, %c0_10] {strides = array<i32: 2, 1>} : memref<256x128xf32, #tpu.memory_space<vmem>>, vector<126x128xf32>
    %c2_11 = arith.constant 2 : index
    %c0_12 = arith.constant 0 : index
    %14 = tpu.strided_load %arg1[%c2_11, %c0_12] {strides = array<i32: 2, 1>} : memref<256x128xf32, #tpu.memory_space<vmem>>, vector<126x128xf32>
    %c3_13 = arith.constant 3 : index
    %c0_14 = arith.constant 0 : index
    %15 = tpu.strided_load %arg1[%c3_13, %c0_14] {strides = array<i32: 2, 1>} : memref<256x128xf32, #tpu.memory_space<vmem>>, vector<126x128xf32>
    %c4_15 = arith.constant 4 : index
    %c0_16 = arith.constant 0 : index
    %16 = tpu.strided_load %arg1[%c4_15, %c0_16] {strides = array<i32: 2, 1>} : memref<256x128xf32, #tpu.memory_space<vmem>>, vector<126x128xf32>
    %c5 = arith.constant 5 : index
    %c0_17 = arith.constant 0 : index
    %17 = tpu.strided_load %arg1[%c5, %c0_17] {strides = array<i32: 2, 1>} : memref<256x128xf32, #tpu.memory_space<vmem>>, vector<126x128xf32>
    %18 = tpu.concatenate %13, %14, %15, %16, %17 in 1 : vector<126x128xf32>, vector<126x128xf32>, vector<126x128xf32>, vector<126x128xf32>, vector<126x128xf32> -> vector<126x640xf32>
    %19 = arith.truncf %18 : vector<126x640xf32> to vector<126x640xbf16>
    %cst_18 = arith.constant dense<0.000000e+00> : vector<126x256xf32>
    %20 = tpu.matmul %19, %0, %cst_18 {dimension_numbers = #tpu.dot_dimension_numbers<[1], [0], [0], [1], [0, 0, 1, 1], [], []>} : vector<126x640xbf16>, vector<640x256xbf16>, vector<126x256xf32> -> vector<126x256xf32>
    %21 = vector.extract_strided_slice %20 {offsets = [0, 0], sizes = [126, 128], strides = [1, 1]} : vector<126x256xf32> to vector<126x128xf32>
    %22 = vector.extract_strided_slice %20 {offsets = [0, 128], sizes = [126, 128], strides = [1, 1]} : vector<126x256xf32> to vector<126x128xf32>
    %23 = arith.maximumf %21, %22 : vector<126x128xf32>
    %24 = arith.maximumf %12, %23 : vector<126x128xf32>
    %25 = vector.broadcast %1 : vector<1x128xf32> to vector<126x128xf32>
    %26 = arith.addf %24, %25 : vector<126x128xf32>
    %cst_19 = arith.constant 0.000000e+00 : f32
    %27 = vector.broadcast %cst_19 : f32 to vector<126x128xf32>
    %28 = arith.maximumf %26, %27 : vector<126x128xf32>
    %c0_20 = arith.constant 0 : index
    %c0_21 = arith.constant 0 : index
    %29 = vector.load %arg13[%c0_20, %c0_21] : memref<126x128xf32, #tpu.memory_space<vmem>>, vector<126x128xf32>
    tpu.vector_store %arg13[%c0_20, %c0_21], %28 {strides = array<i32>} : memref<126x128xf32, #tpu.memory_space<vmem>>, vector<126x128xf32>,
    %c0_22 = arith.constant 0 : index
    %c0_23 = arith.constant 0 : index
    %30 = vector.load %arg4[%c0_22, %c0_23] : memref<640x256xbf16, #tpu.memory_space<vmem>>, vector<640x256xbf16>
    %c0_24 = arith.constant 0 : index
    %c0_25 = arith.constant 0 : index
    %31 = vector.load %arg5[%c0_24, %c0_25] : memref<1x128xf32, #tpu.memory_space<vmem>>, vector<1x128xf32>
    %c0_26 = arith.constant 0 : index
    %c0_27 = arith.constant 0 : index
    %32 = tpu.strided_load %arg13[%c0_26, %c0_27] {strides = array<i32: 2, 1>} : memref<126x128xf32, #tpu.memory_space<vmem>>, vector<61x128xf32>
    %c1_28 = arith.constant 1 : index
    %c0_29 = arith.constant 0 : index
    %33 = tpu.strided_load %arg13[%c1_28, %c0_29] {strides = array<i32: 2, 1>} : memref<126x128xf32, #tpu.memory_space<vmem>>, vector<61x128xf32>
    %c2_30 = arith.constant 2 : index
    %c0_31 = arith.constant 0 : index
    %34 = tpu.strided_load %arg13[%c2_30, %c0_31] {strides = array<i32: 2, 1>} : memref<126x128xf32, #tpu.memory_space<vmem>>, vector<61x128xf32>
    %c3_32 = arith.constant 3 : index
    %c0_33 = arith.constant 0 : index
    %35 = tpu.strided_load %arg13[%c3_32, %c0_33] {strides = array<i32: 2, 1>} : memref<126x128xf32, #tpu.memory_space<vmem>>, vector<61x128xf32>
    %c4_34 = arith.constant 4 : index
    %c0_35 = arith.constant 0 : index
    %36 = tpu.strided_load %arg13[%c4_34, %c0_35] {strides = array<i32: 2, 1>} : memref<126x128xf32, #tpu.memory_space<vmem>>, vector<61x128xf32>
    %37 = tpu.concatenate %32, %33, %34, %35, %36 in 1 : vector<61x128xf32>, vector<61x128xf32>, vector<61x128xf32>, vector<61x128xf32>, vector<61x128xf32> -> vector<61x640xf32>
    %38 = arith.truncf %37 : vector<61x640xf32> to vector<61x640xbf16>
    %cst_36 = arith.constant dense<0.000000e+00> : vector<61x256xf32>
    %39 = tpu.matmul %38, %30, %cst_36 {dimension_numbers = #tpu.dot_dimension_numbers<[1], [0], [0], [1], [0, 0, 1, 1], [], []>} : vector<61x640xbf16>, vector<640x256xbf16>, vector<61x256xf32> -> vector<61x256xf32>
    %40 = vector.extract_strided_slice %39 {offsets = [0, 0], sizes = [61, 128], strides = [1, 1]} : vector<61x256xf32> to vector<61x128xf32>
    %41 = vector.extract_strided_slice %39 {offsets = [0, 128], sizes = [61, 128], strides = [1, 1]} : vector<61x256xf32> to vector<61x128xf32>
    %42 = arith.maximumf %40, %41 : vector<61x128xf32>
    %c1_37 = arith.constant 1 : index
    %c0_38 = arith.constant 0 : index
    %43 = tpu.strided_load %arg13[%c1_37, %c0_38] {strides = array<i32: 2, 1>} : memref<126x128xf32, #tpu.memory_space<vmem>>, vector<61x128xf32>
    %c2_39 = arith.constant 2 : index
    %c0_40 = arith.constant 0 : index
    %44 = tpu.strided_load %arg13[%c2_39, %c0_40] {strides = array<i32: 2, 1>} : memref<126x128xf32, #tpu.memory_space<vmem>>, vector<61x128xf32>
    %c3_41 = arith.constant 3 : index
    %c0_42 = arith.constant 0 : index
    %45 = tpu.strided_load %arg13[%c3_41, %c0_42] {strides = array<i32: 2, 1>} : memref<126x128xf32, #tpu.memory_space<vmem>>, vector<61x128xf32>
    %c4_43 = arith.constant 4 : index
    %c0_44 = arith.constant 0 : index
    %46 = tpu.strided_load %arg13[%c4_43, %c0_44] {strides = array<i32: 2, 1>} : memref<126x128xf32, #tpu.memory_space<vmem>>, vector<61x128xf32>
    %c5_45 = arith.constant 5 : index
    %c0_46 = arith.constant 0 : index
    %47 = tpu.strided_load %arg13[%c5_45, %c0_46] {strides = array<i32: 2, 1>} : memref<126x128xf32, #tpu.memory_space<vmem>>, vector<61x128xf32>
    %48 = tpu.concatenate %43, %44, %45, %46, %47 in 1 : vector<61x128xf32>, vector<61x128xf32>, vector<61x128xf32>, vector<61x128xf32>, vector<61x128xf32> -> vector<61x640xf32>
    %49 = arith.truncf %48 : vector<61x640xf32> to vector<61x640xbf16>
    %cst_47 = arith.constant dense<0.000000e+00> : vector<61x256xf32>
    %50 = tpu.matmul %49, %30, %cst_47 {dimension_numbers = #tpu.dot_dimension_numbers<[1], [0], [0], [1], [0, 0, 1, 1], [], []>} : vector<61x640xbf16>, vector<640x256xbf16>, vector<61x256xf32> -> vector<61x256xf32>
    %51 = vector.extract_strided_slice %50 {offsets = [0, 0], sizes = [61, 128], strides = [1, 1]} : vector<61x256xf32> to vector<61x128xf32>
    %52 = vector.extract_strided_slice %50 {offsets = [0, 128], sizes = [61, 128], strides = [1, 1]} : vector<61x256xf32> to vector<61x128xf32>
    %53 = arith.maximumf %51, %52 : vector<61x128xf32>
    %54 = arith.maximumf %42, %53 : vector<61x128xf32>
    %55 = vector.broadcast %31 : vector<1x128xf32> to vector<61x128xf32>
    %56 = arith.addf %54, %55 : vector<61x128xf32>
    %cst_48 = arith.constant 0.000000e+00 : f32
    %57 = vector.broadcast %cst_48 : f32 to vector<61x128xf32>
    %58 = arith.maximumf %56, %57 : vector<61x128xf32>
    %c0_49 = arith.constant 0 : index
    %c0_50 = arith.constant 0 : index
    %59 = vector.load %arg14[%c0_49, %c0_50] : memref<61x128xf32, #tpu.memory_space<vmem>>, vector<61x128xf32>
    tpu.vector_store %arg14[%c0_49, %c0_50], %58 {strides = array<i32>} : memref<61x128xf32, #tpu.memory_space<vmem>>, vector<61x128xf32>,
    %c0_51 = arith.constant 0 : index
    %c0_52 = arith.constant 0 : index
    %60 = tpu.strided_load %arg14[%c0_51, %c0_52] {strides = array<i32: 8, 1>} : memref<61x128xf32, #tpu.memory_space<vmem>>, vector<8x128xf32>
    %c1_53 = arith.constant 1 : index
    %c0_54 = arith.constant 0 : index
    %61 = tpu.strided_load %arg14[%c1_53, %c0_54] {strides = array<i32: 8, 1>} : memref<61x128xf32, #tpu.memory_space<vmem>>, vector<8x128xf32>
    %c2_55 = arith.constant 2 : index
    %c0_56 = arith.constant 0 : index
    %62 = tpu.strided_load %arg14[%c2_55, %c0_56] {strides = array<i32: 8, 1>} : memref<61x128xf32, #tpu.memory_space<vmem>>, vector<8x128xf32>
    %c3_57 = arith.constant 3 : index
    %c0_58 = arith.constant 0 : index
    %63 = tpu.strided_load %arg14[%c3_57, %c0_58] {strides = array<i32: 8, 1>} : memref<61x128xf32, #tpu.memory_space<vmem>>, vector<8x128xf32>
    %c4_59 = arith.constant 4 : index
    %c0_60 = arith.constant 0 : index
    %64 = tpu.strided_load %arg14[%c4_59, %c0_60] {strides = array<i32: 8, 1>} : memref<61x128xf32, #tpu.memory_space<vmem>>, vector<8x128xf32>
    %65 = tpu.concatenate %60, %61, %62, %63, %64 in 1 : vector<8x128xf32>, vector<8x128xf32>, vector<8x128xf32>, vector<8x128xf32>, vector<8x128xf32> -> vector<8x640xf32>
    %66 = arith.truncf %65 : vector<8x640xf32> to vector<8x640xbf16>
    %c0_61 = arith.constant 0 : index
    %c0_62 = arith.constant 0 : index
    %67 = vector.load %arg6[%c0_61, %c0_62] : memref<640x128xbf16, #tpu.memory_space<vmem>>, vector<640x128xbf16>
    %cst_63 = arith.constant dense<0.000000e+00> : vector<8x128xf32>
    %68 = tpu.matmul %66, %67, %cst_63 {dimension_numbers = #tpu.dot_dimension_numbers<[1], [0], [0], [1], [0, 0, 1, 1], [], []>} : vector<8x640xbf16>, vector<640x128xbf16>, vector<8x128xf32> -> vector<8x128xf32>
    %c0_64 = arith.constant 0 : index
    %c0_65 = arith.constant 0 : index
    %69 = vector.load %arg7[%c0_64, %c0_65] : memref<1x128xf32, #tpu.memory_space<vmem>>, vector<1x128xf32>
    %70 = vector.broadcast %69 : vector<1x128xf32> to vector<8x128xf32>
    %71 = arith.addf %68, %70 : vector<8x128xf32>
    %cst_66 = arith.constant 0.000000e+00 : f32
    %72 = vector.broadcast %cst_66 : f32 to vector<8x128xf32>
    %73 = arith.maximumf %71, %72 : vector<8x128xf32>
    %74 = arith.truncf %73 : vector<8x128xf32> to vector<8x128xbf16>
    %c0_67 = arith.constant 0 : index
    %c0_68 = arith.constant 0 : index
    %75 = vector.load %arg8[%c0_67, %c0_68] : memref<128x128xbf16, #tpu.memory_space<vmem>>, vector<128x128xbf16>
    %cst_69 = arith.constant dense<0.000000e+00> : vector<8x128xf32>
    %76 = tpu.matmul %74, %75, %cst_69 {dimension_numbers = #tpu.dot_dimension_numbers<[1], [0], [0], [1], [0, 0, 1, 1], [], []>} : vector<8x128xbf16>, vector<128x128xbf16>, vector<8x128xf32> -> vector<8x128xf32>
    %c0_70 = arith.constant 0 : index
    %c0_71 = arith.constant 0 : index
    %77 = vector.load %arg9[%c0_70, %c0_71] : memref<1x128xf32, #tpu.memory_space<vmem>>, vector<1x128xf32>
    %78 = vector.broadcast %77 : vector<1x128xf32> to vector<8x128xf32>
    %79 = arith.addf %76, %78 : vector<8x128xf32>
    %cst_72 = arith.constant 0.000000e+00 : f32
    %80 = vector.broadcast %cst_72 : f32 to vector<8x128xf32>
    %81 = arith.maximumf %79, %80 : vector<8x128xf32>
    %82 = arith.truncf %81 : vector<8x128xf32> to vector<8x128xbf16>
    %c0_73 = arith.constant 0 : index
    %c0_74 = arith.constant 0 : index
    %83 = vector.load %arg10[%c0_73, %c0_74] : memref<128x128xbf16, #tpu.memory_space<vmem>>, vector<128x128xbf16>
    %cst_75 = arith.constant dense<0.000000e+00> : vector<8x128xf32>
    %84 = tpu.matmul %82, %83, %cst_75 {dimension_numbers = #tpu.dot_dimension_numbers<[1], [0], [0], [1], [0, 0, 1, 1], [], []>} : vector<8x128xbf16>, vector<128x128xbf16>, vector<8x128xf32> -> vector<8x128xf32>
    %c0_76 = arith.constant 0 : index
    %c0_77 = arith.constant 0 : index
    %85 = vector.load %arg11[%c0_76, %c0_77] : memref<1x128xf32, #tpu.memory_space<vmem>>, vector<1x128xf32>
    %86 = vector.broadcast %85 : vector<1x128xf32> to vector<8x128xf32>
    %87 = arith.addf %84, %86 : vector<8x128xf32>
    %c0_78 = arith.constant 0 : index
    %c0_79 = arith.constant 0 : index
    %88 = vector.load %arg12[%c0_78, %c0_79] : memref<8x128xf32, #tpu.memory_space<vmem>>, vector<8x128xf32>
    tpu.vector_store %arg12[%c0_78, %c0_79], %87 {strides = array<i32>} : memref<8x128xf32, #tpu.memory_space<vmem>>, vector<8x128xf32>,
    return
  }
  func.func @transform_0(%arg0: i32) -> (i32, i32) {
    %c0_i32 = arith.constant 0 : i32
    %c0_i32_0 = arith.constant 0 : i32
    return %arg0, %c0_i32 : i32, i32
  }
  func.func @transform_1(%arg0: i32) -> (i32, i32) {
    %c0_i32 = arith.constant 0 : i32
    %c0_i32_0 = arith.constant 0 : i32
    %c0_i32_1 = arith.constant 0 : i32
    return %c0_i32, %c0_i32_0 : i32, i32
  }
  func.func @transform_2(%arg0: i32) -> (i32, i32) {
    %c0_i32 = arith.constant 0 : i32
    %c0_i32_0 = arith.constant 0 : i32
    %c0_i32_1 = arith.constant 0 : i32
    return %c0_i32, %c0_i32_0 : i32, i32
  }
  func.func @transform_3(%arg0: i32) -> (i32, i32) {
    %c0_i32 = arith.constant 0 : i32
    %c0_i32_0 = arith.constant 0 : i32
    %c0_i32_1 = arith.constant 0 : i32
    return %c0_i32, %c0_i32_0 : i32, i32
  }
  func.func @transform_4(%arg0: i32) -> (i32, i32) {
    %c0_i32 = arith.constant 0 : i32
    %c0_i32_0 = arith.constant 0 : i32
    %c0_i32_1 = arith.constant 0 : i32
    return %c0_i32, %c0_i32_0 : i32, i32
  }
  func.func @transform_5(%arg0: i32) -> (i32, i32) {
    %c0_i32 = arith.constant 0 : i32
    %c0_i32_0 = arith.constant 0 : i32
    %c0_i32_1 = arith.constant 0 : i32
    return %c0_i32, %c0_i32_0 : i32, i32
  }
  func.func @transform_6(%arg0: i32) -> (i32, i32) {
    %c0_i32 = arith.constant 0 : i32
    %c0_i32_0 = arith.constant 0 : i32
    %c0_i32_1 = arith.constant 0 : i32
    return %c0_i32, %c0_i32_0 : i32, i32
  }
  func.func @transform_7(%arg0: i32) -> (i32, i32) {
    %c0_i32 = arith.constant 0 : i32
    %c0_i32_0 = arith.constant 0 : i32
    %c0_i32_1 = arith.constant 0 : i32
    return %c0_i32, %c0_i32_0 : i32, i32
  }
  func.func @transform_8(%arg0: i32) -> (i32, i32) {
    %c0_i32 = arith.constant 0 : i32
    %c0_i32_0 = arith.constant 0 : i32
    %c0_i32_1 = arith.constant 0 : i32
    return %c0_i32, %c0_i32_0 : i32, i32
  }
  func.func @transform_9(%arg0: i32) -> (i32, i32) {
    %c0_i32 = arith.constant 0 : i32
    %c0_i32_0 = arith.constant 0 : i32
    %c0_i32_1 = arith.constant 0 : i32
    return %c0_i32, %c0_i32_0 : i32, i32
  }
  func.func @transform_10(%arg0: i32) -> (i32, i32) {
    %c0_i32 = arith.constant 0 : i32
    %c0_i32_0 = arith.constant 0 : i32
    %c0_i32_1 = arith.constant 0 : i32
    return %c0_i32, %c0_i32_0 : i32, i32
  }
  func.func @transform_11(%arg0: i32) -> (i32, i32) {
    %c0_i32 = arith.constant 0 : i32
    %c0_i32_0 = arith.constant 0 : i32
    return %arg0, %c0_i32 : i32, i32
  }
}

</mosaic_0001>

<bundles_post_ra>
// kernel: lenet_forward.1
= control target key start
LH: loop header
LB: loop body
LE: loop exit
PB: predicated region body
PF: predicated region fallthrough
CT: control target
= control target key end

     0   :  { %s6932_s0 = inlined_call_operand.vmem [shape: f32[512,128], index: 0, kind: input, shape index: {}]   ;;  %s6933_s1 = inlined_call_operand.vmem [shape: bf16[640,256], index: 1, kind: input, shape index: {}]   ;;  %s6934_s2 = inlined_call_operand.vmem [shape: f32[1,128], index: 2, kind: input, shape index: {}]   ;;  %s6935_s3 = inlined_call_operand.vmem [shape: bf16[640,256], index: 3, kind: input, shape index: {}]   ;;  %s6936_s4 = inlined_call_operand.vmem [shape: f32[1,128], index: 4, kind: input, shape index: {}]   ;;  %s6937_s5 = inlined_call_operand.vmem [shape: bf16[640,128], index: 5, kind: input, shape index: {}]   ;;  %s6938_s6 = inlined_call_operand.vmem [shape: f32[1,128], index: 6, kind: input, shape index: {}]   ;;  %s6939_s7 = inlined_call_operand.vmem [shape: bf16[128,128], index: 7, kind: input, shape index: {}]   ;;  %s6940_s8 = inlined_call_operand.vmem [shape: f32[1,128], index: 8, kind: input, shape index: {}]   ;;  %s6941_s9 = inlined_call_operand.vmem [shape: bf16[128,128], index: 9, kind: input, shape index: {}]   ;;  %s6942_s10 = inlined_call_operand.vmem [shape: f32[1,128], index: 10, kind: input, shape index: {}]   ;;  %s6943_s11 = inlined_call_operand.hbm [shape: f32[16,128], index: 11, kind: output, shape index: {}]  }
   0x1   :  { %6967 = sst [smem:[#allocation32_spill]] %s6932_s0 }
   0x2   :  { %16 = vsyncpa [#allocation5], 0 }
   0x3   :  { %18 = vsyncpa [#allocation5 + $0x1], 0  ;;  %s4758_s17 = smov 0   ;;  %s4760_s18 = smov 0  }
   0x4   :  { %s4762_s19 = smov 0   ;;  %s4764_s20 = smov 0  }
   0x5 LB: > { %s4779_s21 = sadd.s32 4294967295, %s4692_s20   ;;  %s3751_s22 = sadd.s32 4294967294, %s4692_s20   ;;  %s4692_s20 = sphi %s4764_s20, %s7049_s20   ;;  %s4688_s19 = sphi %s4762_s19, %s7048_s19   ;;  %s4684_s18 = sphi %s4760_s18, %s7047_s18   ;;  %s4680_s17 = sphi %s4758_s17, %s7046_s17  }
   0x6   : > { %s4783_s23 = sadd.s32 1, %s4692_s20   ;;  %s267_s24 = sadd.s32 1, %s4688_s19 }
   0x7   : > { %s264_s25 = ssub.s32 %s4692_s20, %s4783_s23  ;;  %p277_p0 = scmp.ne.s32.totalorder %s4688_s19, %s4684_s18 }
   0x8   : > { %p265_p1 = scmp.eq.s32.totalorder %s264_s25, 0  ;;  %p278_p2 = scmp.eq.s32.totalorder %s4779_s21, 1 }
   0x9   : > { %p283_p3 = scmp.ne.s32.totalorder %s4684_s18, %s4680_s17  ;;  %p284_p4 = scmp.eq.s32.totalorder %s3751_s22, 1 }
   0xa   : > { %s4794_s26 = scalar_select %p265_p1, %s4688_s19, %s267_s24  }
   0xb   : > { %p4796_p5 = por %p278_p2, %p277_p0  ;;  %p4800_p6 = por %p284_p4, %p283_p3 }
   0xc   : > { %p3754_p7 = scmp.ge.s32.totalorder %s4692_s20, 1  ;;  %p341_p8 = scmp.lt.s32.totalorder %s4692_s20, 3 }
   0xe   : > { %p342_p9 = pnand %p3754_p7, %p341_p8 }
  0x10   : > { %345 = sbr.rel (%p342_p9) target bundleno = 1451 (0x5ab), region = 64 }
  0x15   : > { %v4809_v0 = vld [vmem:[%s6933_s1 + $0x74] ss:$8 sps:$4 sm:$0xff]   ;;  %v4820_v2 = vld [vmem:[%s6933_s1 + $0x70] ss:$8 sps:$4 sm:$0xff]   ;;  %v4829_v4 = vld [vmem:[%s6933_s1 + $0x64] ss:$8 sps:$4 sm:$0xff]  }
  0x16   : > { %v4814_v1 = vld [vmem:[%s6933_s1 + $0x174] ss:$8 sps:$4 sm:$0xff]   ;;  %1068 = vmatprep.subr.bf16.mxu0 %v4809_v0  ;;  %v4256_v3 = vld [vmem:[%s6933_s1 + $0x170] ss:$8 sps:$4 sm:$0xff]   ;;  %v4259_v5 = vld [vmem:[%s6933_s1 + $0x164] ss:$8 sps:$4 sm:$0xff]  }
  0x17   : > { %1181 = vmatprep.subr.bf16.mxu1 %v4814_v1  ;;  %1069 = vmatpush1.bf16.msra.mxu0 %v4820_v2  ;;  %v4838_v6 = vld [vmem:[%s6933_s1 + $0x60] ss:$8 sps:$4 sm:$0xff]   ;;  %v4847_v8 = vld [vmem:[%s6933_s1 + $0x54] ss:$8 sps:$4 sm:$0xff]   ;;  %v4855_v10 = vld [vmem:[%s6933_s1 + $0x50] ss:$8 sps:$4 sm:$0xff]  }
  0x18   : > { %1182 = vmatpush1.bf16.msra.mxu1 %v4256_v3  ;;  %1070 = vmatprep.subr.bf16.mxu0 %v4829_v4  ;;  %v4262_v7 = vld [vmem:[%s6933_s1 + $0x160] ss:$8 sps:$4 sm:$0xff]   ;;  %v4265_v9 = vld [vmem:[%s6933_s1 + $0x154] ss:$8 sps:$4 sm:$0xff]   ;;  %v4268_v11 = vld [vmem:[%s6933_s1 + $0x150] ss:$8 sps:$4 sm:$0xff]  }
  0x19   : > { %1183 = vmatprep.subr.bf16.mxu1 %v4259_v5  ;;  %v4864_v12 = vld [vmem:[%s6933_s1 + $0x44] ss:$8 sps:$4 sm:$0xff]   ;;  %v4873_v14 = vld [vmem:[%s6933_s1 + $0x40] ss:$8 sps:$4 sm:$0xff]   ;;  %v4882_v16 = vld [vmem:[%s6933_s1 + $0x34] ss:$8 sps:$4 sm:$0xff]  }
  0x1a   : > { %v4271_v13 = vld [vmem:[%s6933_s1 + $0x144] ss:$8 sps:$4 sm:$0xff]   ;;  %v4274_v15 = vld [vmem:[%s6933_s1 + $0x140] ss:$8 sps:$4 sm:$0xff]   ;;  %v4277_v17 = vld [vmem:[%s6933_s1 + $0x134] ss:$8 sps:$4 sm:$0xff]  }
  0x1b   : > { %1071 = vmatpush1.bf16.msra.mxu0 %v4838_v6  ;;  %v4891_v18 = vld [vmem:[%s6933_s1 + $0x30] ss:$8 sps:$4 sm:$0xff]   ;;  %v4900_v20 = vld [vmem:[%s6933_s1 + $0x24] ss:$8 sps:$4 sm:$0xff]   ;;  %v4909_v22 = vld [vmem:[%s6933_s1 + $0x20] ss:$8 sps:$4 sm:$0xff]  }
  0x1c   : > { %1184 = vmatpush1.bf16.msra.mxu1 %v4262_v7  ;;  %1072 = vmatprep.subr.bf16.mxu0 %v4847_v8  ;;  %v4280_v19 = vld [vmem:[%s6933_s1 + $0x130] ss:$8 sps:$4 sm:$0xff]   ;;  %v4283_v21 = vld [vmem:[%s6933_s1 + $0x124] ss:$8 sps:$4 sm:$0xff]   ;;  %v4286_v23 = vld [vmem:[%s6933_s1 + $0x120] ss:$8 sps:$4 sm:$0xff]  }
  0x1d   : > { %1185 = vmatprep.subr.bf16.mxu1 %v4265_v9  ;;  %v4918_v24 = vld [vmem:[%s6933_s1 + $0x14] ss:$8 sps:$4 sm:$0xff]   ;;  %v4927_v26 = vld [vmem:[%s6933_s1 + $0x10] ss:$8 sps:$4 sm:$0xff]   ;;  %v4936_v28 = vld [vmem:[%s6933_s1 + $0x4] ss:$8 sps:$4 sm:$0xff]  }
  0x1e   : > { %v4289_v25 = vld [vmem:[%s6933_s1 + $0x114] ss:$8 sps:$4 sm:$0xff]   ;;  %v4292_v27 = vld [vmem:[%s6933_s1 + $0x110] ss:$8 sps:$4 sm:$0xff]   ;;  %v4295_v29 = vld [vmem:[%s6933_s1 + $0x104] ss:$8 sps:$4 sm:$0xff]  }
  0x1f   : > { %1073 = vmatpush1.bf16.msra.mxu0 %v4855_v10  ;;  %s3756_s29 = sshll.u32 %s4779_s21, 5  ;;  %v4946_v30 = vld [vmem:[%s6933_s1] ss:$8 sps:$4 sm:$0xff]   ;;  %v4955_v32 = vld [vmem:[%s6933_s1 + $0xf4] ss:$8 sps:$4 sm:$0xff]   ;;  %s6970_s0 = sld [smem:[#allocation32_spill]] }
  0x20   : > { %1186 = vmatpush1.bf16.msra.mxu1 %v4268_v11  ;;  %1074 = vmatprep.subr.bf16.mxu0 %v4864_v12  ;;  %v4298_v31 = vld [vmem:[%s6933_s1 + $0x100] ss:$8 sps:$4 sm:$0xff]   ;;  %p382_p10 = scmp.lt.s32.totalorder %s3756_s29, 63  ;;  %v4301_v33 = vld [vmem:[%s6933_s1 + $0x1f4] ss:$8 sps:$4 sm:$0xff]   ;;  %vm4696_vm0 = vmmov 0  }
  0x21   : > { %1187 = vmatprep.subr.bf16.mxu1 %v4271_v13  ;;  %v4964_v34 = vld [vmem:[%s6933_s1 + $0xf0] ss:$8 sps:$4 sm:$0xff]   ;;  %v4973_v36 = vld [vmem:[%s6933_s1 + $0xe4] ss:$8 sps:$4 sm:$0xff]   ;;  %v4982_v38 = vld [vmem:[%s6933_s1 + $0xe0] ss:$8 sps:$4 sm:$0xff]  }
  0x22   : > { %v4304_v35 = vld [vmem:[%s6933_s1 + $0x1f0] ss:$8 sps:$4 sm:$0xff]   ;;  %s7051_s29 = smov (!%p382_p10, %s3756_s29), 63  ;;  %v4307_v37 = vld [vmem:[%s6933_s1 + $0x1e4] ss:$8 sps:$4 sm:$0xff]   ;;  %s378_s14 = sand.u32 1, %s4684_s18  }
  0x23   : > { %1075 = vmatpush1.bf16.msra.mxu0 %v4873_v14  ;;  %v4310_v39 = vld [vmem:[%s6933_s1 + $0x1e0] ss:$8 sps:$4 sm:$0xff]   ;;  %v4991_v40 = vld [vmem:[%s6933_s1 + $0xd4] ss:$8 sps:$4 sm:$0xff]   ;;  %s3757_s15 = sshll.u32 %s7051_s29, 3  ;;  %s3755_s16 = sshll.u32 %s378_s14, 3 }
  0x24   : > { %1188 = vmatpush1.bf16.msra.mxu1 %v4274_v15  ;;  %1076 = vmatprep.subr.bf16.mxu0 %v4882_v16  ;;  %v4313_v41 = vld [vmem:[%s6933_s1 + $0x1d4] ss:$8 sps:$4 sm:$0xff]   ;;  %v5000_v42 = vld [vmem:[%s6933_s1 + $0xd0] ss:$8 sps:$4 sm:$0xff]   ;;  %v5014_v44 = vld [vmem:[%s6933_s1 + $0xc4] ss:$8 sps:$4 sm:$0xff]  }
  0x25   : > { %1189 = vmatprep.subr.bf16.mxu1 %v4277_v17  ;;  %v4316_v43 = vld [vmem:[%s6933_s1 + $0x1d0] ss:$8 sps:$4 sm:$0xff]   ;;  %s5008_s29 = scalar_lea.vmem %s6970_s0, %s3757_s15  ;;  %v4319_v45 = vld [vmem:[%s6933_s1 + $0x1c4] ss:$8 sps:$4 sm:$0xff]   ;;  %v5028_v50 = vld [vmem:[%s6933_s1 + $0xc0] ss:$8 sps:$4 sm:$0xff]  }
  0x26   : > { %v3773_v46 = vld [vmem:[%s5008_s29 + $0x1] ss:$2 sm:$0xff]  ;;  %v3774_v47 = vld [vmem:[%s5008_s29 + $0x11] ss:$2 sm:$0xff]  ;;  %v469_v15 = vld [vmem:[%s5008_s29] ss:$2 sm:$0xff] }
  0x27   : > { %1077 = vmatpush1.bf16.msra.mxu0 %v4891_v18  ;;  %v3805_v48 = vld [vmem:[%s5008_s29 + $0x3] ss:$2 sm:$0xff]  ;;  %v3806_v49 = vld [vmem:[%s5008_s29 + $0x13] ss:$2 sm:$0xff]  ;;  %v5038_v53 = vpack.c.bf16 %v3774_v47, %v3773_v46  ;;  %v3758_v17 = vld [vmem:[%s5008_s29 + $0x10] ss:$2 sm:$0xff] }
  0x28   : > { %1190 = vmatpush1.bf16.msra.mxu1 %v4280_v19  ;;  %1078 = vmatprep.subr.bf16.mxu0 %v4900_v20  ;;  %v4322_v51 = vld [vmem:[%s6933_s1 + $0x1c0] ss:$8 sps:$4 sm:$0xff]   ;;  %v5036_v52 = vld [vmem:[%s6933_s1 + $0xb4] ss:$8 sps:$4 sm:$0xff]   ;;  %v5040_v54 = vpack.c.bf16 %v3806_v49, %v3805_v48  ;;  %v5052_v56 = vld [vmem:[%s6933_s1 + $0xb0] ss:$8 sps:$4 sm:$0xff]  }
  0x29   : > { %1191 = vmatprep.subr.bf16.mxu1 %v4283_v21  ;;  %v4325_v55 = vld [vmem:[%s6933_s1 + $0x1b4] ss:$8 sps:$4 sm:$0xff]   ;;  %1100 = vmatprep.mubr.bf16.mxu0 %v5038_v53  ;;  %v5057_v57 = vld [vmem:[%s6933_s1 + $0x1b0] ss:$8 sps:$4 sm:$0xff]   ;;  %v5062_v58 = vld [vmem:[%s6933_s1 + $0xa4] ss:$8 sps:$4 sm:$0xff]  }
  0x2a   : > { %1213 = vmatprep.mubr.bf16.mxu1 %v5040_v54  ;;  %v5068_v59 = vld [vmem:[%s6933_s1 + $0x1a4] ss:$8 sps:$4 sm:$0xff]   ;;  %v5075_v60 = vld [vmem:[%s6933_s1 + $0xa0] ss:$8 sps:$4 sm:$0xff]   ;;  %v5085_v62 = vld [vmem:[%s6933_s1 + $0x94] ss:$8 sps:$4 sm:$0xff]  }
  0x2b   : > { %1079 = vmatpush1.bf16.msra.mxu0 %v4909_v22  ;;  %v5080_v61 = vld [vmem:[%s6933_s1 + $0x1a0] ss:$8 sps:$4 sm:$0xff]   ;;  %v5092_v63 = vld [vmem:[%s6933_s1 + $0x194] ss:$8 sps:$4 sm:$0xff]   ;;  %v5099_v3 = vld [vmem:[%s6933_s1 + $0x90] ss:$8 sps:$4 sm:$0xff]  }
  0x2c   : > { %1192 = vmatpush1.bf16.msra.mxu1 %v4286_v23  ;;  %1080 = vmatprep.subr.bf16.mxu0 %v4918_v24  ;;  %v5104_v5 = vld [vmem:[%s6933_s1 + $0x190] ss:$8 sps:$4 sm:$0xff]   ;;  %v5109_v7 = vld [vmem:[%s6933_s1 + $0x84] ss:$8 sps:$4 sm:$0xff]   ;;  %v5121_v11 = vld [vmem:[%s6933_s1 + $0x80] ss:$8 sps:$4 sm:$0xff]  }
  0x2d   : > { %1193 = vmatprep.subr.bf16.mxu1 %v4289_v25  ;;  %v5116_v9 = vld [vmem:[%s6933_s1 + $0x184] ss:$8 sps:$4 sm:$0xff]   ;;  %v5126_v13 = vld [vmem:[%s6933_s1 + $0x180] ss:$8 sps:$4 sm:$0xff]   ;;  %v5139_v23 = vld [vmem:[%s6933_s1 + $0x274] ss:$8 sps:$4 sm:$0xff]  }
  0x2e   : > { %v3789_v19 = vld [vmem:[%s5008_s29 + $0x2] ss:$2 sm:$0xff]  ;;  %v3790_v21 = vld [vmem:[%s5008_s29 + $0x12] ss:$2 sm:$0xff]  ;;  %v3775_v25 = vld [vmem:[%s5008_s29 + $0x21] ss:$2 sm:$0xff] }
  0x2f   : > { %1081 = vmatpush1.bf16.msra.mxu0 %v4927_v26  ;;  %v3760_v46 = vld [vmem:[%s5008_s29 + $0x30] ss:$2 sm:$0xff]  ;;  %v3777_v49 = vld [vmem:[%s5008_s29 + $0x41] ss:$2 sm:$0xff]  ;;  %s4075_s24 = sshll.u32 %s4779_s21, 7  ;;  %s380_s25 = scalar_lea.vmem [#allocation4], %s3755_s16 }
  0x30   : > { %1194 = vmatpush1.bf16.msra.mxu1 %v4292_v27  ;;  %1082 = vmatprep.subr.bf16.mxu0 %v4936_v28  ;;  %v3776_v27 = vld [vmem:[%s5008_s29 + $0x31] ss:$2 sm:$0xff]  ;;  %v3791_v47 = vld [vmem:[%s5008_s29 + $0x22] ss:$2 sm:$0xff]  ;;  %v3792_v48 = vld [vmem:[%s5008_s29 + $0x32] ss:$2 sm:$0xff]  ;;  %s6891_s13 = scalar_lea.hbm %s6943_s11, %s4075_s24 }
  0x31   : > { %1195 = vmatprep.subr.bf16.mxu1 %v4295_v29  ;;  %v628_v29 = vpack.c.bf16 %v3758_v17, %v469_v15  ;;  %v3810_v15 = vld [vmem:[%s5008_s29 + $0x53] ss:$2 sm:$0xff]  ;;  %s3692_s15 = sshll.u32 %s380_s25, 4  ;;  %s4697_s21 = smov [#allocation4]   ;;  %s6893_s15 = int_to_ptr.vmem [resolvable:$true] %s3692_s15 }
  0x32   : > { %s4632_s22 = scalar_lea.vmem %s6893_s15, 128  ;;  %s4636_s16 = sshll.u32 %s4697_s21, 4  ;;  %s4637_s16 = int_to_ptr.vmem [resolvable:$false] %s4636_s16 }
  0x33   : > { %1083 = vmatpush1.bf16.msra.mxu0 %v4946_v30  ;;  %p4633_p11 = scmp.ne.s32.totalorder %s6893_s15, %s4632_s22  ;;  %s4638_s30 = scalar_lea.vmem %s4637_s16, 256 }
  0x34   : > { %1196 = vmatpush1.bf16.msra.mxu1 %v4298_v31  ;;  %1084 = vmatprep.subr.bf16.mxu0 %v4955_v32  ;;  %v5143_v31 = vpack.c.bf16 %v3790_v21, %v3789_v19  ;;  %v5190_v19 = vpack.c.bf16 %v3792_v48, %v3791_v47  ;;  %v3812_v47 = vld [vmem:[%s5008_s29 + $0x73] ss:$2 sm:$0xff]  ;;  %p4639_p0 = scmp.lt.s32.totalorder %s6893_s15, %s4637_s16  ;;  %p4640_p1 = scmp.lt.s32.totalorder %s4638_s30, %s4632_s22 }
  0x35   : > { %1197 = vmatprep.subr.bf16.mxu1 %v4301_v33  ;;  %v3807_v33 = vld [vmem:[%s5008_s29 + $0x23] ss:$2 sm:$0xff]  ;;  %p4634_p12 = pnand %p4633_p11, %p4796_p5 }
  0x36   : > { %p4641_p2 = por %p4640_p1, %p4639_p0 }
  0x37   : > { %1085 = vmatpush2.bf16.msra.mxu0 %v4964_v34  ;;  %p4635_p13 = pneg %p4634_p12 }
  0x38   : > { %1198 = vmatpush2.bf16.msra.mxu1 %v4304_v35  ;;  %1086 = vmatprep.subr.bf16.mxu0 %v4973_v36  ;;  %v3808_v35 = vld [vmem:[%s5008_s29 + $0x33] ss:$2 sm:$0xff] }
  0x39   : > { %1199 = vmatprep.subr.bf16.mxu1 %v4307_v37  ;;  %v5152_v37 = vld [vmem:[%s6933_s1 + $0x270] ss:$8 sps:$4 sm:$0xff]   ;;  %p4642_p3 = pnand %p4641_p2, %p4635_p13 }
  0x3b   : > { %1087 = vmatpush2.bf16.msra.mxu0 %v4982_v38 }
  0x3c   : > { %1200 = vmatpush2.bf16.msra.mxu1 %v4310_v39  ;;  %1088 = vmatprep.subr.bf16.mxu0 %v4991_v40  ;;  %v5156_v39 = vpack.c.bf16 %v3776_v27, %v3775_v25  ;;  %v5203_v25 = vld [vmem:[%s6933_s1 + $0x250] ss:$8 sps:$4 sm:$0xff]  }
  0x3d   : > { %1201 = vmatprep.subr.bf16.mxu1 %v4313_v41  ;;  %v5158_v41 = vpack.c.bf16 %v3808_v35, %v3807_v33  ;;  %v3762_v27 = vld [vmem:[%s5008_s29 + $0x50] ss:$2 sm:$0xff]  ;;  %v3779_v35 = vld [vmem:[%s5008_s29 + $0x61] ss:$2 sm:$0xff] }
  0x3e   : > { %v3794_v33 = vld [vmem:[%s5008_s29 + $0x52] ss:$2 sm:$0xff] }
  0x3f   : > { %1089 = vmatpush2.bf16.msra.mxu0 %v5000_v42  ;;  %6971 = vst [vmem:[#allocation7_spill] sm:$0xff] %v5158_v41 }
  0x40   : > { %1202 = vmatpush2.bf16.msra.mxu1 %v4316_v43  ;;  %1090 = vmatprep.subr.bf16.mxu0 %v5014_v44  ;;  %v3759_v43 = vld [vmem:[%s5008_s29 + $0x20] ss:$2 sm:$0xff] }
  0x41   : > { %1203 = vmatprep.subr.bf16.mxu1 %v4319_v45  ;;  %v5164_v45 = vld [vmem:[%s6933_s1 + $0x264] ss:$8 sps:$4 sm:$0xff]   ;;  %v633_v17 = vpack.c.bf16 %v3760_v46, %v3759_v43  ;;  %v3780_v43 = vld [vmem:[%s5008_s29 + $0x71] ss:$2 sm:$0xff] }
  0x42   : > { %v3811_v46 = vld [vmem:[%s5008_s29 + $0x63] ss:$2 sm:$0xff] }
  0x43   : > { %1091 = vmatpush2.bf16.msra.mxu0 %v5028_v50 }
  0x44   : > { %1204 = vmatpush2.bf16.msra.mxu1 %v4322_v51  ;;  %1092 = vmatprep.subr.bf16.mxu0 %v5036_v52  ;;  %v3778_v51 = vld [vmem:[%s5008_s29 + $0x51] ss:$2 sm:$0xff] }
  0x45   : > { %1205 = vmatprep.subr.bf16.mxu1 %v4325_v55  ;;  %v5184_v55 = vld [vmem:[%s6933_s1 + $0x254] ss:$8 sps:$4 sm:$0xff]  }
  0x47   : > { %1093 = vmatpush2.bf16.msra.mxu0 %v5052_v56 }
  0x48   : > { %1206 = vmatpush2.bf16.msra.mxu1 %v5057_v57  ;;  %1094 = vmatprep.subr.bf16.mxu0 %v5062_v58 }
  0x49   : > { %1207 = vmatprep.subr.bf16.mxu1 %v5068_v59 }
  0x4b   : > { %1095 = vmatpush2.bf16.msra.mxu0 %v5075_v60 }
  0x4c   : > { %1208 = vmatpush2.bf16.msra.mxu1 %v5080_v61  ;;  %1096 = vmatprep.subr.bf16.mxu0 %v5085_v62 }
  0x4d   : > { %1209 = vmatprep.subr.bf16.mxu1 %v5092_v63 }
  0x4f   : > { %1097 = vmatpush2.bf16.msra.mxu0 %v5099_v3 }
  0x50   : > { %1210 = vmatpush2.bf16.msra.mxu1 %v5104_v5  ;;  %1098 = vmatprep.subr.bf16.mxu0 %v5109_v7 }
  0x51   : > { %1211 = vmatprep.subr.bf16.mxu1 %v5116_v9 }
  0x53   : > { %1099 = vmatpush2.bf16.msra.mxu0 %v5121_v11 }
  0x54   : > { %1212 = vmatpush2.bf16.msra.mxu1 %v5126_v13  ;;  %1294 = vmatprep.subr.bf16.mxu0 %v5139_v23 }
  0x55   : > { %1463 = vmatprep.subr.bf16.mxu1 %v4809_v0  ;;  %v5175_v0 = vld [vmem:[%s6933_s1 + $0x260] ss:$8 sps:$4 sm:$0xff]  }
  0x56   : > { %1101 = vmatmul.mubr.bf16.vlgmr.msra.gmra.mxu0 %v628_v29  ;;  %v3793_v29 = vld [vmem:[%s5008_s29 + $0x42] ss:$2 sm:$0xff] }
  0x57   : > { %1214 = vmatmul.mubr.bf16.vlgmr.msra.gmra.mxu1 %v5143_v31  ;;  %1295 = vmatpush1.bf16.msra.mxu0 %v5152_v37 }
  0x58   : > { %1464 = vmatpush1.bf16.msra.mxu1 %v4820_v2  ;;  %1110 = vmatprep.mubr.bf16.mxu0 %v5156_v39  ;;  %v3809_v2 = vld [vmem:[%s5008_s29 + $0x43] ss:$2 sm:$0xff] }
  0x59   : > { %1465 = vmatprep.subr.bf16.mxu1 %v4829_v4  ;;  %1223 = vmatprep.mubr.bf16.mxu1 %v5158_v41  ;;  %v5194_v4 = vpack.c.bf16 %v3778_v51, %v3777_v49  ;;  %v5197_v21 = vpack.c.bf16 %v3810_v15, %v3809_v2  ;;  %v5229_v49 = vpack.c.bf16 %v3794_v33, %v3793_v29  ;;  %v3763_v2 = vld [vmem:[%s5008_s29 + $0x60] ss:$2 sm:$0xff]  ;;  %v3764_v15 = vld [vmem:[%s5008_s29 + $0x70] ss:$2 sm:$0xff]  ;;  %v3781_v29 = vld [vmem:[%s5008_s29 + $0x81] ss:$2 sm:$0xff] }
  0x5a   : > { %1296 = vmatprep.subr.bf16.mxu0 %v5164_v45  ;;  %v5236_v51 = vpack.c.bf16 %v3812_v47, %v3811_v46  ;;  %v3782_v33 = vld [vmem:[%s5008_s29 + $0x91] ss:$2 sm:$0xff]  ;;  %v643_v46 = vpack.c.bf16 %v3764_v15, %v3763_v2  ;;  %v3766_v15 = vld [vmem:[%s5008_s29 + $0x90] ss:$2 sm:$0xff] }
  0x5b   : > { %1297 = vmatpush1.bf16.msra.mxu0 %v5175_v0  ;;  %6972 = vst [vmem:[#allocation8_spill] sm:$0xff] %v5197_v21  ;;  %v5286_v2 = vld [vmem:[%s6933_s1 + $0x214] ss:$8 sps:$4 sm:$0xff]   ;;  %v3801_v41 = vld [vmem:[%s5008_s29 + $0xc2] ss:$2 sm:$0xff] }
  0x5c   : > { %1466 = vmatpush1.bf16.msra.mxu1 %v4838_v6  ;;  %1298 = vmatprep.subr.bf16.mxu0 %v5184_v55  ;;  %v3761_v6 = vld [vmem:[%s5008_s29 + $0x40] ss:$2 sm:$0xff]  ;;  %6973 = vst [vmem:[#allocation9_spill] sm:$0xff] %v5236_v51 }
  0x5d   : > { %1467 = vmatprep.subr.bf16.mxu1 %v4847_v8  ;;  %v5210_v8 = vld [vmem:[%s6933_s1 + $0x244] ss:$8 sps:$4 sm:$0xff]   ;;  %v638_v48 = vpack.c.bf16 %v3762_v27, %v3761_v6  ;;  %v3796_v6 = vld [vmem:[%s5008_s29 + $0x72] ss:$2 sm:$0xff] }
  0x5e   : > { %1111 = vmatmul.mubr.bf16.gmra.mxu0 %v633_v17  ;;  %v3795_v17 = vld [vmem:[%s5008_s29 + $0x62] ss:$2 sm:$0xff] }
  0x5f   : > { %1224 = vmatmul.mubr.bf16.gmra.mxu1 %v5190_v19  ;;  %1120 = vmatprep.mubr.bf16.mxu0 %v5194_v4  ;;  %v5246_v27 = vld [vmem:[%s6933_s1 + $0x230] ss:$8 sps:$4 sm:$0xff]   ;;  %v5268_v47 = vpack.c.bf16 %v3796_v6, %v3795_v17 }
  0x60   : > { %1468 = vmatpush1.bf16.msra.mxu1 %v4855_v10  ;;  %1233 = vmatprep.mubr.bf16.mxu1 %v5197_v21  ;;  %v5227_v10 = vld [vmem:[%s6933_s1 + $0x240] ss:$8 sps:$4 sm:$0xff]   ;;  %v3770_v21 = vld [vmem:[%s5008_s29 + $0xd0] ss:$2 sm:$0xff] }
  0x61   : > { %1469 = vmatprep.subr.bf16.mxu1 %v4864_v12  ;;  %1299 = vmatpush1.bf16.msra.mxu0 %v5203_v25  ;;  %v5233_v12 = vpack.c.bf16 %v3780_v43, %v3779_v35  ;;  %v3813_v35 = vld [vmem:[%s5008_s29 + $0x83] ss:$2 sm:$0xff]  ;;  %v3814_v43 = vld [vmem:[%s5008_s29 + $0x93] ss:$2 sm:$0xff]  ;;  %v3797_v17 = vld [vmem:[%s5008_s29 + $0x82] ss:$2 sm:$0xff] }
  0x62   : > { %1300 = vmatprep.subr.bf16.mxu0 %v5210_v8  ;;  %v3798_v6 = vld [vmem:[%s5008_s29 + $0x92] ss:$2 sm:$0xff] }
  0x64   : > { %1470 = vmatpush1.bf16.msra.mxu1 %v4873_v14  ;;  %v5251_v14 = vld [vmem:[%s6933_s1 + $0x234] ss:$8 sps:$4 sm:$0xff]  }
  0x65   : > { %1471 = vmatprep.subr.bf16.mxu1 %v4882_v16  ;;  %1301 = vmatpush1.bf16.msra.mxu0 %v5227_v10  ;;  %v5256_v16 = vld [vmem:[%s6933_s1 + $0x224] ss:$8 sps:$4 sm:$0xff]  }
  0x66   : > { %1121 = vmatmul.mubr.bf16.gmra.mxu0 %v638_v48  ;;  %1302 = vmatprep.subr.bf16.mxu0 %v5251_v14  ;;  %v5281_v48 = vpack.c.bf16 %v3814_v43, %v3813_v35  ;;  %v3816_v35 = vld [vmem:[%s5008_s29 + $0xb3] ss:$2 sm:$0xff] }
  0x67   : > { %1234 = vmatmul.mubr.bf16.gmra.mxu1 %v5229_v49  ;;  %1130 = vmatprep.mubr.bf16.mxu0 %v5233_v12  ;;  %v5302_v43 = vld [vmem:[%s6933_s1 + $0x210] ss:$8 sps:$4 sm:$0xff]  }
  0x68   : > { %1472 = vmatpush1.bf16.msra.mxu1 %v4891_v18  ;;  %1243 = vmatprep.mubr.bf16.mxu1 %v5236_v51  ;;  %v5272_v18 = vpack.c.bf16 %v3782_v33, %v3781_v29  ;;  %6974 = vst [vmem:[#allocation10_spill] sm:$0xff] %v5281_v48  ;;  %v3783_v29 = vld [vmem:[%s5008_s29 + $0xa1] ss:$2 sm:$0xff]  ;;  %v3784_v33 = vld [vmem:[%s5008_s29 + $0xb1] ss:$2 sm:$0xff] }
  0x69   : > { %1473 = vmatprep.subr.bf16.mxu1 %v4900_v20  ;;  %1303 = vmatpush1.bf16.msra.mxu0 %v5246_v27  ;;  %v5277_v20 = vld [vmem:[%s6933_s1 + $0x220] ss:$8 sps:$4 sm:$0xff]   ;;  %v5311_v51 = vpack.c.bf16 %v3784_v33, %v3783_v29 }
  0x6a   : > { %1304 = vmatprep.subr.bf16.mxu0 %v5256_v16  ;;  %v3800_v29 = vld [vmem:[%s5008_s29 + $0xb2] ss:$2 sm:$0xff]  ;;  %v3785_v33 = vld [vmem:[%s5008_s29 + $0xc1] ss:$2 sm:$0xff] }
  0x6c   : > { %1474 = vmatpush1.bf16.msra.mxu1 %v4909_v22  ;;  %v3765_v22 = vld [vmem:[%s5008_s29 + $0x80] ss:$2 sm:$0xff] }
  0x6d   : > { %1475 = vmatprep.subr.bf16.mxu1 %v4918_v24  ;;  %v3815_v24 = vld [vmem:[%s5008_s29 + $0xa3] ss:$2 sm:$0xff]  ;;  %1305 = vmatpush1.bf16.msra.mxu0 %v5277_v20 }
  0x6e   : > { %1131 = vmatmul.mubr.bf16.gmra.mxu0 %v643_v46  ;;  %v5307_v46 = vpack.c.bf16 %v3798_v6, %v3797_v17  ;;  %1306 = vmatprep.subr.bf16.mxu0 %v5286_v2  ;;  %v3767_v17 = vld [vmem:[%s5008_s29 + $0xa0] ss:$2 sm:$0xff] }
  0x6f   : > { %1244 = vmatmul.mubr.bf16.gmra.mxu1 %v5268_v47  ;;  %1140 = vmatprep.mubr.bf16.mxu0 %v5272_v18  ;;  %v3799_v6 = vld [vmem:[%s5008_s29 + $0xa2] ss:$2 sm:$0xff] }
  0x70   : > { %1476 = vmatpush1.bf16.msra.mxu1 %v4927_v26  ;;  %1253 = vmatprep.mubr.bf16.mxu1 %v5281_v48  ;;  %v648_v26 = vpack.c.bf16 %v3766_v15, %v3765_v22  ;;  %v5319_v22 = vpack.c.bf16 %v3816_v35, %v3815_v24  ;;  %v5324_v15 = vld [vmem:[%s6933_s1 + $0x200] ss:$8 sps:$4 sm:$0xff]   ;;  %v3786_v48 = vld [vmem:[%s5008_s29 + $0xd1] ss:$2 sm:$0xff] }
  0x71   : > { %1477 = vmatprep.subr.bf16.mxu1 %v4936_v28  ;;  %v5316_v28 = vld [vmem:[%s6933_s1 + $0x204] ss:$8 sps:$4 sm:$0xff]   ;;  %1307 = vmatpush1.bf16.msra.mxu0 %v5302_v43  ;;  %v3818_v24 = vld [vmem:[%s5008_s29 + $0xd3] ss:$2 sm:$0xff] }
  0x72   : > { %6975 = vst [vmem:[#allocation11_spill] sm:$0xff] %v5319_v22  ;;  %1308 = vmatprep.subr.bf16.mxu0 %v5316_v28 }
  0x74   : > { %1478 = vmatpush1.bf16.msra.mxu1 %v4946_v30  ;;  %v3768_v30 = vld [vmem:[%s5008_s29 + $0xb0] ss:$2 sm:$0xff] }
  0x75   : > { %1479 = vmatprep.subr.bf16.mxu1 %v4955_v32  ;;  %v3817_v32 = vld [vmem:[%s5008_s29 + $0xc3] ss:$2 sm:$0xff]  ;;  %v653_v35 = vpack.c.bf16 %v3768_v30, %v3767_v17  ;;  %1309 = vmatpush1.bf16.msra.mxu0 %v5324_v15  ;;  %v3802_v17 = vld [vmem:[%s5008_s29 + $0xd2] ss:$2 sm:$0xff] }
  0x76   : > { %1141 = vmatmul.mubr.bf16.gmra.mxu0 %v648_v26  ;;  %v5341_v26 = vpack.c.bf16 %v3800_v29, %v3799_v6  ;;  %1576 = vmatprep.subr.bf16.mxu0 %v4814_v1  ;;  %v3787_v30 = vld [vmem:[%s5008_s29 + $0xe1] ss:$2 sm:$0xff]  ;;  %v5364_v6 = vpack.c.bf16 %v3802_v17, %v3801_v41  ;;  %v3822_v41 = vld [vmem:[%s5008_s29 + $0x14] ss:$2 sm:$0xff] }
  0x77   : > { %1254 = vmatmul.mubr.bf16.gmra.mxu1 %v5307_v46  ;;  %1150 = vmatprep.mubr.bf16.mxu0 %v5311_v51  ;;  %v3819_v1 = vld [vmem:[%s5008_s29 + $0xe3] ss:$2 sm:$0xff] }
  0x78   : > { %1480 = vmatpush2.bf16.msra.mxu1 %v4964_v34  ;;  %1263 = vmatprep.mubr.bf16.mxu1 %v5319_v22  ;;  %v5345_v34 = vpack.c.bf16 %v3786_v48, %v3785_v33  ;;  %v3769_v22 = vld [vmem:[%s5008_s29 + $0xc0] ss:$2 sm:$0xff] }
  0x79   : > { %1481 = vmatprep.subr.bf16.mxu1 %v4973_v36  ;;  %v5349_v36 = vpack.c.bf16 %v3818_v24, %v3817_v32  ;;  %v658_v48 = vpack.c.bf16 %v3770_v21, %v3769_v22  ;;  %v3772_v32 = vld [vmem:[%s5008_s29 + $0xf0] ss:$2 sm:$0x3f]  ;;  %v4561_v17 = vld [vmem:[%s6933_s1 + $0x100] ss:$8 sps:$4 sm:$0xff]  }
  0x7a   : > { %v3803_v24 = vld [vmem:[%s5008_s29 + $0xe2] ss:$2 sm:$0xff] }
  0x7b   : > { %v3827_v21 = vld [vmem:[%s5008_s29 + $0x64] ss:$2 sm:$0xff]  ;;  %v3828_v22 = vld [vmem:[%s5008_s29 + $0x74] ss:$2 sm:$0xff] }
  0x7c   : > { %1482 = vmatpush2.bf16.msra.mxu1 %v4982_v38  ;;  %v3788_v38 = vld [vmem:[%s5008_s29 + $0xf1] ss:$2 sm:$0x3f] }
  0x7d   : > { %1483 = vmatprep.subr.bf16.mxu1 %v4991_v40  ;;  %v3820_v40 = vld [vmem:[%s5008_s29 + $0xf3] ss:$2 sm:$0x3f]  ;;  %v5367_v29 = vpack.c.bf16 %v3788_v38, %v3787_v30  ;;  %v4564_v38 = vld [vmem:[%s6933_s1 + $0x1e4] ss:$8 sps:$4 sm:$0xff]  }
  0x7e   : > { %1151 = vmatmul.mubr.bf16.gmra.mxu0 %v653_v35  ;;  %v5370_v33 = vpack.c.bf16 %v3820_v40, %v3819_v1  ;;  %v3804_v35 = vld [vmem:[%s5008_s29 + $0xf2] ss:$2 sm:$0x3f]  ;;  %v4568_v40 = vld [vmem:[%s6933_s1 + $0x1c4] ss:$8 sps:$4 sm:$0xff]  }
  0x7f   : > { %1264 = vmatmul.mubr.bf16.gmra.mxu1 %v5341_v26  ;;  %1160 = vmatprep.mubr.bf16.mxu0 %v5345_v34  ;;  %v4562_v30 = vld [vmem:[%s6933_s1 + $0x1f4] ss:$8 sps:$4 sm:$0xff]  }
  0x80   : > { %1484 = vmatpush2.bf16.msra.mxu1 %v5000_v42  ;;  %1273 = vmatprep.mubr.bf16.mxu1 %v5349_v36  ;;  %v3771_v42 = vld [vmem:[%s5008_s29 + $0xe0] ss:$2 sm:$0xff]  ;;  %v4566_v1 = vld [vmem:[%s6933_s1 + $0x1d4] ss:$8 sps:$4 sm:$0xff]  }
  0x81   : > { %1485 = vmatprep.subr.bf16.mxu1 %v5014_v44  ;;  %v663_v44 = vpack.c.bf16 %v3772_v32, %v3771_v42  ;;  %v4570_v42 = vld [vmem:[%s6933_s1 + $0x1b4] ss:$8 sps:$4 sm:$0xff]  }
  0x82   : > { %v3836_v32 = vld [vmem:[%s5008_s29 + $0xf4] ss:$2 sm:$0x3f] }
  0x84   : > { %1486 = vmatpush2.bf16.msra.mxu1 %v5028_v50  ;;  %v5381_v50 = vpack.c.bf16 %v3804_v35, %v3803_v24  ;;  %v6977_v35 = vld [vmem:[#allocation8_spill] sm:$0xff] }
  0x85   : > { %1487 = vmatprep.subr.bf16.mxu1 %v5036_v52  ;;  %v3821_v52 = vld [vmem:[%s5008_s29 + $0x4] ss:$2 sm:$0xff] }
  0x86   : > { %1161 = vmatmul.mubr.bf16.gmra.mxu0 %v658_v48 }
  0x87   : > { %1274 = vmatmul.mubr.bf16.gmra.mxu1 %v5364_v6  ;;  %1170 = vmatprep.mubr.bf16.mxu0 %v5367_v29 }
  0x88   : > { %1488 = vmatpush2.bf16.msra.mxu1 %v5052_v56  ;;  %1283 = vmatprep.mubr.bf16.mxu1 %v5370_v33  ;;  %v6949_v56 = vmov 0  }
  0x89   : > { %1489 = vmatprep.subr.bf16.mxu1 %v5062_v58  ;;  %v5392_v58 = vpack.c.bf16 %v3822_v41, %v3821_v52  ;;  %v6978_v41 = vld [vmem:[#allocation9_spill] sm:$0xff] }
  0x8c   : > { %1490 = vmatpush2.bf16.msra.mxu1 %v5075_v60  ;;  %v3823_v60 = vld [vmem:[%s5008_s29 + $0x24] ss:$2 sm:$0xff] }
  0x8d   : > { %1491 = vmatprep.subr.bf16.mxu1 %v5085_v62  ;;  %v3824_v62 = vld [vmem:[%s5008_s29 + $0x34] ss:$2 sm:$0xff] }
  0x8e   : > { %1171 = vmatmul.mubr.bf16.gmra.mxu0 %v663_v44  ;;  %v3923_v44 = vld [vmem:[%s5008_s29 + $0x65] ss:$2 sm:$0xff] }
  0x8f   : > { %1284 = vmatmul.mubr.bf16.gmra.mxu1 %v5381_v50  ;;  %1326 = vmatprep.mubr.bf16.mxu0 %v6949_v56 }
  0x90   : > { %1492 = vmatpush2.bf16.msra.mxu1 %v5099_v3  ;;  %1495 = vmatprep.mubr.bf16.mxu1 %v5143_v31  ;;  %v4547_v3 = vld [vmem:[%s6933_s1 + $0x170] ss:$8 sps:$4 sm:$0xff]  }
  0x91   : > { %1493 = vmatprep.subr.bf16.mxu1 %v5109_v7  ;;  %v4548_v7 = vld [vmem:[%s6933_s1 + $0x164] ss:$8 sps:$4 sm:$0xff]  }
  0x92   : > { %v3825_v31 = vld [vmem:[%s5008_s29 + $0x44] ss:$2 sm:$0xff] }
  0x94   : > { %1494 = vmatpush2.bf16.msra.mxu1 %v5121_v11  ;;  %v4549_v11 = vld [vmem:[%s6933_s1 + $0x160] ss:$8 sps:$4 sm:$0xff]  }
  0x95   : > { %1689 = vmatprep.subr.bf16.mxu1 %v5139_v23  ;;  %v4550_v23 = vld [vmem:[%s6933_s1 + $0x154] ss:$8 sps:$4 sm:$0xff]  }
  0x96   : > { %1327 = vmatmul.mubr.bf16.vlgmr.msra.gmra.mxu0 %v5392_v58 }
  0x97   : > { %1496 = vmatmul.mubr.bf16.vlgmr.msra.gmra.mxu1 %v5038_v53  ;;  %1577 = vmatpush1.bf16.msra.mxu0 %v4547_v3  ;;  %v5410_v53 = vpack.c.bf16 %v3824_v62, %v3823_v60  ;;  %v3926_v60 = vld [vmem:[%s5008_s29 + $0x95] ss:$2 sm:$0xff]  ;;  %v6979_v3 = vld [vmem:[#allocation10_spill] sm:$0xff] }
  0x98   : > { %1690 = vmatpush1.bf16.msra.mxu1 %v5152_v37  ;;  %1578 = vmatprep.subr.bf16.mxu0 %v4548_v7  ;;  %v3826_v37 = vld [vmem:[%s5008_s29 + $0x54] ss:$2 sm:$0xff]  ;;  %v3927_v7 = vld [vmem:[%s5008_s29 + $0xa5] ss:$2 sm:$0xff] }
  0x99   : > { %1336 = vmatprep.mubr.bf16.mxu0 %v6949_v56  ;;  %1505 = vmatprep.mubr.bf16.mxu1 %v5190_v19  ;;  %v4554_v19 = vld [vmem:[%s6933_s1 + $0x134] ss:$8 sps:$4 sm:$0xff]  }
  0x9a   : > { %1691 = vmatprep.subr.bf16.mxu1 %v5164_v45  ;;  %v4551_v45 = vld [vmem:[%s6933_s1 + $0x150] ss:$8 sps:$4 sm:$0xff]  }
  0x9b   : > { %1579 = vmatpush1.bf16.msra.mxu0 %v4549_v11 }
  0x9c   : > { %1692 = vmatpush1.bf16.msra.mxu1 %v5175_v0  ;;  %1580 = vmatprep.subr.bf16.mxu0 %v4550_v23  ;;  %v4552_v0 = vld [vmem:[%s6933_s1 + $0x144] ss:$8 sps:$4 sm:$0xff]   ;;  %v5580_v23 = vld [vmem:[%s6935_s3 + $0x74] ss:$8 sps:$4 sm:$0xff]  }
  0x9d   : > { %1693 = vmatprep.subr.bf16.mxu1 %v5184_v55  ;;  %v5433_v55 = vpack.c.bf16 %v3826_v37, %v3825_v31  ;;  %v5585_v31 = vld [vmem:[%s6935_s3 + $0x70] ss:$8 sps:$4 sm:$0xff]   ;;  %v4376_v37 = vld [vmem:[%s6935_s3 + $0x174] ss:$8 sps:$4 sm:$0xff]  }
  0x9e   : > { %1337 = vmatmul.mubr.bf16.gmra.mxu0 %v5410_v53 }
  0x9f   : > { %1506 = vmatmul.mubr.bf16.gmra.mxu1 %v5156_v39  ;;  %1581 = vmatpush1.bf16.msra.mxu0 %v4551_v45  ;;  %v4553_v39 = vld [vmem:[%s6933_s1 + $0x140] ss:$8 sps:$4 sm:$0xff]   ;;  %v6981_v45 = vld [vmem:[#allocation11_spill] sm:$0xff] }
  0xa0   : > { %1346 = vmatprep.mubr.bf16.mxu0 %v6949_v56  ;;  %1582 = vmatprep.subr.bf16.mxu0 %v4552_v0  ;;  %v4374_v0 = vld [vmem:[%s6935_s3 + $0x170] ss:$8 sps:$4 sm:$0xff]  }
  0xa1   : > { %1515 = vmatprep.mubr.bf16.mxu1 %v5229_v49  ;;  %1694 = vmatpush1.bf16.msra.mxu1 %v5203_v25  ;;  %v4555_v25 = vld [vmem:[%s6933_s1 + $0x130] ss:$8 sps:$4 sm:$0xff]   ;;  %v4558_v49 = vld [vmem:[%s6933_s1 + $0x114] ss:$8 sps:$4 sm:$0xff]  }
  0xa2   : > { %1695 = vmatprep.subr.bf16.mxu1 %v5210_v8  ;;  %v4556_v8 = vld [vmem:[%s6933_s1 + $0x124] ss:$8 sps:$4 sm:$0xff]  }
  0xa3   : > { %1583 = vmatpush1.bf16.msra.mxu0 %v4553_v39  ;;  %v3929_v39 = vld [vmem:[%s5008_s29 + $0xc5] ss:$2 sm:$0xff] }
  0xa4   : > { %1584 = vmatprep.subr.bf16.mxu0 %v4554_v19  ;;  %v3930_v19 = vld [vmem:[%s5008_s29 + $0xd5] ss:$2 sm:$0xff] }
  0xa5   : > { %1696 = vmatpush1.bf16.msra.mxu1 %v5227_v10  ;;  %v5456_v10 = vpack.c.bf16 %v3828_v22, %v3827_v21  ;;  %v4377_v21 = vld [vmem:[%s6935_s3 + $0x60] ss:$8 sps:$4 sm:$0xff]   ;;  %v4382_v22 = vld [vmem:[%s6935_s3 + $0x164] ss:$8 sps:$4 sm:$0xff]  }
  0xa6   : > { %1347 = vmatmul.mubr.bf16.gmra.mxu0 %v5433_v55  ;;  %1697 = vmatprep.subr.bf16.mxu1 %v5251_v14  ;;  %v3829_v14 = vld [vmem:[%s5008_s29 + $0x84] ss:$2 sm:$0xff] }
  0xa7   : > { %1516 = vmatmul.mubr.bf16.gmra.mxu1 %v5194_v4  ;;  %1585 = vmatpush1.bf16.msra.mxu0 %v4555_v25  ;;  %v4557_v4 = vld [vmem:[%s6933_s1 + $0x120] ss:$8 sps:$4 sm:$0xff]   ;;  %v1461_v25 = vpack.c.bf16 %v3930_v19, %v3929_v39  ;;  %v4433_v39 = vld [vmem:[%s6935_s3 + $0xd4] ss:$8 sps:$4 sm:$0xff]  }
  0xa8   : > { %1356 = vmatprep.mubr.bf16.mxu0 %v6949_v56  ;;  %1586 = vmatprep.subr.bf16.mxu0 %v4556_v8  ;;  %v4380_v8 = vld [vmem:[%s6935_s3 + $0x160] ss:$8 sps:$4 sm:$0xff]  }
  0xa9   : > { %1525 = vmatprep.mubr.bf16.mxu1 %v5268_v47  ;;  %1698 = vmatpush1.bf16.msra.mxu1 %v5246_v27  ;;  %v4559_v27 = vld [vmem:[%s6933_s1 + $0x110] ss:$8 sps:$4 sm:$0xff]  }
  0xaa   : > { %1699 = vmatprep.subr.bf16.mxu1 %v5256_v16  ;;  %v3830_v47 = vld [vmem:[%s5008_s29 + $0x94] ss:$2 sm:$0xff]  ;;  %v4560_v16 = vld [vmem:[%s6933_s1 + $0x104] ss:$8 sps:$4 sm:$0xff]  }
  0xab   : > { %1587 = vmatpush1.bf16.msra.mxu0 %v4557_v4  ;;  %v4383_v4 = vld [vmem:[%s6935_s3 + $0x50] ss:$8 sps:$4 sm:$0xff]  }
  0xac   : > { %1588 = vmatprep.subr.bf16.mxu0 %v4558_v49  ;;  %v4388_v49 = vld [vmem:[%s6935_s3 + $0x154] ss:$8 sps:$4 sm:$0xff]  }
  0xad   : > { %1700 = vmatpush1.bf16.msra.mxu1 %v5277_v20  ;;  %v4563_v20 = vld [vmem:[%s6933_s1 + $0x1f0] ss:$8 sps:$4 sm:$0xff]  }
  0xae   : > { %1357 = vmatmul.mubr.bf16.gmra.mxu0 %v5456_v10  ;;  %1701 = vmatprep.subr.bf16.mxu1 %v5286_v2  ;;  %v3831_v2 = vld [vmem:[%s5008_s29 + $0xa4] ss:$2 sm:$0xff] }
  0xaf   : > { %1526 = vmatmul.mubr.bf16.gmra.mxu1 %v5233_v12  ;;  %1589 = vmatpush1.bf16.msra.mxu0 %v4559_v27  ;;  %v5479_v12 = vpack.c.bf16 %v3830_v47, %v3829_v14  ;;  %v3931_v27 = vld [vmem:[%s5008_s29 + $0xe5] ss:$2 sm:$0xff] }
  0xb0   : > { %1366 = vmatprep.mubr.bf16.mxu0 %v6949_v56  ;;  %1590 = vmatprep.subr.bf16.mxu0 %v4560_v16  ;;  %v4386_v14 = vld [vmem:[%s6935_s3 + $0x150] ss:$8 sps:$4 sm:$0xff]   ;;  %v4391_v47 = vld [vmem:[%s6935_s3 + $0x44] ss:$8 sps:$4 sm:$0xff]  }
  0xb1   : > { %1535 = vmatprep.mubr.bf16.mxu1 %v5307_v46  ;;  %1702 = vmatpush1.bf16.msra.mxu1 %v5302_v43  ;;  %v3832_v46 = vld [vmem:[%s5008_s29 + $0xb4] ss:$2 sm:$0xff]  ;;  %v3932_v16 = vld [vmem:[%s5008_s29 + $0xf5] ss:$2 sm:$0x3f] }
  0xb2   : > { %1703 = vmatprep.subr.bf16.mxu1 %v5316_v28  ;;  %v4565_v43 = vld [vmem:[%s6933_s1 + $0x1e0] ss:$8 sps:$4 sm:$0xff]   ;;  %v4567_v28 = vld [vmem:[%s6933_s1 + $0x1d0] ss:$8 sps:$4 sm:$0xff]  }
  0xb3   : > { %1591 = vmatpush1.bf16.msra.mxu0 %v4561_v17  ;;  %v1462_v17 = vpack.c.bf16 %v3932_v16, %v3931_v27  ;;  %v4439_v27 = vld [vmem:[%s6935_s3 + $0xc4] ss:$8 sps:$4 sm:$0xff]  }
  0xb4   : > { %1592 = vmatprep.subr.bf16.mxu0 %v4562_v30  ;;  %v4392_v30 = vld [vmem:[%s6935_s3 + $0x140] ss:$8 sps:$4 sm:$0xff]  }
  0xb5   : > { %1704 = vmatpush1.bf16.msra.mxu1 %v5324_v15  ;;  %v3833_v15 = vld [vmem:[%s5008_s29 + $0xc4] ss:$2 sm:$0xff] }
  0xb6   : > { %1367 = vmatmul.mubr.bf16.gmra.mxu0 %v5479_v12  ;;  %2541 = vmatprep.subr.bf16.mxu1 %v4376_v37 }
  0xb7   : > { %1536 = vmatmul.mubr.bf16.gmra.mxu1 %v5272_v18  ;;  %1593 = vmatpush2.bf16.msra.mxu0 %v4563_v20  ;;  %v5502_v18 = vpack.c.bf16 %v3832_v46, %v3831_v2  ;;  %v4397_v20 = vld [vmem:[%s6935_s3 + $0x34] ss:$8 sps:$4 sm:$0xff]   ;;  %v4395_v2 = vld [vmem:[%s6935_s3 + $0x30] ss:$8 sps:$4 sm:$0xff]  }
  0xb8   : > { %1376 = vmatprep.mubr.bf16.mxu0 %v6949_v56  ;;  %1594 = vmatprep.subr.bf16.mxu0 %v4564_v38  ;;  %v4400_v46 = vld [vmem:[%s6935_s3 + $0x134] ss:$8 sps:$4 sm:$0xff]   ;;  %v4398_v38 = vld [vmem:[%s6935_s3 + $0x130] ss:$8 sps:$4 sm:$0xff]  }
  0xb9   : > { %1545 = vmatprep.mubr.bf16.mxu1 %v5341_v26  ;;  %v3834_v26 = vld [vmem:[%s5008_s29 + $0xd4] ss:$2 sm:$0xff] }
  0xba   : > { %v5523_v48 = vpack.c.bf16 %v3834_v26, %v3833_v15  ;;  %v4407_v15 = vld [vmem:[%s6935_s3 + $0x10] ss:$8 sps:$4 sm:$0xff]   ;;  %v4412_v26 = vld [vmem:[%s6935_s3 + $0x114] ss:$8 sps:$4 sm:$0xff]  }
  0xbb   : > { %1595 = vmatpush2.bf16.msra.mxu0 %v4565_v43  ;;  %v4401_v43 = vld [vmem:[%s6935_s3 + $0x20] ss:$8 sps:$4 sm:$0xff]  }
  0xbc   : > { %1596 = vmatprep.subr.bf16.mxu0 %v4566_v1  ;;  %v4404_v1 = vld [vmem:[%s6935_s3 + $0x120] ss:$8 sps:$4 sm:$0xff]  }
  0xbe   : > { %1377 = vmatmul.mubr.bf16.gmra.mxu0 %v5502_v18 }
  0xbf   : > { %1546 = vmatmul.mubr.bf16.gmra.mxu1 %v5311_v51  ;;  %1597 = vmatpush2.bf16.msra.mxu0 %v4567_v28  ;;  %v4569_v51 = vld [vmem:[%s6933_s1 + $0x1c0] ss:$8 sps:$4 sm:$0xff]   ;;  %v4409_v28 = vld [vmem:[%s6935_s3 + $0x14] ss:$8 sps:$4 sm:$0xff]  }
  0xc0   : > { %1386 = vmatprep.mubr.bf16.mxu0 %v6949_v56  ;;  %1598 = vmatprep.subr.bf16.mxu0 %v4568_v40 }
  0xc1   : > { %1555 = vmatprep.mubr.bf16.mxu1 %v5364_v6  ;;  %v3835_v6 = vld [vmem:[%s5008_s29 + $0xe4] ss:$2 sm:$0xff] }
  0xc2   : > { %v5539_v24 = vpack.c.bf16 %v3836_v32, %v3835_v6  ;;  %v4413_v32 = vld [vmem:[%s6935_s3] ss:$8 sps:$4 sm:$0xff]  }
  0xc3   : > { %1599 = vmatpush2.bf16.msra.mxu0 %v4569_v51  ;;  %v4410_v51 = vld [vmem:[%s6935_s3 + $0x110] ss:$8 sps:$4 sm:$0xff]  }
  0xc4   : > { %1600 = vmatprep.subr.bf16.mxu0 %v4570_v42  ;;  %v4415_v42 = vld [vmem:[%s6935_s3 + $0x4] ss:$8 sps:$4 sm:$0xff]  }
  0xc6   : > { %1387 = vmatmul.mubr.bf16.gmra.mxu0 %v5523_v48 }
  0xc7   : > { %1556 = vmatmul.mubr.bf16.gmra.mxu1 %v5345_v34  ;;  %1601 = vmatpush2.bf16.msra.mxu0 %v5057_v57  ;;  %v3917_v57 = vld [vmem:[%s5008_s29 + $0x5] ss:$2 sm:$0xff] }
  0xc8   : > { %1396 = vmatprep.mubr.bf16.mxu0 %v6949_v56  ;;  %1602 = vmatprep.subr.bf16.mxu0 %v5068_v59  ;;  %v3918_v59 = vld [vmem:[%s5008_s29 + $0x15] ss:$2 sm:$0xff] }
  0xc9   : > { %1565 = vmatprep.mubr.bf16.mxu1 %v5381_v50  ;;  %v3924_v50 = vld [vmem:[%s5008_s29 + $0x75] ss:$2 sm:$0xff] }
  0xca   : > { %v1458_v52 = vpack.c.bf16 %v3924_v50, %v3923_v44  ;;  %v4424_v44 = vld [vmem:[%s6935_s3 + $0x1f4] ss:$8 sps:$4 sm:$0xff]  }
  0xcb   : > { %1603 = vmatpush2.bf16.msra.mxu0 %v5080_v61  ;;  %v1455_v61 = vpack.c.bf16 %v3918_v59, %v3917_v57 }
  0xcc   : > { %1604 = vmatprep.subr.bf16.mxu0 %v5092_v63  ;;  %v3919_v63 = vld [vmem:[%s5008_s29 + $0x25] ss:$2 sm:$0xff] }
  0xce   : > { %1397 = vmatmul.mubr.bf16.gmra.mxu0 %v5539_v24 }
  0xcf   : > { %1566 = vmatmul.mubr.bf16.gmra.mxu1 %v5367_v29  ;;  %1605 = vmatpush2.bf16.msra.mxu0 %v5104_v5  ;;  %v3920_v5 = vld [vmem:[%s5008_s29 + $0x35] ss:$2 sm:$0xff] }
  0xd0   : > { %1608 = vmatprep.mubr.bf16.mxu0 %v5392_v58  ;;  %1606 = vmatprep.subr.bf16.mxu0 %v5116_v9  ;;  %v1456_v34 = vpack.c.bf16 %v3920_v5, %v3919_v63  ;;  %v6976_v29 = vld [vmem:[#allocation7_spill] sm:$0xff] }
  0xd1   : > { %1721 = vmatprep.mubr.bf16.mxu1 %v6949_v56  ;;  %v3922_v9 = vld [vmem:[%s5008_s29 + $0x55] ss:$2 sm:$0xff]  ;;  %v3925_v58 = vld [vmem:[%s5008_s29 + $0x85] ss:$2 sm:$0xff]  ;;  %6980 = vst [vmem:[#allocation7_spill] sm:$0xff] %v5585_v31 }
  0xd2   : > { %v1459_v62 = vpack.c.bf16 %v3926_v60, %v3925_v58  ;;  %v4427_v58 = vld [vmem:[%s6935_s3 + $0xe4] ss:$8 sps:$4 sm:$0xff]  }
  0xd3   : > { %1607 = vmatpush2.bf16.msra.mxu0 %v5126_v13 }
  0xd4   : > { %2468 = vmatprep.subr.bf16.mxu0 %v5580_v23 }
  0xd6   : > { %1609 = vmatmul.mubr.bf16.vlgmr.msra.gmra.mxu0 %v5040_v54  ;;  %v3921_v54 = vld [vmem:[%s5008_s29 + $0x45] ss:$2 sm:$0xff] }
  0xd7   : > { %1722 = vmatmul.mubr.bf16.vlgmr.msra.gmra.mxu1 %v1455_v61  ;;  %1618 = vmatprep.mubr.bf16.mxu0 %v5410_v53  ;;  %v1457_v13 = vpack.c.bf16 %v3922_v9, %v3921_v54  ;;  %v3928_v53 = vld [vmem:[%s5008_s29 + $0xb5] ss:$2 sm:$0xff]  ;;  %v4418_v61 = vld [vmem:[%s6935_s3 + $0x104] ss:$8 sps:$4 sm:$0xff]   ;;  %s3679_s29 = scalar_lea.sflag [#allocation5], %s378_s14 }
  0xd8   : > { %1731 = vmatprep.mubr.bf16.mxu1 %v6949_v56  ;;  %v1460_v11 = vpack.c.bf16 %v3928_v53, %v3927_v7  ;;  %2469 = vmatpush1.bf16.msra.mxu0 %v5585_v31  ;;  %v4419_v9 = vld [vmem:[%s6935_s3 + $0xf0] ss:$8 sps:$4 sm:$0xff]  }
  0xd9   : > { %2542 = vmatpush1.bf16.msra.mxu1 %v4374_v0  ;;  %v4428_v0 = vld [vmem:[%s6935_s3 + $0x1e0] ss:$8 sps:$4 sm:$0xff]  }
  0xda   : > { %2543 = vmatprep.subr.bf16.mxu1 %v4382_v22 }
  0xdd   : > { %2544 = vmatpush1.bf16.msra.mxu1 %v4380_v8  ;;  %v4436_v8 = vld [vmem:[%s6935_s3 + $0x1d4] ss:$8 sps:$4 sm:$0xff]  }
  0xde   : > { %1619 = vmatmul.mubr.bf16.gmra.mxu0 %v6976_v29  ;;  %2545 = vmatprep.subr.bf16.mxu1 %v4388_v49  ;;  %v4421_v29 = vld [vmem:[%s6935_s3 + $0xf4] ss:$8 sps:$4 sm:$0xff]   ;;  %v4434_v49 = vld [vmem:[%s6935_s3 + $0x1d0] ss:$8 sps:$4 sm:$0xff]  }
  0xdf   : > { %1732 = vmatmul.mubr.bf16.gmra.mxu1 %v1456_v34  ;;  %1628 = vmatprep.mubr.bf16.mxu0 %v5433_v55  ;;  %v5599_v55 = vld [vmem:[%s6935_s3 + $0x64] ss:$8 sps:$4 sm:$0xff]   ;;  %v4416_v34 = vld [vmem:[%s6935_s3 + $0x100] ss:$8 sps:$4 sm:$0xff]  }
  0xe0   : > { %1741 = vmatprep.mubr.bf16.mxu1 %v6949_v56  ;;  %6982 = vst [vmem:[#allocation8_spill] sm:$0xff] %v5599_v55  ;;  %2470 = vmatprep.subr.bf16.mxu0 %v5599_v55 }
  0xe1   : > { %2471 = vmatpush1.bf16.msra.mxu0 %v4377_v21  ;;  %2546 = vmatpush1.bf16.msra.mxu1 %v4386_v14  ;;  %v4431_v21 = vld [vmem:[%s6935_s3 + $0xd0] ss:$8 sps:$4 sm:$0xff]  }
  0xe6   : > { %1629 = vmatmul.mubr.bf16.gmra.mxu0 %v6977_v35 }
  0xe7   : > { %1742 = vmatmul.mubr.bf16.gmra.mxu1 %v1457_v13  ;;  %1638 = vmatprep.mubr.bf16.mxu0 %v5456_v10  ;;  %v4385_v10 = vld [vmem:[%s6935_s3 + $0x54] ss:$8 sps:$4 sm:$0xff]  }
  0xe8   : > { %1751 = vmatprep.mubr.bf16.mxu1 %v6949_v56  ;;  %2472 = vmatprep.subr.bf16.mxu0 %v4385_v10 }
  0xe9   : > { %2473 = vmatpush1.bf16.msra.mxu0 %v4383_v4 }
  0xea   : > { %2474 = vmatprep.subr.bf16.mxu0 %v4391_v47  ;;  %v4437_v47 = vld [vmem:[%s6935_s3 + $0xc0] ss:$8 sps:$4 sm:$0xff]  }
  0xee   : > { %1639 = vmatmul.mubr.bf16.gmra.mxu0 %v6978_v41  ;;  %v4422_v41 = vld [vmem:[%s6935_s3 + $0x1f0] ss:$8 sps:$4 sm:$0xff]  }
  0xef   : > { %1752 = vmatmul.mubr.bf16.gmra.mxu1 %v1458_v52  ;;  %1648 = vmatprep.mubr.bf16.mxu0 %v5479_v12  ;;  %v4389_v12 = vld [vmem:[%s6935_s3 + $0x40] ss:$8 sps:$4 sm:$0xff]  }
  0xf0   : > { %1761 = vmatprep.mubr.bf16.mxu1 %v6949_v56  ;;  %2475 = vmatpush1.bf16.msra.mxu0 %v4389_v12 }
  0xf1   : > { %2476 = vmatprep.subr.bf16.mxu0 %v4397_v20 }
  0xf4   : > { %2477 = vmatpush1.bf16.msra.mxu0 %v4395_v2  ;;  %v4440_v2 = vld [vmem:[%s6935_s3 + $0x1c0] ss:$8 sps:$4 sm:$0xff]  }
  0xf6   : > { %1649 = vmatmul.mubr.bf16.gmra.mxu0 %v6979_v3 }
  0xf7   : > { %1762 = vmatmul.mubr.bf16.gmra.mxu1 %v1459_v62  ;;  %1658 = vmatprep.mubr.bf16.mxu0 %v5502_v18  ;;  %v4403_v18 = vld [vmem:[%s6935_s3 + $0x24] ss:$8 sps:$4 sm:$0xff]   ;;  %v4425_v62 = vld [vmem:[%s6935_s3 + $0xe0] ss:$8 sps:$4 sm:$0xff]  }
  0xf8   : > { %1771 = vmatprep.mubr.bf16.mxu1 %v6949_v56  ;;  %2478 = vmatprep.subr.bf16.mxu0 %v4403_v18  ;;  %v4443_v18 = vld [vmem:[%s6935_s3 + $0xb0] ss:$8 sps:$4 sm:$0xff]  }
  0xf9   : > { %2479 = vmatpush1.bf16.msra.mxu0 %v4401_v43 }
  0xfa   : > { %2480 = vmatprep.subr.bf16.mxu0 %v4409_v28 }
  0xfd   : > { %2481 = vmatpush1.bf16.msra.mxu0 %v4407_v15 }
  0xfe   : > { %1659 = vmatmul.mubr.bf16.gmra.mxu0 %v6981_v45  ;;  %2482 = vmatprep.subr.bf16.mxu0 %v4415_v42 }
  0xff   : > { %1772 = vmatmul.mubr.bf16.gmra.mxu1 %v1460_v11  ;;  %1668 = vmatprep.mubr.bf16.mxu0 %v5523_v48  ;;  %v4430_v11 = vld [vmem:[%s6935_s3 + $0x1e4] ss:$8 sps:$4 sm:$0xff]  }
 0x100   : > { %1781 = vmatprep.mubr.bf16.mxu1 %v6949_v56 }
 0x101   : > { %2483 = vmatpush1.bf16.msra.mxu0 %v4413_v32 }
 0x102   : > { %2484 = vmatprep.subr.bf16.mxu0 %v4421_v29 }
 0x105   : > { %2485 = vmatpush2.bf16.msra.mxu0 %v4419_v9  ;;  %v4455_v9 = vld [vmem:[%s6935_s3 + $0x90] ss:$8 sps:$4 sm:$0xff]  }
 0x106   : > { %1669 = vmatmul.mubr.bf16.gmra.mxu0 %v5349_v36  ;;  %v4394_v36 = vld [vmem:[%s6935_s3 + $0x144] ss:$8 sps:$4 sm:$0xff]   ;;  %2486 = vmatprep.subr.bf16.mxu0 %v4427_v58 }
 0x107   : > { %1782 = vmatmul.mubr.bf16.gmra.mxu1 %v1461_v25  ;;  %1678 = vmatprep.mubr.bf16.mxu0 %v5539_v24 }
 0x108   : > { %1791 = vmatprep.mubr.bf16.mxu1 %v6949_v56  ;;  %2547 = vmatprep.subr.bf16.mxu1 %v4394_v36 }
 0x109   : > { %2548 = vmatpush1.bf16.msra.mxu1 %v4392_v30  ;;  %2487 = vmatpush2.bf16.msra.mxu0 %v4425_v62  ;;  %v4458_v62 = vld [vmem:[%s6935_s3 + $0x190] ss:$8 sps:$4 sm:$0xff]  }
 0x10a   : > { %2549 = vmatprep.subr.bf16.mxu1 %v4400_v46  ;;  %2488 = vmatprep.subr.bf16.mxu0 %v4433_v39  ;;  %v4445_v46 = vld [vmem:[%s6935_s3 + $0xb4] ss:$8 sps:$4 sm:$0xff]  }
 0x10d   : > { %2550 = vmatpush1.bf16.msra.mxu1 %v4398_v38  ;;  %2489 = vmatpush2.bf16.msra.mxu0 %v4431_v21 }
 0x10e   : > { %1679 = vmatmul.mubr.bf16.gmra.mxu0 %v5370_v33  ;;  %v4406_v33 = vld [vmem:[%s6935_s3 + $0x124] ss:$8 sps:$4 sm:$0xff]   ;;  %2490 = vmatprep.subr.bf16.mxu0 %v4439_v27 }
 0x10f   : > { %1792 = vmatmul.mubr.bf16.gmra.mxu1 %v1462_v17  ;;  %2551 = vmatprep.subr.bf16.mxu1 %v4406_v33  ;;  %v4442_v17 = vld [vmem:[%s6935_s3 + $0x1c4] ss:$8 sps:$4 sm:$0xff]  }
 0x111   : > { %2552 = vmatpush1.bf16.msra.mxu1 %v4404_v1  ;;  %2491 = vmatpush2.bf16.msra.mxu0 %v4437_v47  ;;  %v4448_v1 = vld [vmem:[%s6935_s3 + $0x1b4] ss:$8 sps:$4 sm:$0xff]  }
 0x112   : > { %2553 = vmatprep.subr.bf16.mxu1 %v4412_v26  ;;  %2492 = vmatprep.subr.bf16.mxu0 %v4445_v46  ;;  %v4446_v26 = vld [vmem:[%s6935_s3 + $0x1b0] ss:$8 sps:$4 sm:$0xff]  }
 0x115   : > { %2554 = vmatpush1.bf16.msra.mxu1 %v4410_v51  ;;  %2493 = vmatpush2.bf16.msra.mxu0 %v4443_v18  ;;  %v4449_v51 = vld [vmem:[%s6935_s3 + $0xa0] ss:$8 sps:$4 sm:$0xff]  }
 0x116   : > { %v1102_v40 = vpop.f32.mrf.mxu0  ;;  %2555 = vmatprep.subr.bf16.mxu1 %v4418_v61 }
 0x117   : > { %v1215_v48 = vpop.f32.mrf.mxu1 }
 0x118   : > { %v5684_v6 = vadd.f32 %v1215_v48, %v1102_v40  ;;  %v1104_v24 = vpop.f32.mrf.mxu0  ;;  %v4451_v40 = vld [vmem:[%s6935_s3 + $0xa4] ss:$8 sps:$4 sm:$0xff]  }
 0x119   : > { %v1217_v57 = vpop.f32.mrf.mxu1  ;;  %2556 = vmatpush1.bf16.msra.mxu1 %v4416_v34  ;;  %2494 = vmatprep.subr.bf16.mxu0 %v4451_v40  ;;  %v4457_v34 = vld [vmem:[%s6935_s3 + $0x94] ss:$8 sps:$4 sm:$0xff]  }
 0x11a   : > { %v5689_v59 = vadd.f32 %v1217_v57, %v1104_v24  ;;  %v1106_v63 = vpop.f32.mrf.mxu0  ;;  %2557 = vmatprep.subr.bf16.mxu1 %v4424_v44  ;;  %2495 = vmatpush2.bf16.msra.mxu0 %v4449_v51  ;;  %v4454_v57 = vld [vmem:[%s6935_s3 + $0x1a4] ss:$8 sps:$4 sm:$0xff]  }
 0x11b   : > { %v1219_v5 = vpop.f32.mrf.mxu1  ;;  %2496 = vmatprep.subr.bf16.mxu0 %v4457_v34 }
 0x11c   : > { %v5700_v54 = vadd.f32 %v1219_v5, %v1106_v63  ;;  %v5705_v13 = vpop.f32.mrf.mxu0  ;;  %v4452_v5 = vld [vmem:[%s6935_s3 + $0x1a0] ss:$8 sps:$4 sm:$0xff]  }
 0x11d   : > { %v5707_v35 = vpop.f32.mrf.mxu1  ;;  %2558 = vmatpush2.bf16.msra.mxu1 %v4422_v41 }
 0x11e   : > { %v1112_v50 = vpop.f32.mrf.mxu0  ;;  %2559 = vmatprep.subr.bf16.mxu1 %v4430_v11  ;;  %2497 = vmatpush2.bf16.msra.mxu0 %v4455_v9  ;;  %v4461_v11 = vld [vmem:[%s6935_s3 + $0x80] ss:$8 sps:$4 sm:$0xff]  }
 0x11f   : > { %v1225_v52 = vpop.f32.mrf.mxu1 }
 0x120   : > { %v5718_v60 = vadd.f32 %v1225_v52, %v1112_v50  ;;  %v1114_v3 = vpop.f32.mrf.mxu0  ;;  %v4460_v52 = vld [vmem:[%s6935_s3 + $0x194] ss:$8 sps:$4 sm:$0xff]  }
 0x121   : > { %v1227_v7 = vpop.f32.mrf.mxu1  ;;  %2560 = vmatpush2.bf16.msra.mxu1 %v4428_v0 }
 0x122   : > { %v5723_v53 = vadd.f32 %v1227_v7, %v1114_v3  ;;  %v1116_v37 = vpop.f32.mrf.mxu0  ;;  %2561 = vmatprep.subr.bf16.mxu1 %v4436_v8  ;;  %v4463_v3 = vld [vmem:[%s6935_s3 + $0x84] ss:$8 sps:$4 sm:$0xff]  }
 0x123   : > { %v1229_v45 = vpop.f32.mrf.mxu1  ;;  %2498 = vmatprep.subr.bf16.mxu0 %v4463_v3  ;;  %v4466_v8 = vld [vmem:[%s6935_s3 + $0x184] ss:$8 sps:$4 sm:$0xff]  }
 0x124   : > { %v5734_v19 = vadd.f32 %v1229_v45, %v1116_v37  ;;  %v5739_v22 = vpop.f32.mrf.mxu0  ;;  %2499 = vmatpush2.bf16.msra.mxu0 %v4461_v11 }
 0x125   : > { %v5741_v25 = vpop.f32.mrf.mxu1  ;;  %2562 = vmatpush2.bf16.msra.mxu1 %v4434_v49 }
 0x126   : > { %v1122_v10 = vpop.f32.mrf.mxu0  ;;  %2563 = vmatprep.subr.bf16.mxu1 %v4442_v17 }
 0x127   : > { %v1235_v4 = vpop.f32.mrf.mxu1 }
 0x128   : > { %v5752_v14 = vadd.f32 %v1235_v4, %v1122_v10  ;;  %v1124_v16 = vpop.f32.mrf.mxu0  ;;  %v4464_v4 = vld [vmem:[%s6935_s3 + $0x180] ss:$8 sps:$4 sm:$0xff]  }
 0x129   : > { %v1237_v12 = vpop.f32.mrf.mxu1  ;;  %2564 = vmatpush2.bf16.msra.mxu1 %v4440_v2 }
 0x12a   : > { %v5757_v36 = vadd.f32 %v1237_v12, %v1124_v16  ;;  %v1126_v30 = vpop.f32.mrf.mxu0  ;;  %2565 = vmatprep.subr.bf16.mxu1 %v4448_v1 }
 0x12b   : > { %v1239_v20 = vpop.f32.mrf.mxu1 }
 0x12c   : > { %v5768_v38 = vadd.f32 %v1239_v20, %v1126_v30  ;;  %v5773_v43 = vpop.f32.mrf.mxu0 }
 0x12d   : > { %v5775_v33 = vpop.f32.mrf.mxu1  ;;  %2566 = vmatpush2.bf16.msra.mxu1 %v4446_v26 }
 0x12e   : > { %v1132_v28 = vpop.f32.mrf.mxu0  ;;  %2567 = vmatprep.subr.bf16.mxu1 %v4454_v57 }
 0x12f   : > { %v1245_v15 = vpop.f32.mrf.mxu1 }
 0x130   : > { %v5786_v48 = vadd.f32 %v1245_v15, %v1132_v28  ;;  %v1134_v42 = vpop.f32.mrf.mxu0 }
 0x131   : > { %v1247_v32 = vpop.f32.mrf.mxu1  ;;  %2568 = vmatpush2.bf16.msra.mxu1 %v4452_v5 }
 0x132   : > { %v5791_v24 = vadd.f32 %v1247_v32, %v1134_v42  ;;  %v1136_v61 = vpop.f32.mrf.mxu0  ;;  %2569 = vmatprep.subr.bf16.mxu1 %v4460_v52 }
 0x133   : > { %v1249_v63 = vpop.f32.mrf.mxu1 }
 0x134   : > { %v5802_v29 = vadd.f32 %v1249_v63, %v1136_v61  ;;  %v5807_v44 = vpop.f32.mrf.mxu0 }
 0x135   : > { %v5809_v50 = vpop.f32.mrf.mxu1  ;;  %2570 = vmatpush2.bf16.msra.mxu1 %v4458_v62 }
 0x136   : > { %v1142_v41 = vpop.f32.mrf.mxu0  ;;  %2571 = vmatprep.subr.bf16.mxu1 %v4466_v8 }
 0x137   : > { %v1255_v58 = vpop.f32.mrf.mxu1 }
 0x138   : > { %v5820_v7 = vadd.f32 %v1255_v58, %v1142_v41  ;;  %v1144_v37 = vpop.f32.mrf.mxu0 }
 0x139   : > { %v1257_v45 = vpop.f32.mrf.mxu1  ;;  %2572 = vmatpush2.bf16.msra.mxu1 %v4464_v4 }
 0x13a   : > { %v5825_v0 = vadd.f32 %v1257_v45, %v1144_v37  ;;  %v1146_v39 = vpop.f32.mrf.mxu0  ;;  %2715 = vmatprep.subr.bf16.mxu1 %v5580_v23  ;;  %v5869_v45 = vld [vmem:[%s6935_s3 + $0x274] ss:$8 sps:$4 sm:$0xff]  }
 0x13b   : > { %v1259_v21 = vpop.f32.mrf.mxu1  ;;  %6983 = vst [vmem:[#allocation9_spill] sm:$0xff] %v5869_v45  ;;  %2614 = vmatprep.subr.bf16.mxu0 %v5869_v45 }
 0x13c   : > { %v5830_v10 = vadd.f32 %v1259_v21, %v1146_v39  ;;  %v5835_v49 = vpop.f32.mrf.mxu0 }
 0x13d   : > { %v5837_v27 = vpop.f32.mrf.mxu1 }
 0x13e   : > { %v1152_v47 = vpop.f32.mrf.mxu0 }
 0x13f   : > { %v1265_v16 = vpop.f32.mrf.mxu1 }
 0x140   : > { %v5840_v12 = vadd.f32 %v1265_v16, %v1152_v47  ;;  %v1154_v17 = vpop.f32.mrf.mxu0 }
 0x141   : > { %v1267_v30 = vpop.f32.mrf.mxu1 }
 0x142   : > { %v5842_v20 = vadd.f32 %v1267_v30, %v1154_v17  ;;  %v1156_v2 = vpop.f32.mrf.mxu0 }
 0x143   : > { %v1269_v46 = vpop.f32.mrf.mxu1 }
 0x144   : > { %v5844_v18 = vadd.f32 %v1269_v46, %v1156_v2  ;;  %v5846_v1 = vpop.f32.mrf.mxu0 }
 0x145   : > { %v5848_v28 = vpop.f32.mrf.mxu1 }
 0x146   : > { %v1162_v15 = vpop.f32.mrf.mxu0 }
 0x147   : > { %v1275_v26 = vpop.f32.mrf.mxu1 }
 0x148   : > { %v5850_v40 = vadd.f32 %v1275_v26, %v1162_v15  ;;  %v1164_v51 = vpop.f32.mrf.mxu0 }
 0x149   : > { %v1277_v23 = vpop.f32.mrf.mxu1 }
 0x14a   : > { %v5852_v42 = vadd.f32 %v1277_v23, %v1164_v51  ;;  %v1166_v32 = vpop.f32.mrf.mxu0 }
 0x14b   : > { %v1279_v57 = vpop.f32.mrf.mxu1 }
 0x14c   : > { %v5854_v61 = vadd.f32 %v1279_v57, %v1166_v32  ;;  %v5856_v63 = vpop.f32.mrf.mxu0 }
 0x14d   : > { %v5858_v5 = vpop.f32.mrf.mxu1 }
 0x14e   : > { %v1172_v34 = vpop.f32.mrf.mxu0 }
 0x14f   : > { %v1285_v9 = vpop.f32.mrf.mxu1 }
 0x150   : > { %v5860_v52 = vadd.f32 %v1285_v9, %v1172_v34  ;;  %v1174_v41 = vpop.f32.mrf.mxu0 }
 0x151   : > { %v1287_v58 = vpop.f32.mrf.mxu1 }
 0x152   : > { %v5862_v62 = vadd.f32 %v1287_v58, %v1174_v41  ;;  %v1176_v3 = vpop.f32.mrf.mxu0 }
 0x153   : > { %v1289_v11 = vpop.f32.mrf.mxu1 }
 0x154   : > { %v5864_v37 = vadd.f32 %v1289_v11, %v1176_v3  ;;  %v5871_v39 = vpop.f32.mrf.mxu0 }
 0x155   : > { %v5873_v21 = vpop.f32.mrf.mxu1 }
 0x156   : > { %v1328_v8 = vpop.f32.mrf.mxu0 }
 0x157   : > { %v5876_v4 = vpop.f32.mrf.mxu1  ;;  %v5879_v47 = vadd.f32 %v1328_v8, %v5684_v6 }
 0x158   : > { %v1330_v16 = vpop.f32.mrf.mxu0 }
 0x159   : > { %v5881_v17 = vpop.f32.mrf.mxu1  ;;  %v5884_v30 = vadd.f32 %v1330_v16, %v5689_v59 }
 0x15a   : > { %v1332_v2 = vpop.f32.mrf.mxu0 }
 0x15b   : > { %v5886_v46 = vpop.f32.mrf.mxu1  ;;  %v5891_v26 = vadd.f32 %v1332_v2, %v5700_v54 }
 0x15c   : > { %v5893_v51 = vpop.f32.mrf.mxu0 }
 0x15d   : > { %v5895_v23 = vpop.f32.mrf.mxu1 }
 0x15e   : > { %v1338_v6 = vpop.f32.mrf.mxu0 }
 0x15f   : > { %v5897_v32 = vpop.f32.mrf.mxu1  ;;  %v5900_v57 = vadd.f32 %v1338_v6, %v5718_v60 }
 0x160   : > { %v1340_v59 = vpop.f32.mrf.mxu0 }
 0x161   : > { %v5902_v34 = vpop.f32.mrf.mxu1  ;;  %v5905_v9 = vadd.f32 %v1340_v59, %v5723_v53 }
 0x162   : > { %v1342_v41 = vpop.f32.mrf.mxu0 }
 0x163   : > { %v5907_v58 = vpop.f32.mrf.mxu1  ;;  %v5912_v3 = vadd.f32 %v1342_v41, %v5734_v19 }
 0x164   : > { %v5914_v11 = vpop.f32.mrf.mxu0 }
 0x165   : > { %v5916_v8 = vpop.f32.mrf.mxu1 }
 0x166   : > { %v1348_v60 = vpop.f32.mrf.mxu0 }
 0x167   : > { %v5918_v16 = vpop.f32.mrf.mxu1  ;;  %v5921_v2 = vadd.f32 %v1348_v60, %v5752_v14 }
 0x168   : > { %v1350_v53 = vpop.f32.mrf.mxu0 }
 0x169   : > { %v5923_v6 = vpop.f32.mrf.mxu1  ;;  %v5926_v59 = vadd.f32 %v1350_v53, %v5757_v36 }
 0x16a   : > { %v1352_v56 = vpop.f32.mrf.mxu0 }
 0x16b   : > { %6984 = vst [vmem:[#allocation10_spill] sm:$0xff] %v5926_v59  ;;  %v5928_v54 = vpop.f32.mrf.mxu1  ;;  %v5933_v41 = vadd.f32 %v1352_v56, %v5768_v38  ;;  %v1252_v56 = vadd.f32 %v5809_v50, %v5807_v44 }
 0x16c   : > { %v5935_v15 = vpop.f32.mrf.mxu0 }
 0x16d   : > { %6985 = vst [vmem:[#allocation11_spill] sm:$0xff] %v5933_v41  ;;  %v5937_v45 = vpop.f32.mrf.mxu1 }
 0x16e   : > { %v1358_v14 = vpop.f32.mrf.mxu0 }
 0x16f   : > { %v5939_v60 = vpop.f32.mrf.mxu1  ;;  %v5942_v55 = vadd.f32 %v1358_v14, %v5786_v48 }
 0x170   : > { %6986 = vst [vmem:[#allocation12_spill] sm:$0xff] %v5939_v60  ;;  %v1360_v36 = vpop.f32.mrf.mxu0 }
 0x171   : > { %v5944_v53 = vpop.f32.mrf.mxu1  ;;  %v5947_v31 = vadd.f32 %v1360_v36, %v5791_v24 }
 0x172   : > { %6987 = vst [vmem:[#allocation13_spill] sm:$0xff] %v5944_v53  ;;  %v1362_v19 = vpop.f32.mrf.mxu0 }
 0x173   : > { %v5949_v59 = vpop.f32.mrf.mxu1  ;;  %v5956_v41 = vadd.f32 %v1362_v19, %v5802_v29 }
 0x174   : > { %6988 = vst [vmem:[#allocation14_spill] sm:$0xff] %v5949_v59  ;;  %v1364_v48 = vpop.f32.mrf.mxu0 }
 0x175   : > { %6989 = vst [vmem:[#allocation15_spill] sm:$0xff] %v5956_v41  ;;  %v5958_v14 = vpop.f32.mrf.mxu1  ;;  %v5960_v60 = vadd.f32 %v1364_v48, %v1252_v56  ;;  %v1262_v56 = vadd.f32 %v5837_v27, %v5835_v49 }
 0x176   : > { %v1368_v53 = vpop.f32.mrf.mxu0 }
 0x177   : > { %6990 = vst [vmem:[#allocation16_spill] sm:$0xff] %v5960_v60  ;;  %v5962_v24 = vpop.f32.mrf.mxu1  ;;  %v5967_v59 = vadd.f32 %v1368_v53, %v5820_v7 }
 0x178   : > { %v1370_v44 = vpop.f32.mrf.mxu0 }
 0x179   : > { %v5969_v50 = vpop.f32.mrf.mxu1  ;;  %v5972_v29 = vadd.f32 %v1370_v44, %v5825_v0 }
 0x17a   : > { %v1372_v19 = vpop.f32.mrf.mxu0 }
 0x17b   : > { %v5974_v38 = vpop.f32.mrf.mxu1  ;;  %v5981_v36 = vadd.f32 %v1372_v19, %v5830_v10 }
 0x17c   : > { %6991 = vst [vmem:[#allocation17_spill] sm:$0xff] %v5974_v38  ;;  %v1374_v7 = vpop.f32.mrf.mxu0 }
 0x17d   : > { %6992 = vst [vmem:[#allocation18_spill] sm:$0xff] %v5981_v36  ;;  %v5983_v53 = vpop.f32.mrf.mxu1  ;;  %v5985_v60 = vadd.f32 %v1374_v7, %v1262_v56  ;;  %v1272_v56 = vadd.f32 %v5848_v28, %v5846_v1 }
 0x17e   : > { %v1378_v41 = vpop.f32.mrf.mxu0 }
 0x17f   : > { %6993 = vst [vmem:[#allocation19_spill] sm:$0xff] %v5985_v60  ;;  %v5987_v0 = vpop.f32.mrf.mxu1  ;;  %v5992_v38 = vadd.f32 %v1378_v41, %v5840_v12 }
 0x180   : > { %v1380_v49 = vpop.f32.mrf.mxu0 }
 0x181   : > { %v5994_v27 = vpop.f32.mrf.mxu1  ;;  %v5997_v10 = vadd.f32 %v1380_v49, %v5842_v20 }
 0x182   : > { %v1382_v19 = vpop.f32.mrf.mxu0 }
 0x183   : > { %v5999_v48 = vpop.f32.mrf.mxu1  ;;  %v6006_v44 = vadd.f32 %v1382_v19, %v5844_v18 }
 0x184   : > { %6994 = vst [vmem:[#allocation20_spill] sm:$0xff] %v5999_v48  ;;  %v1384_v12 = vpop.f32.mrf.mxu0 }
 0x185   : > { %6995 = vst [vmem:[#allocation21_spill] sm:$0xff] %v6006_v44  ;;  %v6008_v41 = vpop.f32.mrf.mxu1  ;;  %v6010_v60 = vadd.f32 %v1384_v12, %v1272_v56  ;;  %v1282_v56 = vadd.f32 %v5858_v5, %v5856_v63 }
 0x186   : > { %v1388_v36 = vpop.f32.mrf.mxu0 }
 0x187   : > { %6996 = vst [vmem:[#allocation22_spill] sm:$0xff] %v6010_v60  ;;  %v6012_v20 = vpop.f32.mrf.mxu1  ;;  %v6017_v48 = vadd.f32 %v1388_v36, %v5850_v40 }
 0x188   : > { %v1390_v1 = vpop.f32.mrf.mxu0 }
 0x189   : > { %v6019_v28 = vpop.f32.mrf.mxu1  ;;  %v6022_v18 = vadd.f32 %v1390_v1, %v5852_v42 }
 0x18a   : > { %v1392_v19 = vpop.f32.mrf.mxu0 }
 0x18b   : > { %v6024_v7 = vpop.f32.mrf.mxu1  ;;  %v6031_v49 = vadd.f32 %v1392_v19, %v5854_v61 }
 0x18c   : > { %6997 = vst [vmem:[#allocation23_spill] sm:$0xff] %v6024_v7  ;;  %v1394_v40 = vpop.f32.mrf.mxu0 }
 0x18d   : > { %6998 = vst [vmem:[#allocation24_spill] sm:$0xff] %v6031_v49  ;;  %v6033_v36 = vpop.f32.mrf.mxu1  ;;  %v6035_v60 = vadd.f32 %v1394_v40, %v1282_v56  ;;  %v1292_v56 = vadd.f32 %v5873_v21, %v5871_v39 }
 0x18e   : > { %v1398_v44 = vpop.f32.mrf.mxu0 }
 0x18f   : > { %6999 = vst [vmem:[#allocation25_spill] sm:$0xff] %v6035_v60  ;;  %v6037_v42 = vpop.f32.mrf.mxu1  ;;  %v6042_v7 = vadd.f32 %v1398_v44, %v5860_v52 }
 0x190   : > { %7000 = vst [vmem:[#allocation26_spill] sm:$0xff] %v6037_v42  ;;  %v1400_v63 = vpop.f32.mrf.mxu0 }
 0x191   : > { %7001 = vst [vmem:[#allocation27_spill] sm:$0xff] %v6042_v7  ;;  %v6044_v5 = vpop.f32.mrf.mxu1  ;;  %v6047_v61 = vadd.f32 %v1400_v63, %v5862_v62 }
 0x192   : > { %7002 = vst [vmem:[#allocation28_spill] sm:$0xff] %v6044_v5  ;;  %v1402_v19 = vpop.f32.mrf.mxu0 }
 0x193   : > { %7003 = vst [vmem:[#allocation29_spill] sm:$0xff] %v6047_v61  ;;  %v6049_v12 = vpop.f32.mrf.mxu1  ;;  %v6056_v1 = vadd.f32 %v1402_v19, %v5864_v37  ;;  %v1222_v37 = vadd.f32 %v5707_v35, %v5705_v13  ;;  %v7006_v13 = vmax.f32 %v5879_v47, %v5884_v30 }
 0x194   : > { %7004 = vst [vmem:[#allocation30_spill] sm:$0xff] %v6049_v12  ;;  %v1404_v52 = vpop.f32.mrf.mxu0 }
 0x195   : > { %v6058_v44 = vpop.f32.mrf.mxu1  ;;  %v6060_v60 = vadd.f32 %v1404_v52, %v1292_v56  ;;  %v1335_v42 = vadd.f32 %v5893_v51, %v1222_v37  ;;  %v1232_v37 = vadd.f32 %v5741_v25, %v5739_v22 }
 0x196   : > { %7005 = vst [vmem:[#allocation31_spill] sm:$0xff] %v6058_v44  ;;  %v1610_v49 = vpop.f32.mrf.mxu0 }
 0x197   : > { %v1723_v62 = vpop.f32.mrf.mxu1  ;;  %v1611_v12 = vadd.f32 %v1610_v49, %v5876_v4 }
 0x198   : > { %v1612_v5 = vpop.f32.mrf.mxu0 }
 0x199   : > { %v1725_v39 = vpop.f32.mrf.mxu1  ;;  %v1613_v21 = vadd.f32 %v1612_v5, %v5881_v17  ;;  %v1724_v19 = vadd.f32 %v1723_v62, %v1611_v12  ;;  %v6074_v17 = vld [vmem:[%s6934_s2] ss:$0 sm:$0xff] }
 0x19a   : > { %v1614_v40 = vpop.f32.mrf.mxu0 }
 0x19b   : > { %v1727_v61 = vpop.f32.mrf.mxu1  ;;  %v1726_v7 = vadd.f32 %v1725_v39, %v1613_v21  ;;  %v1615_v56 = vadd.f32 %v1614_v40, %v5886_v46 }
 0x19c   : > { %v1616_v52 = vpop.f32.mrf.mxu0 }
 0x19d   : > { %v1729_v44 = vpop.f32.mrf.mxu1  ;;  %v1802_v63 = vmax.f32 %v1724_v19, %v1726_v7  ;;  %v1617_v4 = vadd.f32 %v1616_v52, %v5895_v23  ;;  %v1728_v12 = vadd.f32 %v1727_v61, %v1615_v56  ;;  %v1408_v7 = vmax.f32 %v5891_v26, %v1335_v42 }
 0x19e   : > { %v1620_v49 = vpop.f32.mrf.mxu0  ;;  %v1345_v26 = vadd.f32 %v5914_v11, %v1232_v37 }
 0x19f   : > { %v1733_v5 = vpop.f32.mrf.mxu1  ;;  %v1818_v35 = vmax.f32 %v7006_v13, %v1802_v63  ;;  %v1730_v46 = vadd.f32 %v1729_v44, %v1617_v4  ;;  %v1621_v40 = vadd.f32 %v1620_v49, %v5897_v32  ;;  %v7007_v13 = vmax.f32 %v5900_v57, %v5905_v9 }
 0x1a0   : > { %v1622_v62 = vpop.f32.mrf.mxu0  ;;  %v1410_v11 = vmax.f32 %v5912_v3, %v1345_v26 }
 0x1a1   : > { %v1735_v51 = vpop.f32.mrf.mxu1  ;;  %v1840_v23 = vadd.f32 %v6074_v17, %v1818_v35  ;;  %v1803_v39 = vmax.f32 %v1728_v12, %v1730_v46  ;;  %v1623_v21 = vadd.f32 %v1622_v62, %v5902_v34  ;;  %v1734_v19 = vadd.f32 %v1733_v5, %v1621_v40 }
 0x1a2   : > { %v1624_v52 = vpop.f32.mrf.mxu0 }
 0x1a3   : > { %v1737_v47 = vpop.f32.mrf.mxu1  ;;  %v1856_v30 = vmax.f32 %v1840_v23, 0.0  ;;  %v1819_v61 = vmax.f32 %v1408_v7, %v1803_v39  ;;  %v1736_v44 = vadd.f32 %v1735_v51, %v1623_v21  ;;  %v1625_v32 = vadd.f32 %v1624_v52, %v5907_v58 }
 0x1a4   : > { %v1626_v63 = vpop.f32.mrf.mxu0  ;;  %v1242_v7 = vadd.f32 %v5775_v33, %v5773_v43 }
 0x1a5   : > { %v1739_v56 = vpop.f32.mrf.mxu1  ;;  %1872 = vst [vmem:[#allocation2] sm:$0xff] %v1856_v30  ;;  %v1841_v42 = vadd.f32 %v6074_v17, %v1819_v61  ;;  %v1804_v4 = vmax.f32 %v1734_v19, %v1736_v44  ;;  %v1627_v34 = vadd.f32 %v1626_v63, %v5916_v8  ;;  %v1738_v49 = vadd.f32 %v1737_v47, %v1625_v32  ;;  %v7008_v32 = vld [vmem:[#allocation10_spill] sm:$0xff] }
 0x1a6   : > { %v1630_v22 = vpop.f32.mrf.mxu0  ;;  %v1355_v3 = vadd.f32 %v5935_v15, %v1242_v7  ;;  %v7009_v63 = vmax.f32 %v5921_v2, %v7008_v32  ;;  %v7011_v15 = vld [vmem:[#allocation11_spill] sm:$0xff] }
 0x1a7   : > { %v1743_v25 = vpop.f32.mrf.mxu1  ;;  %v1857_v5 = vmax.f32 %v1841_v42, 0.0  ;;  %v1820_v35 = vmax.f32 %v7007_v13, %v1804_v4  ;;  %v1740_v12 = vadd.f32 %v1739_v56, %v1627_v34  ;;  %v1631_v58 = vadd.f32 %v1630_v22, %v5918_v16 }
 0x1a8   : > { %v1632_v46 = vpop.f32.mrf.mxu0 }
 0x1a9   : > { %v1745_v40 = vpop.f32.mrf.mxu1  ;;  %1873 = vst [vmem:[#allocation2 + $0x8] sm:$0xff] %v1857_v5  ;;  %v1842_v62 = vadd.f32 %v6074_v17, %v1820_v35  ;;  %v1805_v51 = vmax.f32 %v1738_v49, %v1740_v12  ;;  %v1633_v8 = vadd.f32 %v1632_v46, %v5923_v6  ;;  %v1744_v23 = vadd.f32 %v1743_v25, %v1631_v58 }
 0x1aa   : > { %v1634_v39 = vpop.f32.mrf.mxu0  ;;  %v1412_v49 = vmax.f32 %v7011_v15, %v1355_v3 }
 0x1ab   : > { %v1747_v57 = vpop.f32.mrf.mxu1  ;;  %v1858_v9 = vmax.f32 %v1842_v62, 0.0  ;;  %v1821_v21 = vmax.f32 %v1410_v11, %v1805_v51  ;;  %v1746_v37 = vadd.f32 %v1745_v40, %v1633_v8  ;;  %v1635_v16 = vadd.f32 %v1634_v39, %v5928_v54  ;;  %v7010_v54 = vld [vmem:[#allocation12_spill] sm:$0xff]  ;;  %v7013_v40 = vld [vmem:[#allocation14_spill] sm:$0xff] }
 0x1ac   : > { %v1636_v19 = vpop.f32.mrf.mxu0 }
 0x1ad   : > { %v1749_v52 = vpop.f32.mrf.mxu1  ;;  %1874 = vst [vmem:[#allocation2 + $0x10] sm:$0xff] %v1858_v9  ;;  %v1843_v47 = vadd.f32 %v6074_v17, %v1821_v21  ;;  %v1806_v30 = vmax.f32 %v1744_v23, %v1746_v37  ;;  %v1637_v6 = vadd.f32 %v1636_v19, %v5937_v45  ;;  %v1748_v61 = vadd.f32 %v1747_v57, %v1635_v16  ;;  %v7012_v45 = vld [vmem:[#allocation13_spill] sm:$0xff] }
 0x1ae   : > { %v1640_v43 = vpop.f32.mrf.mxu0  ;;  %v7014_v37 = vmax.f32 %v5942_v55, %v5947_v31 }
 0x1af   : > { %v1753_v33 = vpop.f32.mrf.mxu1  ;;  %v1859_v44 = vmax.f32 %v1843_v47, 0.0  ;;  %v1822_v56 = vmax.f32 %v7009_v63, %v1806_v30  ;;  %v1750_v26 = vadd.f32 %v1749_v52, %v1637_v6  ;;  %v1641_v42 = vadd.f32 %v1640_v43, %v7010_v54  ;;  %v7015_v54 = vld [vmem:[#allocation15_spill] sm:$0xff] }
 0x1b0   : > { %v1642_v4 = vpop.f32.mrf.mxu0 }
 0x1b1   : > { %v1755_v34 = vpop.f32.mrf.mxu1  ;;  %1875 = vst [vmem:[#allocation2 + $0x18] sm:$0xff] %v1859_v44  ;;  %v1844_v22 = vadd.f32 %v6074_v17, %v1822_v56  ;;  %v1807_v25 = vmax.f32 %v1748_v61, %v1750_v26  ;;  %v1643_v5 = vadd.f32 %v1642_v4, %v7012_v45  ;;  %v1754_v13 = vadd.f32 %v1753_v33, %v1641_v42  ;;  %v1985_v33 = vld [vmem:[#allocation2 + $0x1] ss:$2 sm:$0xff]  ;;  %v1969_v44 = vld [vmem:[#allocation2] ss:$2 sm:$0xff]  ;;  %v7016_v42 = vld [vmem:[#allocation16_spill] sm:$0xff] }
 0x1b2   : > { %v1644_v35 = vpop.f32.mrf.mxu0  ;;  %v7017_v4 = vmax.f32 %v7015_v54, %v7016_v42 }
 0x1b3   : > { %v1757_v12 = vpop.f32.mrf.mxu1  ;;  %v1860_v58 = vmax.f32 %v1844_v22, 0.0  ;;  %v1823_v46 = vmax.f32 %v1412_v49, %v1807_v25  ;;  %v1756_v2 = vadd.f32 %v1755_v34, %v1643_v5  ;;  %v1645_v11 = vadd.f32 %v1644_v35, %v7013_v40  ;;  %v6132_v22 = vld [vmem:[%s6935_s3 + $0x264] ss:$8 sps:$4 sm:$0xff]  }
 0x1b4   : > { %v1646_v62 = vpop.f32.mrf.mxu0 }
 0x1b5   : > { %v1759_v51 = vpop.f32.mrf.mxu1  ;;  %1876 = vst [vmem:[#allocation2 + $0x20] sm:$0xff] %v1860_v58  ;;  %v1845_v8 = vadd.f32 %v6074_v17, %v1823_v46  ;;  %v1808_v7 = vmax.f32 %v1754_v13, %v1756_v2  ;;  %v1647_v23 = vadd.f32 %v1646_v62, %v5958_v14  ;;  %v1758_v39 = vadd.f32 %v1757_v12, %v1645_v11  ;;  %v2017_v46 = vld [vmem:[#allocation2 + $0x3] ss:$2 sm:$0xff]  ;;  %v2001_v2 = vld [vmem:[#allocation2 + $0x2] ss:$2 sm:$0xff] }
 0x1b6   : > { %v1650_v57 = vpop.f32.mrf.mxu0 }
 0x1b7   : > { %v1763_v9 = vpop.f32.mrf.mxu1  ;;  %v1861_v21 = vmax.f32 %v1845_v8, 0.0  ;;  %v1824_v16 = vmax.f32 %v7014_v37, %v1808_v7  ;;  %v1760_v19 = vadd.f32 %v1759_v51, %v1647_v23  ;;  %v1651_v52 = vadd.f32 %v1650_v57, %v5962_v24  ;;  %v6123_v24 = vld [vmem:[%s6935_s3 + $0x270] ss:$8 sps:$4 sm:$0xff]   ;;  %v6145_v7 = vld [vmem:[%s6935_s3 + $0x260] ss:$8 sps:$4 sm:$0xff]  }
 0x1b8   : > { %v1652_v3 = vpop.f32.mrf.mxu0  ;;  %v1987_v30 = vld [vmem:[#allocation2 + $0x11] ss:$2 sm:$0xff]  ;;  %v1971_v6 = vld [vmem:[#allocation2 + $0x10] ss:$2 sm:$0xff] }
 0x1b9   : > { %v1765_v47 = vpop.f32.mrf.mxu1  ;;  %1877 = vst [vmem:[#allocation2 + $0x28] sm:$0xff] %v1861_v21  ;;  %v1846_v61 = vadd.f32 %v6074_v17, %v1824_v16  ;;  %v1809_v43 = vmax.f32 %v1758_v39, %v1760_v19  ;;  %v1653_v14 = vadd.f32 %v1652_v3, %v5969_v50  ;;  %v1764_v32 = vadd.f32 %v1763_v9, %v1651_v52  ;;  %v7018_v50 = vld [vmem:[#allocation17_spill] sm:$0xff]  ;;  %v6155_v21 = vld [vmem:[%s6935_s3 + $0x254] ss:$8 sps:$4 sm:$0xff]  }
 0x1ba   : > { %v1654_v63 = vpop.f32.mrf.mxu0  ;;  %v6118_v31 = vpack.c.bf16 %v1987_v30, %v1985_v33  ;;  %v2048_v55 = vpack.c.bf16 %v1971_v6, %v1969_v44  ;;  %v6166_v30 = vld [vmem:[%s6935_s3 + $0x250] ss:$8 sps:$4 sm:$0xff]  }
 0x1bb   : > { %v1767_v56 = vpop.f32.mrf.mxu1  ;;  %v1862_v26 = vmax.f32 %v1846_v61, 0.0  ;;  %v1825_v34 = vmax.f32 %v7017_v4, %v1809_v43  ;;  %v1766_v15 = vadd.f32 %v1765_v47, %v1653_v14  ;;  %v1655_v49 = vadd.f32 %v1654_v63, %v7018_v50  ;;  %v7021_v61 = vld [vmem:[#allocation18_spill] sm:$0xff]  ;;  %v7022_v43 = vld [vmem:[#allocation19_spill] sm:$0xff]  ;;  %v7024_v44 = vld [vmem:[#allocation20_spill] sm:$0xff] }
 0x1bc   : > { %2500 = vmatprep.mubr.bf16.mxu0 %v6118_v31  ;;  %v1656_v25 = vpop.f32.mrf.mxu0  ;;  %v2019_v5 = vld [vmem:[#allocation2 + $0x13] ss:$2 sm:$0xff]  ;;  %v2003_v13 = vld [vmem:[#allocation2 + $0x12] ss:$2 sm:$0xff]  ;;  %v7023_v14 = vmax.f32 %v7021_v61, %v7022_v43  ;;  %v4574_v61 = vld [vmem:[%s6935_s3 + $0x44] ss:$8 sps:$4 sm:$0xff]  }
 0x1bd   : > { %v1769_v45 = vpop.f32.mrf.mxu1  ;;  %1878 = vst [vmem:[#allocation2 + $0x30] sm:$0xff] %v1862_v26  ;;  %v1847_v35 = vadd.f32 %v6074_v17, %v1825_v34  ;;  %v1810_v12 = vmax.f32 %v1764_v32, %v1766_v15  ;;  %v1657_v58 = vadd.f32 %v1656_v25, %v5983_v53  ;;  %2501 = vmatmul.mubr.bf16.vlgmr.msra.gmra.mxu0 %v2048_v55  ;;  %v7025_v63 = vld [vmem:[#allocation8_spill] sm:$0xff]  ;;  %v4571_v15 = vld [vmem:[%s6935_s3 + $0x60] ss:$8 sps:$4 sm:$0xff]   ;;  %v6227_v43 = vld [vmem:[%s6935_s3 + $0x224] ss:$8 sps:$4 sm:$0xff]  }
 0x1be   : > { %v1768_v40 = vadd.f32 %v1767_v56, %v1655_v49  ;;  %v1660_v11 = vpop.f32.mrf.mxu0  ;;  %v6137_v51 = vpack.c.bf16 %v2019_v5, %v2017_v46  ;;  %v6139_v8 = vpack.c.bf16 %v2003_v13, %v2001_v2  ;;  %2615 = vmatpush1.bf16.msra.mxu0 %v6123_v24  ;;  %v7019_v53 = vmax.f32 %v5967_v59, %v5972_v29  ;;  %v6177_v56 = vld [vmem:[%s6935_s3 + $0x244] ss:$8 sps:$4 sm:$0xff]   ;;  %v6188_v25 = vld [vmem:[%s6935_s3 + $0x240] ss:$8 sps:$4 sm:$0xff]  }
 0x1bf   : > { %v1773_v62 = vpop.f32.mrf.mxu1  ;;  %v1863_v23 = vmax.f32 %v1847_v35, 0.0  ;;  %v1770_v57 = vadd.f32 %v1769_v45, %v1657_v58  ;;  %v1661_v9 = vadd.f32 %v1660_v11, %v5987_v0  ;;  %2616 = vmatprep.subr.bf16.mxu0 %v6132_v22  ;;  %v7020_v0 = vld [vmem:[#allocation7_spill] sm:$0xff]  ;;  %v7026_v5 = vmax.f32 %v5992_v38, %v5997_v10 }
 0x1c0   : > { %v1826_v39 = vmax.f32 %v7019_v53, %v1810_v12  ;;  %2573 = vmatprep.mubr.bf16.mxu1 %v6137_v51  ;;  %v1662_v37 = vpop.f32.mrf.mxu0  ;;  %v4572_v12 = vld [vmem:[%s6935_s3 + $0x54] ss:$8 sps:$4 sm:$0xff]  }
 0x1c1   : > { %v1775_v16 = vpop.f32.mrf.mxu1  ;;  %1879 = vst [vmem:[#allocation2 + $0x38] sm:$0xff] %v1863_v23  ;;  %v1811_v52 = vmax.f32 %v1768_v40, %v1770_v57  ;;  %v1663_v59 = vadd.f32 %v1662_v37, %v5994_v27  ;;  %2574 = vmatmul.mubr.bf16.vlgmr.msra.gmra.mxu1 %v6139_v8  ;;  %v1774_v29 = vadd.f32 %v1773_v62, %v1661_v9  ;;  %v6201_v58 = vld [vmem:[%s6935_s3 + $0x234] ss:$8 sps:$4 sm:$0xff]   ;;  %v1989_v62 = vld [vmem:[#allocation2 + $0x21] ss:$2 sm:$0xff] }
 0x1c2   : > { %v1848_v19 = vadd.f32 %v6074_v17, %v1826_v39  ;;  %2716 = vmatpush1.bf16.msra.mxu1 %v7020_v0  ;;  %v1664_v3 = vpop.f32.mrf.mxu0  ;;  %2617 = vmatpush1.bf16.msra.mxu0 %v6145_v7  ;;  %v1973_v23 = vld [vmem:[#allocation2 + $0x20] ss:$2 sm:$0xff]  ;;  %v4573_v39 = vld [vmem:[%s6935_s3 + $0x50] ss:$8 sps:$4 sm:$0xff]  }
 0x1c3   : > { %v1777_v47 = vpop.f32.mrf.mxu1  ;;  %v1827_v33 = vmax.f32 %v7023_v14, %v1811_v52  ;;  %v1776_v27 = vadd.f32 %v1775_v16, %v1663_v59  ;;  %v1665_v32 = vadd.f32 %v1664_v3, %v7024_v44  ;;  %2717 = vmatprep.subr.bf16.mxu1 %v7025_v63  ;;  %2618 = vmatprep.subr.bf16.mxu0 %v6155_v21  ;;  %v7027_v52 = vld [vmem:[#allocation21_spill] sm:$0xff]  ;;  %v7028_v59 = vld [vmem:[#allocation22_spill] sm:$0xff] }
 0x1c4   : > { %v1864_v6 = vmax.f32 %v1848_v19, 0.0  ;;  %v1666_v55 = vpop.f32.mrf.mxu0  ;;  %v6214_v19 = vld [vmem:[%s6935_s3 + $0x230] ss:$8 sps:$4 sm:$0xff]  }
 0x1c5   : > { %v1779_v26 = vpop.f32.mrf.mxu1  ;;  %v1849_v54 = vadd.f32 %v6074_v17, %v1827_v33  ;;  %v1812_v42 = vmax.f32 %v1774_v29, %v1776_v27  ;;  %v1667_v4 = vadd.f32 %v1666_v55, %v6008_v41  ;;  %v1778_v34 = vadd.f32 %v1777_v47, %v1665_v32  ;;  %v7030_v47 = vld [vmem:[#allocation23_spill] sm:$0xff] }
 0x1c6   : > { %1880 = vst [vmem:[#allocation2 + $0x40] sm:$0xff] %v1864_v6  ;;  %2718 = vmatpush1.bf16.msra.mxu1 %v4571_v15  ;;  %v1670_v50 = vpop.f32.mrf.mxu0  ;;  %2619 = vmatpush1.bf16.msra.mxu0 %v6166_v30  ;;  %v7029_v29 = vmax.f32 %v7027_v52, %v7028_v59 }
 0x1c7   : > { %v1783_v49 = vpop.f32.mrf.mxu1  ;;  %v1865_v45 = vmax.f32 %v1849_v54, 0.0  ;;  %v1828_v41 = vmax.f32 %v7026_v5, %v1812_v42  ;;  %v1780_v13 = vadd.f32 %v1779_v26, %v1667_v4  ;;  %v1671_v35 = vadd.f32 %v1670_v50, %v6012_v20  ;;  %2719 = vmatprep.subr.bf16.mxu1 %v4572_v12  ;;  %2620 = vmatprep.subr.bf16.mxu0 %v6177_v56  ;;  %v2021_v26 = vld [vmem:[#allocation2 + $0x23] ss:$2 sm:$0xff]  ;;  %v2005_v54 = vld [vmem:[#allocation2 + $0x22] ss:$2 sm:$0xff] }
 0x1c8   : > { %v1672_v46 = vpop.f32.mrf.mxu0  ;;  %v1991_v40 = vld [vmem:[#allocation2 + $0x31] ss:$2 sm:$0xff]  ;;  %v1975_v38 = vld [vmem:[#allocation2 + $0x30] ss:$2 sm:$0xff]  ;;  %v4575_v4 = vld [vmem:[%s6935_s3 + $0x40] ss:$8 sps:$4 sm:$0xff]   ;;  %v7031_v5 = vmax.f32 %v6017_v48, %v6022_v18 }
 0x1c9   : > { %v1785_v2 = vpop.f32.mrf.mxu1  ;;  %1881 = vst [vmem:[#allocation2 + $0x48] sm:$0xff] %v1865_v45  ;;  %v1850_v10 = vadd.f32 %v6074_v17, %v1828_v41  ;;  %v1813_v20 = vmax.f32 %v1778_v34, %v1780_v13  ;;  %v1673_v11 = vadd.f32 %v1672_v46, %v6019_v28  ;;  %v1784_v53 = vadd.f32 %v1783_v49, %v1671_v35  ;;  %v7032_v35 = vld [vmem:[#allocation26_spill] sm:$0xff]  ;;  %v4576_v46 = vld [vmem:[%s6935_s3 + $0x34] ss:$8 sps:$4 sm:$0xff]  }
 0x1ca   : > { %2720 = vmatpush1.bf16.msra.mxu1 %v4573_v39  ;;  %v1674_v57 = vpop.f32.mrf.mxu0  ;;  %v6208_v37 = vpack.c.bf16 %v1991_v40, %v1989_v62  ;;  %v2053_v16 = vpack.c.bf16 %v1975_v38, %v1973_v23  ;;  %2621 = vmatpush1.bf16.msra.mxu0 %v6188_v25  ;;  %v4577_v62 = vld [vmem:[%s6935_s3 + $0x30] ss:$8 sps:$4 sm:$0xff]  }
 0x1cb   : > { %v1787_v9 = vpop.f32.mrf.mxu1  ;;  %v1866_v28 = vmax.f32 %v1850_v10, 0.0  ;;  %v1829_v0 = vmax.f32 %v7029_v29, %v1813_v20  ;;  %v1786_v3 = vadd.f32 %v1785_v2, %v1673_v11  ;;  %v1675_v6 = vadd.f32 %v1674_v57, %v7030_v47  ;;  %2721 = vmatprep.subr.bf16.mxu1 %v4574_v61  ;;  %2622 = vmatprep.subr.bf16.mxu0 %v6201_v58  ;;  %v6256_v2 = vld [vmem:[%s6935_s3 + $0x214] ss:$8 sps:$4 sm:$0xff]   ;;  %v6269_v39 = vld [vmem:[%s6935_s3 + $0x210] ss:$8 sps:$4 sm:$0xff]   ;;  %v7037_v29 = vld [vmem:[#allocation30_spill] sm:$0xff] }
 0x1cc   : > { %2510 = vmatprep.mubr.bf16.mxu0 %v6208_v37  ;;  %v1676_v14 = vpop.f32.mrf.mxu0  ;;  %v7033_v10 = vld [vmem:[#allocation28_spill] sm:$0xff]  ;;  %v6282_v47 = vld [vmem:[%s6935_s3 + $0x204] ss:$8 sps:$4 sm:$0xff]  }
 0x1cd   : > { %v1789_v33 = vpop.f32.mrf.mxu1  ;;  %v2023_v27 = vld [vmem:[#allocation2 + $0x33] ss:$2 sm:$0xff]  ;;  %v2007_v44 = vld [vmem:[#allocation2 + $0x32] ss:$2 sm:$0xff]  ;;  %1882 = vst [vmem:[#allocation2 + $0x50] sm:$0xff] %v1866_v28  ;;  %v1851_v32 = vadd.f32 %v6074_v17, %v1829_v0  ;;  %v1814_v63 = vmax.f32 %v1784_v53, %v1786_v3  ;;  %v1677_v55 = vadd.f32 %v1676_v14, %v6033_v36  ;;  %2511 = vmatmul.mubr.bf16.gmra.mxu0 %v2053_v16 }
 0x1ce   : > { %v1788_v42 = vadd.f32 %v1787_v9, %v1675_v6  ;;  %2722 = vmatpush1.bf16.msra.mxu1 %v4575_v4  ;;  %v1680_v34 = vpop.f32.mrf.mxu0  ;;  %v6235_v50 = vpack.c.bf16 %v2023_v27, %v2021_v26  ;;  %v6237_v49 = vpack.c.bf16 %v2007_v44, %v2005_v54  ;;  %2623 = vmatpush1.bf16.msra.mxu0 %v6214_v19  ;;  %v6243_v36 = vld [vmem:[%s6935_s3 + $0x220] ss:$8 sps:$4 sm:$0xff]   ;;  %v7034_v9 = vld [vmem:[#allocation24_spill] sm:$0xff]  ;;  %v4578_v3 = vld [vmem:[%s6935_s3 + $0x24] ss:$8 sps:$4 sm:$0xff]  }
 0x1cf   : > { %v1793_v15 = vpop.f32.mrf.mxu1  ;;  %v1867_v45 = vmax.f32 %v1851_v32, 0.0  ;;  %v1830_v41 = vmax.f32 %v7031_v5, %v1814_v63  ;;  %v1790_v13 = vadd.f32 %v1789_v33, %v1677_v55  ;;  %v1681_v12 = vadd.f32 %v1680_v34, %v7032_v35  ;;  %2723 = vmatprep.subr.bf16.mxu1 %v4576_v46  ;;  %2624 = vmatprep.subr.bf16.mxu0 %v6227_v43  ;;  %v7035_v16 = vld [vmem:[#allocation25_spill] sm:$0xff]  ;;  %v7038_v33 = vld [vmem:[#allocation31_spill] sm:$0xff] }
 0x1d0   : > { %2583 = vmatprep.mubr.bf16.mxu1 %v6235_v50  ;;  %v1682_v40 = vpop.f32.mrf.mxu0  ;;  %v7036_v28 = vmax.f32 %v7034_v9, %v7035_v16  ;;  %v4579_v32 = vld [vmem:[%s6935_s3 + $0x20] ss:$8 sps:$4 sm:$0xff]   ;;  %v7039_v26 = vld [vmem:[#allocation27_spill] sm:$0xff] }
 0x1d1   : > { %v1795_v48 = vpop.f32.mrf.mxu1  ;;  %1883 = vst [vmem:[#allocation2 + $0x58] sm:$0xff] %v1867_v45  ;;  %v1852_v18 = vadd.f32 %v6074_v17, %v1830_v41  ;;  %v1815_v38 = vmax.f32 %v1788_v42, %v1790_v13  ;;  %v1683_v20 = vadd.f32 %v1682_v40, %v7033_v10  ;;  %2584 = vmatmul.mubr.bf16.gmra.mxu1 %v6237_v49  ;;  %v6293_v63 = vld [vmem:[%s6935_s3 + $0x200] ss:$8 sps:$4 sm:$0xff]   ;;  %v4580_v45 = vld [vmem:[%s6935_s3 + $0x14] ss:$8 sps:$4 sm:$0xff]  }
 0x1d2   : > { %v1794_v11 = vadd.f32 %v1793_v15, %v1681_v12  ;;  %2724 = vmatpush1.bf16.msra.mxu1 %v4577_v62  ;;  %v1684_v23 = vpop.f32.mrf.mxu0  ;;  %2625 = vmatpush1.bf16.msra.mxu0 %v6243_v36  ;;  %v7040_v54 = vld [vmem:[#allocation29_spill] sm:$0xff]  ;;  %v7042_v10 = vmax.f32 %v6056_v1, %v6060_v60  ;;  %v4583_v9 = vld [vmem:[%s6935_s3 + $0x174] ss:$8 sps:$4 sm:$0xff]  }
 0x1d3   : > { %v1797_v53 = vpop.f32.mrf.mxu1  ;;  %v1868_v57 = vmax.f32 %v1852_v18, 0.0  ;;  %v1831_v52 = vmax.f32 %v7036_v28, %v1815_v38  ;;  %v1796_v59 = vadd.f32 %v1795_v48, %v1683_v20  ;;  %v1685_v0 = vadd.f32 %v1684_v23, %v7037_v29  ;;  %2725 = vmatprep.subr.bf16.mxu1 %v4578_v3  ;;  %2626 = vmatprep.subr.bf16.mxu0 %v6256_v2  ;;  %v1993_v5 = vld [vmem:[#allocation2 + $0x41] ss:$2 sm:$0xff]  ;;  %v1977_v13 = vld [vmem:[#allocation2 + $0x40] ss:$2 sm:$0xff] }
 0x1d4   : > { %v1686_v6 = vpop.f32.mrf.mxu0  ;;  %v7041_v42 = vmax.f32 %v7039_v26, %v7040_v54  ;;  %v4581_v18 = vld [vmem:[%s6935_s3 + $0x10] ss:$8 sps:$4 sm:$0xff]   ;;  %v4584_v28 = vld [vmem:[%s6935_s3] ss:$8 sps:$4 sm:$0xff]   ;;  %v4587_v29 = vld [vmem:[%s6935_s3 + $0xe4] ss:$8 sps:$4 sm:$0xff]  }
 0x1d5   : > { %1884 = vst [vmem:[#allocation2 + $0x60] sm:$0xff] %v1868_v57  ;;  %v1853_v61 = vadd.f32 %v6074_v17, %v1831_v52  ;;  %v1816_v14 = vmax.f32 %v1794_v11, %v1796_v59  ;;  %v1687_v27 = vadd.f32 %v1686_v6, %v7038_v33  ;;  %v1799_v44 = vpop.f32.mrf.mxu1  ;;  %v1798_v34 = vadd.f32 %v1797_v53, %v1685_v0  ;;  %v4582_v11 = vld [vmem:[%s6935_s3 + $0x4] ss:$8 sps:$4 sm:$0xff]   ;;  %v4585_v59 = vld [vmem:[%s6935_s3 + $0xf4] ss:$8 sps:$4 sm:$0xff]  }
 0x1d6   : > { %2726 = vmatpush1.bf16.msra.mxu1 %v4579_v32  ;;  %2627 = vmatpush1.bf16.msra.mxu0 %v6269_v39  ;;  %v2025_v62 = vld [vmem:[#allocation2 + $0x43] ss:$2 sm:$0xff]  ;;  %v2009_v53 = vld [vmem:[#allocation2 + $0x42] ss:$2 sm:$0xff]  ;;  %v4589_v6 = vld [vmem:[%s6935_s3 + $0xd4] ss:$8 sps:$4 sm:$0xff]  }
 0x1d7   : > { %v1869_v55 = vmax.f32 %v1853_v61, 0.0  ;;  %v1832_v4 = vmax.f32 %v7041_v42, %v1816_v14  ;;  %v1800_v15 = vadd.f32 %v1799_v44, %v1687_v27  ;;  %2727 = vmatprep.subr.bf16.mxu1 %v4580_v45  ;;  %2628 = vmatprep.subr.bf16.mxu0 %v6282_v47  ;;  %v4588_v0 = vld [vmem:[%s6935_s3 + $0xe0] ss:$8 sps:$4 sm:$0xff]   ;;  %v4590_v42 = vld [vmem:[%s6935_s3 + $0xd0] ss:$8 sps:$4 sm:$0xff]   ;;  %v7043_v45 = vmov 0  }
 0x1d8   : > { %v1995_v41 = vld [vmem:[#allocation2 + $0x51] ss:$2 sm:$0xff]  ;;  %v1979_v35 = vld [vmem:[#allocation2 + $0x50] ss:$2 sm:$0xff] }
 0x1d9   : > { %1885 = vst [vmem:[#allocation2 + $0x68] sm:$0xff] %v1869_v55  ;;  %v1854_v12 = vadd.f32 %v6074_v17, %v1832_v4  ;;  %v1817_v46 = vmax.f32 %v1798_v34, %v1800_v15  ;;  %v6303_v40 = vpack.c.bf16 %v1995_v41, %v1993_v5  ;;  %v2058_v48 = vpack.c.bf16 %v1979_v35, %v1977_v13  ;;  %v4591_v15 = vld [vmem:[%s6935_s3 + $0xc4] ss:$8 sps:$4 sm:$0xff]   ;;  %v4592_v5 = vld [vmem:[%s6935_s3 + $0xc0] ss:$8 sps:$4 sm:$0xff]  }
 0x1da   : > { %2728 = vmatpush1.bf16.msra.mxu1 %v4581_v18  ;;  %2629 = vmatpush1.bf16.msra.mxu0 %v6293_v63  ;;  %v4593_v41 = vld [vmem:[%s6935_s3 + $0xb4] ss:$8 sps:$4 sm:$0xff]   ;;  %v2033_v35 = vld [vmem:[#allocation2 + $0x4] ss:$2 sm:$0xff] }
 0x1db   : > { %v1870_v38 = vmax.f32 %v1854_v12, 0.0  ;;  %v1833_v20 = vmax.f32 %v7042_v10, %v1817_v46  ;;  %2520 = vmatprep.mubr.bf16.mxu0 %v6303_v40  ;;  %2729 = vmatprep.subr.bf16.mxu1 %v4582_v11  ;;  %v2035_v13 = vld [vmem:[#allocation2 + $0x14] ss:$2 sm:$0xff] }
 0x1dc   : > { %2521 = vmatmul.mubr.bf16.gmra.mxu0 %v2058_v48  ;;  %v2027_v23 = vld [vmem:[#allocation2 + $0x53] ss:$2 sm:$0xff]  ;;  %v2011_v57 = vld [vmem:[#allocation2 + $0x52] ss:$2 sm:$0xff]  ;;  %2788 = vmatprep.subr.bf16.mxu0 %v4583_v9  ;;  %v6370_v46 = vpack.c.bf16 %v2035_v13, %v2033_v35  ;;  %v4595_v48 = vld [vmem:[%s6935_s3 + $0xa4] ss:$8 sps:$4 sm:$0xff]  }
 0x1dd   : > { %1886 = vst [vmem:[#allocation2 + $0x70] sm:$0xff] %v1870_v38  ;;  %v1855_v60 = vadd.f32 %v6074_v17, %v1833_v20  ;;  %v6320_v1 = vpack.c.bf16 %v2027_v23, %v2025_v62  ;;  %v6322_v16 = vpack.c.bf16 %v2011_v57, %v2009_v53  ;;  %v4586_v17 = vld [vmem:[%s6935_s3 + $0xf0] ss:$8 sps:$4 sm:$0xff]   ;;  %v4597_v18 = vld [vmem:[%s6935_s3 + $0xa0] ss:$8 sps:$4 sm:$0xff]  }
 0x1de   : > { %2730 = vmatpush1.bf16.msra.mxu1 %v4584_v28  ;;  %v4594_v12 = vld [vmem:[%s6935_s3 + $0xb0] ss:$8 sps:$4 sm:$0xff]   ;;  %v4598_v38 = vld [vmem:[%s6935_s3 + $0x164] ss:$8 sps:$4 sm:$0xff]   ;;  %v4599_v10 = vld [vmem:[%s6935_s3 + $0x94] ss:$8 sps:$4 sm:$0xff]  }
 0x1df   : > { %v1871_v52 = vmax.f32 %v1855_v60, 0.0  ;;  %2593 = vmatprep.mubr.bf16.mxu1 %v6320_v1  ;;  %2731 = vmatprep.subr.bf16.mxu1 %v4585_v59  ;;  %v2039_v20 = vld [vmem:[#allocation2 + $0x34] ss:$2 sm:$0xff]  ;;  %v2037_v62 = vld [vmem:[#allocation2 + $0x24] ss:$2 sm:$0xff] }
 0x1e0   : > { %2594 = vmatmul.mubr.bf16.gmra.mxu1 %v6322_v16  ;;  %v1997_v3 = vld [vmem:[#allocation2 + $0x61] ss:$2 sm:$0xff]  ;;  %v1981_v14 = vld [vmem:[#allocation2 + $0x60] ss:$2 sm:$0xff]  ;;  %v4601_v23 = vld [vmem:[%s6935_s3 + $0x90] ss:$8 sps:$4 sm:$0xff]   ;;  %v6398_v57 = vpack.c.bf16 %v2039_v20, %v2037_v62 }
 0x1e1   : > { %1887 = vst [vmem:[#allocation2 + $0x78] sm:$0x3f] %v1871_v52  ;;  %v4600_v11 = vld [vmem:[%s6935_s3 + $0x160] ss:$8 sps:$4 sm:$0xff]   ;;  %v4602_v53 = vld [vmem:[%s6935_s3 + $0x154] ss:$8 sps:$4 sm:$0xff]  }
 0x1e2   : > { %2732 = vmatpush2.bf16.msra.mxu1 %v4586_v17  ;;  %v4603_v9 = vld [vmem:[%s6935_s3 + $0x84] ss:$8 sps:$4 sm:$0xff]   ;;  %v4604_v60 = vld [vmem:[%s6935_s3 + $0x150] ss:$8 sps:$4 sm:$0xff]   ;;  %v4605_v28 = vld [vmem:[%s6935_s3 + $0x80] ss:$8 sps:$4 sm:$0xff]  }
 0x1e3   : > { %2733 = vmatprep.subr.bf16.mxu1 %v4587_v29  ;;  %v4606_v52 = vld [vmem:[%s6935_s3 + $0x144] ss:$8 sps:$4 sm:$0xff]   ;;  %v2043_v17 = vld [vmem:[#allocation2 + $0x54] ss:$2 sm:$0xff] }
 0x1e4   : > { %v2029_v61 = vld [vmem:[#allocation2 + $0x63] ss:$2 sm:$0xff]  ;;  %v2013_v33 = vld [vmem:[#allocation2 + $0x62] ss:$2 sm:$0xff] }
 0x1e5   : > { %v7044_v59 = vld [vmem:[#allocation9_spill] sm:$0xff] }
 0x1e6   : > { %2734 = vmatpush2.bf16.msra.mxu1 %v4588_v0  ;;  %v4607_v29 = vld [vmem:[%s6935_s3 + $0x140] ss:$8 sps:$4 sm:$0xff]  }
 0x1e7   : > { %2735 = vmatprep.subr.bf16.mxu1 %v4589_v6  ;;  %v2041_v0 = vld [vmem:[#allocation2 + $0x44] ss:$2 sm:$0xff]  ;;  %v4608_v6 = vld [vmem:[%s6935_s3 + $0x134] ss:$8 sps:$4 sm:$0xff]  }
 0x1e8   : > { %v1999_v27 = vld [vmem:[#allocation2 + $0x71] ss:$2 sm:$0x1f]  ;;  %v1983_v26 = vld [vmem:[#allocation2 + $0x70] ss:$2 sm:$0x1f] }
 0x1e9   : > { %v2031_v44 = vld [vmem:[#allocation2 + $0x73] ss:$2 sm:$0x1f]  ;;  %v6344_v32 = vpack.c.bf16 %v1999_v27, %v1997_v3  ;;  %v2015_v54 = vld [vmem:[#allocation2 + $0x72] ss:$2 sm:$0x1f]  ;;  %v2063_v4 = vpack.c.bf16 %v1983_v26, %v1981_v14  ;;  %v6421_v3 = vpack.c.bf16 %v2043_v17, %v2041_v0 }
 0x1ea   : > { %v6346_v55 = vpack.c.bf16 %v2031_v44, %v2029_v61  ;;  %2736 = vmatpush2.bf16.msra.mxu1 %v4590_v42  ;;  %v6351_v34 = vpack.c.bf16 %v2015_v54, %v2013_v33  ;;  %v2045_v61 = vld [vmem:[#allocation2 + $0x64] ss:$2 sm:$0xff]  ;;  %v4612_v14 = vld [vmem:[%s6935_s3 + $0x114] ss:$8 sps:$4 sm:$0xff]  }
 0x1eb   : > { %2530 = vmatprep.mubr.bf16.mxu0 %v6344_v32  ;;  %2737 = vmatprep.subr.bf16.mxu1 %v4591_v15  ;;  %v4624_v33 = vld [vmem:[%s6935_s3 + $0x1b4] ss:$8 sps:$4 sm:$0xff]   ;;  %v4625_v27 = vld [vmem:[%s6935_s3 + $0x1b0] ss:$8 sps:$4 sm:$0xff]   ;;  %v4626_v44 = vld [vmem:[%s6935_s3 + $0x1a4] ss:$8 sps:$4 sm:$0xff]  }
 0x1ec   : > { %2603 = vmatprep.mubr.bf16.mxu1 %v6346_v55  ;;  %2531 = vmatmul.mubr.bf16.gmra.mxu0 %v2063_v4  ;;  %v4627_v54 = vld [vmem:[%s6935_s3 + $0x1a0] ss:$8 sps:$4 sm:$0xff]   ;;  %v4628_v42 = vld [vmem:[%s6935_s3 + $0x194] ss:$8 sps:$4 sm:$0xff]   ;;  %v4630_v15 = vld [vmem:[%s6935_s3 + $0x184] ss:$8 sps:$4 sm:$0xff]  }
 0x1ed   : > { %2604 = vmatmul.mubr.bf16.gmra.mxu1 %v6351_v34  ;;  %2646 = vmatprep.mubr.bf16.mxu0 %v7043_v45  ;;  %v2706_v4 = vld [vmem:[#allocation2 + $0x55] ss:$2 sm:$0xff]  ;;  %v4499_v0 = vld [vmem:[%s6937_s5 + $0x68] sm:$0xff]  }
 0x1ee   : > { %2738 = vmatpush2.bf16.msra.mxu1 %v4592_v5  ;;  %2747 = vmatprep.mubr.bf16.mxu1 %v6139_v8  ;;  %v4596_v8 = vld [vmem:[%s6935_s3 + $0x170] ss:$8 sps:$4 sm:$0xff]   ;;  %v4631_v13 = vld [vmem:[%s6935_s3 + $0x180] ss:$8 sps:$4 sm:$0xff]  }
 0x1ef   : > { %2739 = vmatprep.subr.bf16.mxu1 %v4593_v41  ;;  %v2704_v5 = vld [vmem:[#allocation2 + $0x45] ss:$2 sm:$0xff]  ;;  %v2710_v35 = vld [vmem:[#allocation2 + $0x75] ss:$2 sm:$0x1f] }
 0x1f0   : > { %v2713_v41 = vpack.c.bf16 %v2706_v4, %v2704_v5  ;;  %v4520_v5 = vld [vmem:[%s6937_s5] sm:$0xff]  }
 0x1f2   : > { %2740 = vmatpush2.bf16.msra.mxu1 %v4594_v12  ;;  %v2708_v12 = vld [vmem:[#allocation2 + $0x65] ss:$2 sm:$0xff] }
 0x1f3   : > { %2741 = vmatprep.subr.bf16.mxu1 %v4595_v48 }
 0x1f4   : > { %2647 = vmatmul.mubr.bf16.vlgmr.msra.gmra.mxu0 %v6370_v46 }
 0x1f5   : > { %2789 = vmatpush1.bf16.msra.mxu0 %v4596_v8  ;;  %2656 = vmatprep.mubr.bf16.mxu0 %v7043_v45 }
 0x1f6   : > { %2742 = vmatpush2.bf16.msra.mxu1 %v4597_v18  ;;  %2790 = vmatprep.subr.bf16.mxu0 %v4598_v38 }
 0x1f7   : > { %2743 = vmatprep.subr.bf16.mxu1 %v4599_v10 }
 0x1f9   : > { %2791 = vmatpush1.bf16.msra.mxu0 %v4600_v11  ;;  %v4493_v11 = vld [vmem:[%s6937_s5 + $0xf8] sm:$0xff]  }
 0x1fa   : > { %2744 = vmatpush2.bf16.msra.mxu1 %v4601_v23  ;;  %2792 = vmatprep.subr.bf16.mxu0 %v4602_v53  ;;  %v4494_v23 = vld [vmem:[%s6937_s5 + $0xb8] sm:$0xff]  }
 0x1fb   : > { %2745 = vmatprep.subr.bf16.mxu1 %v4603_v9  ;;  %v4496_v9 = vld [vmem:[%s6937_s5 + $0x30] sm:$0xff]  }
 0x1fc   : > { %2657 = vmatmul.mubr.bf16.gmra.mxu0 %v6398_v57 }
 0x1fd   : > { %2793 = vmatpush1.bf16.msra.mxu0 %v4604_v60  ;;  %2666 = vmatprep.mubr.bf16.mxu0 %v7043_v45  ;;  %v4497_v60 = vld [vmem:[%s6937_s5 + $0xf0] sm:$0xff]  }
 0x1fe   : > { %2746 = vmatpush2.bf16.msra.mxu1 %v4605_v28  ;;  %2794 = vmatprep.subr.bf16.mxu0 %v4606_v52 }
 0x1ff   : > { %2861 = vmatprep.subr.bf16.mxu1 %v7044_v59  ;;  %v4498_v59 = vld [vmem:[%s6937_s5 + $0xb0] sm:$0xff]  }
 0x201   : > { %2748 = vmatmul.mubr.bf16.vlgmr.msra.gmra.mxu1 %v6118_v31  ;;  %2795 = vmatpush1.bf16.msra.mxu0 %v4607_v29  ;;  %v4609_v31 = vld [vmem:[%s6935_s3 + $0x130] ss:$8 sps:$4 sm:$0xff]  }
 0x202   : > { %2757 = vmatprep.mubr.bf16.mxu1 %v6237_v49  ;;  %2862 = vmatpush1.bf16.msra.mxu1 %v6123_v24  ;;  %v4610_v24 = vld [vmem:[%s6935_s3 + $0x124] ss:$8 sps:$4 sm:$0xff]   ;;  %v2047_v49 = vld [vmem:[#allocation2 + $0x74] ss:$2 sm:$0x1f] }
 0x203   : > { %2796 = vmatprep.subr.bf16.mxu0 %v4608_v6  ;;  %2863 = vmatprep.subr.bf16.mxu1 %v6132_v22  ;;  %v4611_v22 = vld [vmem:[%s6935_s3 + $0x120] ss:$8 sps:$4 sm:$0xff]  }
 0x204   : > { %2667 = vmatmul.mubr.bf16.gmra.mxu0 %v6421_v3  ;;  %v4501_v6 = vld [vmem:[%s6937_s5 + $0xe8] sm:$0xff]  }
 0x205   : > { %2797 = vmatpush1.bf16.msra.mxu0 %v4609_v31  ;;  %2676 = vmatprep.mubr.bf16.mxu0 %v7043_v45 }
 0x206   : > { %2864 = vmatpush1.bf16.msra.mxu1 %v6145_v7  ;;  %2798 = vmatprep.subr.bf16.mxu0 %v4610_v24  ;;  %v6443_v7 = vpack.c.bf16 %v2047_v49, %v2045_v61  ;;  %v4502_v49 = vld [vmem:[%s6937_s5 + $0xa8] sm:$0xff]   ;;  %v4503_v61 = vld [vmem:[%s6937_s5 + $0x60] sm:$0xff]  }
 0x207   : > { %2865 = vmatprep.subr.bf16.mxu1 %v6155_v21  ;;  %v4613_v21 = vld [vmem:[%s6935_s3 + $0x110] ss:$8 sps:$4 sm:$0xff]  }
 0x209   : > { %2758 = vmatmul.mubr.bf16.gmra.mxu1 %v6208_v37  ;;  %2799 = vmatpush1.bf16.msra.mxu0 %v4611_v22  ;;  %v4618_v37 = vld [vmem:[%s6935_s3 + $0x1e4] ss:$8 sps:$4 sm:$0xff]  }
 0x20a   : > { %2767 = vmatprep.mubr.bf16.mxu1 %v6322_v16  ;;  %2866 = vmatpush1.bf16.msra.mxu1 %v6166_v30  ;;  %v4614_v30 = vld [vmem:[%s6935_s3 + $0x104] ss:$8 sps:$4 sm:$0xff]  }
 0x20b   : > { %2800 = vmatprep.subr.bf16.mxu0 %v4612_v14  ;;  %2867 = vmatprep.subr.bf16.mxu1 %v6177_v56  ;;  %v4615_v56 = vld [vmem:[%s6935_s3 + $0x100] ss:$8 sps:$4 sm:$0xff]  }
 0x20c   : > { %2677 = vmatmul.mubr.bf16.gmra.mxu0 %v6443_v7  ;;  %v4505_v14 = vld [vmem:[%s6937_s5 + $0xe0] sm:$0xff]  }
 0x20d   : > { %2801 = vmatpush1.bf16.msra.mxu0 %v4613_v21  ;;  %2820 = vmatprep.mubr.bf16.mxu0 %v6370_v46  ;;  %v2714_v46 = vpack.c.bf16 %v2710_v35, %v2708_v12  ;;  %v4506_v21 = vld [vmem:[%s6937_s5 + $0xa0] sm:$0xff]  }
 0x20e   : > { %2868 = vmatpush1.bf16.msra.mxu1 %v6188_v25  ;;  %2802 = vmatprep.subr.bf16.mxu0 %v4614_v30  ;;  %v4616_v25 = vld [vmem:[%s6935_s3 + $0x1f4] ss:$8 sps:$4 sm:$0xff]  }
 0x20f   : > { %2869 = vmatprep.subr.bf16.mxu1 %v6201_v58  ;;  %v4617_v58 = vld [vmem:[%s6935_s3 + $0x1f0] ss:$8 sps:$4 sm:$0xff]  }
 0x211   : > { %2768 = vmatmul.mubr.bf16.gmra.mxu1 %v6303_v40  ;;  %2803 = vmatpush1.bf16.msra.mxu0 %v4615_v56  ;;  %v2696_v40 = vld [vmem:[#allocation2 + $0x5] ss:$2 sm:$0xff]  ;;  %v4507_v56 = vld [vmem:[%s6937_s5 + $0x58] sm:$0xff]  }
 0x212   : > { %2777 = vmatprep.mubr.bf16.mxu1 %v6351_v34  ;;  %2870 = vmatpush1.bf16.msra.mxu1 %v6214_v19  ;;  %v4619_v19 = vld [vmem:[%s6935_s3 + $0x1e0] ss:$8 sps:$4 sm:$0xff]   ;;  %v4629_v34 = vld [vmem:[%s6935_s3 + $0x190] ss:$8 sps:$4 sm:$0xff]  }
 0x213   : > { %2804 = vmatprep.subr.bf16.mxu0 %v4616_v25  ;;  %2871 = vmatprep.subr.bf16.mxu1 %v6227_v43  ;;  %v4620_v43 = vld [vmem:[%s6935_s3 + $0x1d4] ss:$8 sps:$4 sm:$0xff]  }
 0x215   : > { %2805 = vmatpush2.bf16.msra.mxu0 %v4617_v58  ;;  %v4508_v58 = vld [vmem:[%s6937_s5 + $0x18] sm:$0xff]  }
 0x216   : > { %2872 = vmatpush1.bf16.msra.mxu1 %v6243_v36  ;;  %2806 = vmatprep.subr.bf16.mxu0 %v4618_v37  ;;  %v2698_v36 = vld [vmem:[#allocation2 + $0x15] ss:$2 sm:$0xff] }
 0x217   : > { %2873 = vmatprep.subr.bf16.mxu1 %v6256_v2  ;;  %v4621_v2 = vld [vmem:[%s6935_s3 + $0x1d0] ss:$8 sps:$4 sm:$0xff]   ;;  %v2711_v16 = vpack.c.bf16 %v2698_v36, %v2696_v40 }
 0x218   : > { %v4509_v37 = vld [vmem:[%s6937_s5 + $0xd8] sm:$0xff]   ;;  %v4511_v36 = vld [vmem:[%s6937_s5 + $0x50] sm:$0xff]  }
 0x219   : > { %2778 = vmatmul.mubr.bf16.gmra.mxu1 %v6344_v32  ;;  %2807 = vmatpush2.bf16.msra.mxu0 %v4619_v19  ;;  %v2700_v32 = vld [vmem:[#allocation2 + $0x25] ss:$2 sm:$0xff]  ;;  %v4510_v19 = vld [vmem:[%s6937_s5 + $0x98] sm:$0xff]  }
 0x21a   : > { %2874 = vmatpush1.bf16.msra.mxu1 %v6269_v39  ;;  %2808 = vmatprep.subr.bf16.mxu0 %v4620_v43  ;;  %v4622_v39 = vld [vmem:[%s6935_s3 + $0x1c4] ss:$8 sps:$4 sm:$0xff]  }
 0x21b   : > { %2875 = vmatprep.subr.bf16.mxu1 %v6282_v47  ;;  %2893 = vmatprep.mubr.bf16.mxu1 %v7043_v45  ;;  %v4623_v47 = vld [vmem:[%s6935_s3 + $0x1c0] ss:$8 sps:$4 sm:$0xff]  }
 0x21d   : > { %2809 = vmatpush2.bf16.msra.mxu0 %v4621_v2  ;;  %v4512_v2 = vld [vmem:[%s6937_s5 + $0x10] sm:$0xff]  }
 0x21e   : > { %2876 = vmatpush1.bf16.msra.mxu1 %v6293_v63  ;;  %2810 = vmatprep.subr.bf16.mxu0 %v4622_v39  ;;  %v2702_v63 = vld [vmem:[#allocation2 + $0x35] ss:$2 sm:$0xff] }
 0x21f   : > { %v2712_v26 = vpack.c.bf16 %v2702_v63, %v2700_v32  ;;  %4100 = vmatprep.subr.bf16.mxu1 %v4493_v11  ;;  %v4513_v39 = vld [vmem:[%s6937_s5 + $0xd0] sm:$0xff]   ;;  %v4516_v32 = vld [vmem:[%s6937_s5 + $0x8] sm:$0xff]  }
 0x221   : > { %2894 = vmatmul.mubr.bf16.vlgmr.msra.gmra.mxu1 %v2711_v16  ;;  %2811 = vmatpush2.bf16.msra.mxu0 %v4623_v47  ;;  %v4514_v47 = vld [vmem:[%s6937_s5 + $0x90] sm:$0xff]  }
 0x222   : > { %2812 = vmatprep.subr.bf16.mxu0 %v4624_v33  ;;  %2903 = vmatprep.mubr.bf16.mxu1 %v7043_v45  ;;  %v4515_v33 = vld [vmem:[%s6937_s5 + $0x48] sm:$0xff]  }
 0x223   : > { %4101 = vmatpush3.bf16.msra.mxu1 %v4494_v23 }
 0x224   : > { %4102 = vmatprep.subr.bf16.mxu1 %v4497_v60 }
 0x225   : > { %2813 = vmatpush2.bf16.msra.mxu0 %v4625_v27  ;;  %v4517_v27 = vld [vmem:[%s6937_s5 + $0xc8] sm:$0xff]  }
 0x226   : > { %2814 = vmatprep.subr.bf16.mxu0 %v4626_v44 }
 0x227   : > { %4103 = vmatpush3.bf16.msra.mxu1 %v4498_v59 }
 0x228   : > { %4104 = vmatprep.subr.bf16.mxu1 %v4501_v6 }
 0x229   : > { %2904 = vmatmul.mubr.bf16.gmra.mxu1 %v2712_v26  ;;  %2815 = vmatpush2.bf16.msra.mxu0 %v4627_v54  ;;  %v4518_v26 = vld [vmem:[%s6937_s5 + $0x88] sm:$0xff]   ;;  %v4519_v54 = vld [vmem:[%s6937_s5 + $0x40] sm:$0xff]  }
 0x22a   : > { %2816 = vmatprep.subr.bf16.mxu0 %v4628_v42  ;;  %2913 = vmatprep.mubr.bf16.mxu1 %v7043_v45 }
 0x22b   : > { %4105 = vmatpush3.bf16.msra.mxu1 %v4502_v49 }
 0x22c   : > { %4106 = vmatprep.subr.bf16.mxu1 %v4505_v14 }
 0x22d   : > { %2817 = vmatpush2.bf16.msra.mxu0 %v4629_v34  ;;  %v4521_v34 = vld [vmem:[%s6937_s5 + $0xc0] sm:$0xff]  }
 0x22e   : > { %2818 = vmatprep.subr.bf16.mxu0 %v4630_v15 }
 0x22f   : > { %4107 = vmatpush3.bf16.msra.mxu1 %v4506_v21 }
 0x230   : > { %4108 = vmatprep.subr.bf16.mxu1 %v4509_v37 }
 0x231   : > { %2914 = vmatmul.mubr.bf16.gmra.mxu1 %v2713_v41  ;;  %2819 = vmatpush2.bf16.msra.mxu0 %v4631_v13  ;;  %v4522_v41 = vld [vmem:[%s6937_s5 + $0x80] sm:$0xff]  }
 0x232   : > { %2923 = vmatprep.mubr.bf16.mxu1 %v7043_v45 }
 0x233   : > { %4109 = vmatpush3.bf16.msra.mxu1 %v4510_v19 }
 0x234   : > { %2821 = vmatmul.mubr.bf16.vlgmr.msra.gmra.mxu0 %v6137_v51  ;;  %4110 = vmatprep.subr.bf16.mxu1 %v4513_v39 }
 0x235   : > { %2830 = vmatprep.mubr.bf16.mxu0 %v6398_v57  ;;  %v4495_v57 = vld [vmem:[%s6937_s5 + $0x70] sm:$0xff]  }
 0x237   : > { %4111 = vmatpush3.bf16.msra.mxu1 %v4514_v47 }
 0x238   : > { %4112 = vmatprep.subr.bf16.mxu1 %v4517_v27 }
 0x239   : > { %2924 = vmatmul.mubr.bf16.gmra.mxu1 %v2714_v46  ;;  %v6965_v46 = vmov 0.0  }
 0x23b   : > { %4113 = vmatpush3.bf16.msra.mxu1 %v4518_v26 }
 0x23c   : > { %2831 = vmatmul.mubr.bf16.gmra.mxu0 %v6235_v50  ;;  %4114 = vmatprep.subr.bf16.mxu1 %v4521_v34 }
 0x23d   : > { %2840 = vmatprep.mubr.bf16.mxu0 %v6421_v3  ;;  %v4500_v3 = vld [vmem:[%s6937_s5 + $0x28] sm:$0xff]  }
 0x23f   : > { %4115 = vmatpush3.bf16.msra.mxu1 %v4522_v41 }
 0x240   : > { %4169 = vmatprep.subr.bf16.mxu1 %v6965_v46 }
 0x244   : > { %2841 = vmatmul.mubr.bf16.gmra.mxu0 %v6320_v1  ;;  %v4491_v1 = vld [vmem:[%s6937_s5 + $0x78] sm:$0xff]  }
 0x245   : > { %2850 = vmatprep.mubr.bf16.mxu0 %v6443_v7  ;;  %4078 = vmatprep.subr.bf16.mxu0 %v4491_v1  ;;  %v4504_v7 = vld [vmem:[%s6937_s5 + $0x20] sm:$0xff]  }
 0x24c   : > { %2851 = vmatmul.mubr.bf16.gmra.mxu0 %v6346_v55  ;;  %v4492_v55 = vld [vmem:[%s6937_s5 + $0x38] sm:$0xff]  }
 0x24d   : > { %4079 = vmatpush3.bf16.msra.mxu0 %v4492_v55 }
 0x24e   : > { %4080 = vmatprep.subr.bf16.mxu0 %v4495_v57 }
 0x251   : > { %4081 = vmatpush3.bf16.msra.mxu0 %v4496_v9 }
 0x252   : > { %4082 = vmatprep.subr.bf16.mxu0 %v4499_v0 }
 0x255   : > { %4083 = vmatpush3.bf16.msra.mxu0 %v4500_v3 }
 0x256   : > { %4084 = vmatprep.subr.bf16.mxu0 %v4503_v61 }
 0x259   : > { %4085 = vmatpush3.bf16.msra.mxu0 %v4504_v7 }
 0x25a   : > { %4086 = vmatprep.subr.bf16.mxu0 %v4507_v56 }
 0x25d   : > { %4087 = vmatpush3.bf16.msra.mxu0 %v4508_v58 }
 0x25e   : > { %4088 = vmatprep.subr.bf16.mxu0 %v4511_v36 }
 0x261   : > { %4089 = vmatpush3.bf16.msra.mxu0 %v4512_v2 }
 0x262   : > { %4090 = vmatprep.subr.bf16.mxu0 %v4515_v33 }
 0x265   : > { %4091 = vmatpush3.bf16.msra.mxu0 %v4516_v32 }
 0x266   : > { %4092 = vmatprep.subr.bf16.mxu0 %v4519_v54 }
 0x269   : > { %4093 = vmatpush3.bf16.msra.mxu0 %v4520_v5 }
 0x26a   : > { %4149 = vmatprep.subr.bf16.mxu0 %v6965_v46 }
 0x27d   : > { %v2502_v48 = vpop.f32.mrf.mxu0 }
 0x27f   : > { %v6531_v45 = vpop.f32.mrf.mxu0 }
 0x281   : > { %v2575_v51 = vpop.f32.mrf.mxu1  ;;  %v2506_v38 = vpop.f32.mrf.mxu0 }
 0x282   : > { %v6533_v8 = vadd.f32 %v2575_v51, %v2502_v48 }
 0x283   : > { %v6535_v18 = vpop.f32.mrf.mxu1  ;;  %v6539_v50 = vpop.f32.mrf.mxu0 }
 0x284   : > { %v2578_v57 = vadd.f32 %v6535_v18, %v6531_v45 }
 0x285   : > { %v2579_v10 = vpop.f32.mrf.mxu1 }
 0x286   : > { %v6537_v20 = vadd.f32 %v2579_v10, %v2506_v38 }
 0x287   : > { %v6553_v53 = vpop.f32.mrf.mxu1 }
 0x288   : > { %v2582_v0 = vadd.f32 %v6553_v53, %v6539_v50 }
 0x28d   : > { %v2512_v62 = vpop.f32.mrf.mxu0 }
 0x28f   : > { %v6564_v28 = vpop.f32.mrf.mxu0 }
 0x291   : > { %v2585_v52 = vpop.f32.mrf.mxu1  ;;  %v2516_v31 = vpop.f32.mrf.mxu0 }
 0x292   : > { %v6569_v17 = vadd.f32 %v2585_v52, %v2512_v62 }
 0x293   : > { %v6571_v29 = vpop.f32.mrf.mxu1  ;;  %v6599_v30 = vpop.f32.mrf.mxu0 }
 0x295   : > { %v2589_v24 = vpop.f32.mrf.mxu1 }
 0x296   : > { %v6585_v22 = vadd.f32 %v2589_v24, %v2516_v31 }
 0x297   : > { %v6613_v43 = vpop.f32.mrf.mxu1 }
 0x29c   : > { %v2522_v25 = vpop.f32.mrf.mxu0 }
 0x29e   : > { %v6624_v40 = vpop.f32.mrf.mxu0 }
 0x2a0   : > { %v2595_v16 = vpop.f32.mrf.mxu1  ;;  %v2526_v42 = vpop.f32.mrf.mxu0 }
 0x2a1   : > { %v6632_v63 = vadd.f32 %v2595_v16, %v2522_v25 }
 0x2a2   : > { %v2597_v44 = vpop.f32.mrf.mxu1  ;;  %v2528_v13 = vpop.f32.mrf.mxu0 }
 0x2a4   : > { %v2599_v4 = vpop.f32.mrf.mxu1 }
 0x2a5   : > { %v2600_v15 = vadd.f32 %v2599_v4, %v2526_v42 }
 0x2a6   : > { %v2601_v35 = vpop.f32.mrf.mxu1 }
 0x2ac   : > { %v2532_v12 = vpop.f32.mrf.mxu0 }
 0x2ad   : > { %v2605_v48 = vpop.f32.mrf.mxu1 }
 0x2ae   : > { %v2606_v51 = vadd.f32 %v2605_v48, %v2532_v12  ;;  %v2534_v38 = vpop.f32.mrf.mxu0 }
 0x2af   : > { %v2607_v10 = vpop.f32.mrf.mxu1 }
 0x2b0   : > { %v2536_v1 = vpop.f32.mrf.mxu0  ;;  %v2608_v26 = vadd.f32 %v2607_v10, %v2534_v38 }
 0x2b1   : > { %v2609_v55 = vpop.f32.mrf.mxu1 }
 0x2b2   : > { %v2610_v11 = vadd.f32 %v2609_v55, %v2536_v1  ;;  %v2538_v62 = vpop.f32.mrf.mxu0 }
 0x2b3   : > { %v2611_v61 = vpop.f32.mrf.mxu1 }
 0x2b4   : > { %v2648_v23 = vpop.f32.mrf.mxu0 }
 0x2b5   : > { %v6660_v60 = vadd.f32 %v2648_v23, %v6533_v8  ;;  %v2588_v8 = vadd.f32 %v6571_v29, %v6564_v28 }
 0x2b6   : > { %v2650_v9 = vpop.f32.mrf.mxu0 }
 0x2b7   : > { %v6662_v52 = vadd.f32 %v2650_v9, %v2578_v57 }
 0x2b8   : > { %v2652_v59 = vpop.f32.mrf.mxu0 }
 0x2b9   : > { %v2687_v3 = vmax.f32 %v6660_v60, %v6662_v52  ;;  %v6669_v31 = vadd.f32 %v2652_v59, %v6537_v20  ;;  %v2592_v20 = vadd.f32 %v6613_v43, %v6599_v30 }
 0x2ba   : > { %v2654_v6 = vpop.f32.mrf.mxu0 }
 0x2bb   : > { %v6671_v24 = vadd.f32 %v2654_v6, %v2582_v0 }
 0x2bc   : > { %v2658_v45 = vpop.f32.mrf.mxu0 }
 0x2bd   : > { %v2688_v18 = vmax.f32 %v6669_v31, %v6671_v24  ;;  %v6678_v50 = vadd.f32 %v2658_v45, %v6569_v17  ;;  %v2598_v17 = vadd.f32 %v2597_v44, %v6624_v40 }
 0x2be   : > { %v2660_v49 = vpop.f32.mrf.mxu0 }
 0x2bf   : > { %v6680_v53 = vadd.f32 %v2660_v49, %v2588_v8 }
 0x2c0   : > { %v2662_v7 = vpop.f32.mrf.mxu0 }
 0x2c1   : > { %v2689_v14 = vmax.f32 %v6678_v50, %v6680_v53  ;;  %v2749_v21 = vpop.f32.mrf.mxu1  ;;  %v6687_v28 = vadd.f32 %v2662_v7, %v6585_v22  ;;  %v2602_v22 = vadd.f32 %v2601_v35, %v2528_v13  ;;  %v2612_v13 = vadd.f32 %v2611_v61, %v2538_v62 }
 0x2c2   : > { %v2664_v56 = vpop.f32.mrf.mxu0 }
 0x2c3   : > { %v2751_v29 = vpop.f32.mrf.mxu1  ;;  %v6689_v25 = vadd.f32 %v2664_v56, %v2592_v20 }
 0x2c4   : > { %v2668_v58 = vpop.f32.mrf.mxu0 }
 0x2c5   : > { %v2690_v37 = vmax.f32 %v6687_v28, %v6689_v25  ;;  %v2753_v19 = vpop.f32.mrf.mxu1  ;;  %v6695_v30 = vadd.f32 %v2668_v58, %v6632_v63 }
 0x2c6   : > { %v2670_v36 = vpop.f32.mrf.mxu0 }
 0x2c7   : > { %v2755_v43 = vpop.f32.mrf.mxu1  ;;  %v6697_v2 = vadd.f32 %v2670_v36, %v2598_v17 }
 0x2c8   : > { %v2672_v39 = vpop.f32.mrf.mxu0 }
 0x2c9   : > { %v2691_v16 = vmax.f32 %v6695_v30, %v6697_v2  ;;  %v2759_v47 = vpop.f32.mrf.mxu1  ;;  %v6701_v27 = vadd.f32 %v2672_v39, %v2600_v15 }
 0x2ca   : > { %v2674_v33 = vpop.f32.mrf.mxu0 }
 0x2cb   : > { %v2761_v40 = vpop.f32.mrf.mxu1  ;;  %v6703_v44 = vadd.f32 %v2674_v33, %v2602_v22 }
 0x2cc   : > { %v2678_v32 = vpop.f32.mrf.mxu0 }
 0x2cd   : > { %v2692_v63 = vmax.f32 %v6701_v27, %v6703_v44  ;;  %v2763_v54 = vpop.f32.mrf.mxu1  ;;  %v6707_v4 = vadd.f32 %v2678_v32, %v2606_v51 }
 0x2ce   : > { %v2680_v42 = vpop.f32.mrf.mxu0 }
 0x2cf   : > { %v2765_v34 = vpop.f32.mrf.mxu1  ;;  %v6709_v5 = vadd.f32 %v2680_v42, %v2608_v26 }
 0x2d0   : > { %v2682_v41 = vpop.f32.mrf.mxu0 }
 0x2d1   : > { %v2693_v15 = vmax.f32 %v6707_v4, %v6709_v5  ;;  %v2769_v35 = vpop.f32.mrf.mxu1  ;;  %v6713_v48 = vadd.f32 %v2682_v41, %v2610_v11 }
 0x2d2   : > { %v2684_v12 = vpop.f32.mrf.mxu0 }
 0x2d3   : > { %v6715_v38 = vpop.f32.mrf.mxu1  ;;  %v6717_v10 = vadd.f32 %v2684_v12, %v2612_v13  ;;  %v6736_v13 = vld [vmem:[%s6936_s4] ss:$0 sm:$0xff] }
 0x2d5   : > { %v2694_v51 = vmax.f32 %v6713_v48, %v6717_v10  ;;  %v6721_v1 = vpop.f32.mrf.mxu1  ;;  %v4523_v10 = vld [vmem:[%s6937_s5 + $0x138] sm:$0xff]  }
 0x2d7   : > { %v6723_v55 = vpop.f32.mrf.mxu1 }
 0x2d9   : > { %v6725_v23 = vpop.f32.mrf.mxu1 }
 0x2db   : > { %v6727_v62 = vpop.f32.mrf.mxu1 }
 0x2dd   : > { %v6729_v57 = vpop.f32.mrf.mxu1 }
 0x2df   : > { %v6731_v9 = vpop.f32.mrf.mxu1 }
 0x2e1   : > { %v2895_v11 = vpop.f32.mrf.mxu1 }
 0x2e3   : > { %v2897_v59 = vpop.f32.mrf.mxu1 }
 0x2e5   : > { %v2899_v0 = vpop.f32.mrf.mxu1 }
 0x2e7   : > { %v2901_v6 = vpop.f32.mrf.mxu1 }
 0x2e9   : > { %v2905_v45 = vpop.f32.mrf.mxu1 }
 0x2eb   : > { %v2907_v8 = vpop.f32.mrf.mxu1 }
 0x2ed   : > { %v2909_v49 = vpop.f32.mrf.mxu1 }
 0x2ef   : > { %v2911_v61 = vpop.f32.mrf.mxu1 }
 0x2f1   : > { %v2915_v17 = vpop.f32.mrf.mxu1 }
 0x2f3   : > { %v2917_v41 = vpop.f32.mrf.mxu1 }
 0x2f4   : > { %v2822_v7 = vpop.f32.mrf.mxu0 }
 0x2f5   : > { %v2823_v20 = vadd.f32 %v2822_v7, %v2749_v21 }
 0x2f6   : > { %v2824_v56 = vpop.f32.mrf.mxu0 }
 0x2f7   : > { %v2825_v58 = vadd.f32 %v2824_v56, %v2751_v29  ;;  %v2896_v39 = vadd.f32 %v2895_v11, %v2823_v20 }
 0x2f8   : > { %v2826_v36 = vpop.f32.mrf.mxu0 }
 0x2f9   : > { %v2898_v22 = vadd.f32 %v2897_v59, %v2825_v58  ;;  %v2827_v33 = vadd.f32 %v2826_v36, %v2753_v19 }
 0x2fa   : > { %v2828_v32 = vpop.f32.mrf.mxu0 }
 0x2fb   : > { %v2934_v26 = vmax.f32 %v2896_v39, %v2898_v22  ;;  %v2829_v42 = vadd.f32 %v2828_v32, %v2755_v43  ;;  %v2900_v29 = vadd.f32 %v2899_v0, %v2827_v33  ;;  %v2919_v43 = vpop.f32.mrf.mxu1 }
 0x2fc   : > { %v2832_v12 = vpop.f32.mrf.mxu0 }
 0x2fd   : > { %v2942_v21 = vmax.f32 %v2687_v3, %v2934_v26  ;;  %v2902_v7 = vadd.f32 %v2901_v6, %v2829_v42  ;;  %v2833_v56 = vadd.f32 %v2832_v12, %v2759_v47  ;;  %v2921_v0 = vpop.f32.mrf.mxu1 }
 0x2fe   : > { %v2834_v11 = vpop.f32.mrf.mxu0 }
 0x2ff   : > { %v2956_v19 = vadd.f32 %v6736_v13, %v2942_v21  ;;  %v2935_v59 = vmax.f32 %v2900_v29, %v2902_v7  ;;  %v2835_v20 = vadd.f32 %v2834_v11, %v2761_v40  ;;  %v2906_v58 = vadd.f32 %v2905_v45, %v2833_v56 }
 0x300   : > { %v2836_v36 = vpop.f32.mrf.mxu0 }
 0x301   : > { %v2964_v39 = vmax.f32 %v2956_v19, 0.0  ;;  %v2943_v22 = vmax.f32 %v2688_v18, %v2935_v59  ;;  %v2908_v32 = vadd.f32 %v2907_v8, %v2835_v20  ;;  %v2837_v46 = vadd.f32 %v2836_v36, %v2763_v54  ;;  %v2925_v8 = vpop.f32.mrf.mxu1 }
 0x302   : > { %v2838_v60 = vpop.f32.mrf.mxu0 }
 0x303   : > { %2972 = vst [vmem:[#allocation3] sm:$0xff] %v2964_v39  ;;  %v2957_v52 = vadd.f32 %v6736_v13, %v2943_v22  ;;  %v2936_v3 = vmax.f32 %v2906_v58, %v2908_v32  ;;  %v2839_v47 = vadd.f32 %v2838_v60, %v2765_v34  ;;  %v2910_v6 = vadd.f32 %v2909_v49, %v2837_v46  ;;  %v2927_v29 = vpop.f32.mrf.mxu1 }
 0x304   : > { %v2842_v33 = vpop.f32.mrf.mxu0 }
 0x305   : > { %v2965_v40 = vmax.f32 %v2957_v52, 0.0  ;;  %v2944_v45 = vmax.f32 %v2689_v14, %v2936_v3  ;;  %v2912_v26 = vadd.f32 %v2911_v61, %v2839_v47  ;;  %v2843_v42 = vadd.f32 %v2842_v33, %v2769_v35  ;;  %v2929_v19 = vpop.f32.mrf.mxu1 }
 0x306   : > { %v2844_v31 = vpop.f32.mrf.mxu0 }
 0x307   : > { %2973 = vst [vmem:[#allocation3 + $0x8] sm:$0xff] %v2965_v40  ;;  %v2958_v24 = vadd.f32 %v6736_v13, %v2944_v45  ;;  %v2937_v18 = vmax.f32 %v2910_v6, %v2912_v26  ;;  %v2845_v54 = vadd.f32 %v2844_v31, %v6715_v38  ;;  %v2916_v12 = vadd.f32 %v2915_v17, %v2843_v42  ;;  %v2931_v39 = vpop.f32.mrf.mxu1 }
 0x308   : > { %v2846_v34 = vpop.f32.mrf.mxu0 }
 0x309   : > { %v2966_v21 = vmax.f32 %v2958_v24, 0.0  ;;  %v2945_v46 = vmax.f32 %v2690_v37, %v2937_v18  ;;  %v2918_v49 = vadd.f32 %v2917_v41, %v2845_v54  ;;  %v2847_v50 = vadd.f32 %v2846_v34, %v6721_v1  ;;  %v4524_v24 = vld [vmem:[%s6937_s5 + $0x130] sm:$0xff]   ;;  %v4525_v54 = vld [vmem:[%s6937_s5 + $0x128] sm:$0xff]  }
 0x30a   : > { %v2848_v53 = vpop.f32.mrf.mxu0  ;;  %v7045_v18 = vmov 0.0   ;;  %v4528_v34 = vld [vmem:[%s6937_s5 + $0x110] sm:$0xff]  }
 0x30b   : > { %2974 = vst [vmem:[#allocation3 + $0x10] sm:$0xff] %v2966_v21  ;;  %v2959_v14 = vadd.f32 %v6736_v13, %v2945_v46  ;;  %v2938_v35 = vmax.f32 %v2916_v12, %v2918_v49  ;;  %v2849_v61 = vadd.f32 %v2848_v53, %v6723_v55  ;;  %v2920_v38 = vadd.f32 %v2919_v43, %v2847_v50  ;;  %v4527_v12 = vld [vmem:[%s6937_s5 + $0x118] sm:$0xff]   ;;  %v4529_v21 = vld [vmem:[%s6937_s5 + $0x108] sm:$0xff]   ;;  %v4530_v49 = vld [vmem:[%s6937_s5 + $0x100] sm:$0xff]  }
 0x30c   : > { %v2852_v7 = vpop.f32.mrf.mxu0 }
 0x30d   : > { %v2967_v17 = vmax.f32 %v2959_v14, 0.0  ;;  %v2946_v56 = vmax.f32 %v2691_v16, %v2938_v35  ;;  %v2922_v28 = vadd.f32 %v2921_v0, %v2849_v61  ;;  %v2853_v25 = vadd.f32 %v2852_v7, %v6725_v23  ;;  %v4531_v35 = vld [vmem:[%s6939_s7 + $0x38] sm:$0xff]   ;;  %v4532_v61 = vld [vmem:[%s6939_s7 + $0x30] sm:$0xff]  }
 0x30e   : > { %v2854_v37 = vpop.f32.mrf.mxu0  ;;  %v4535_v7 = vld [vmem:[%s6939_s7 + $0x18] sm:$0xff]  }
 0x30f   : > { %2975 = vst [vmem:[#allocation3 + $0x18] sm:$0xff] %v2967_v17  ;;  %v2960_v1 = vadd.f32 %v6736_v13, %v2946_v56  ;;  %v2939_v41 = vmax.f32 %v2920_v38, %v2922_v28  ;;  %v2855_v11 = vadd.f32 %v2854_v37, %v6727_v62  ;;  %v2926_v55 = vadd.f32 %v2925_v8, %v2853_v25  ;;  %v4526_v8 = vld [vmem:[%s6937_s5 + $0x120] sm:$0xff]   ;;  %v4536_v17 = vld [vmem:[%s6939_s7 + $0x10] sm:$0xff]   ;;  %v4537_v56 = vld [vmem:[%s6939_s7 + $0x8] sm:$0xff]  }
 0x310   : > { %v2856_v59 = vpop.f32.mrf.mxu0  ;;  %v4534_v38 = vld [vmem:[%s6939_s7 + $0x20] sm:$0xff]   ;;  %v4539_v25 = vld [vmem:[%s6941_s9 + $0x38] sm:$0xff]   ;;  %v4540_v37 = vld [vmem:[%s6941_s9 + $0x30] sm:$0xff]  }
 0x311   : > { %v2968_v20 = vmax.f32 %v2960_v1, 0.0  ;;  %v2947_v43 = vmax.f32 %v2692_v63, %v2939_v41  ;;  %v2928_v30 = vadd.f32 %v2927_v29, %v2855_v11  ;;  %v2857_v2 = vadd.f32 %v2856_v59, %v6729_v57  ;;  %v4533_v29 = vld [vmem:[%s6939_s7 + $0x28] sm:$0xff]   ;;  %v4538_v28 = vld [vmem:[%s6939_s7] sm:$0xff]   ;;  %v4543_v11 = vld [vmem:[%s6941_s9 + $0x18] sm:$0xff]  }
 0x312   : > { %v2858_v16 = vpop.f32.mrf.mxu0  ;;  %v4541_v1 = vld [vmem:[%s6941_s9 + $0x28] sm:$0xff]   ;;  %v4542_v41 = vld [vmem:[%s6941_s9 + $0x20] sm:$0xff]  }
 0x313   : > { %2976 = vst [vmem:[#allocation3 + $0x20] sm:$0xff] %v2968_v20  ;;  %v2961_v23 = vadd.f32 %v6736_v13, %v2947_v43  ;;  %v2940_v58 = vmax.f32 %v2926_v55, %v2928_v30  ;;  %v2859_v36 = vadd.f32 %v2858_v16, %v6731_v9  ;;  %v2930_v32 = vadd.f32 %v2929_v19, %v2857_v2  ;;  %v4544_v19 = vld [vmem:[%s6941_s9 + $0x10] sm:$0xff]  }
 0x315   : > { %v2969_v62 = vmax.f32 %v2961_v23, 0.0  ;;  %v2948_v22 = vmax.f32 %v2693_v15, %v2940_v58  ;;  %v2932_v60 = vadd.f32 %v2931_v39, %v2859_v36  ;;  %v4015_v36 = vld [vmem:[%s6938_s6] ss:$0 sm:$0xff] }
 0x316   : > { %v2984_v3 = vld [vmem:[#allocation3 + $0x1] ss:$8 sm:$0xf]  ;;  %v2992_v47 = vld [vmem:[#allocation3 + $0x3] ss:$8 sm:$0xf] }
 0x317   : > { %2977 = vst [vmem:[#allocation3 + $0x28] sm:$0xff] %v2969_v62  ;;  %v2962_v27 = vadd.f32 %v6736_v13, %v2948_v22  ;;  %v2941_v44 = vmax.f32 %v2930_v32, %v2932_v60  ;;  %v2980_v4 = vld [vmem:[#allocation3] ss:$8 sm:$0xf] }
 0x318   : > { %v2988_v5 = vld [vmem:[#allocation3 + $0x2] ss:$8 sm:$0xf]  ;;  %v2996_v50 = vld [vmem:[#allocation3 + $0x4] ss:$8 sm:$0xf] }
 0x319   : > { %v2970_v63 = vmax.f32 %v2962_v27, 0.0  ;;  %v2949_v57 = vmax.f32 %v2694_v51, %v2941_v44 }
 0x31b   : > { %2978 = vst [vmem:[#allocation3 + $0x30] sm:$0xff] %v2970_v63  ;;  %v2963_v9 = vadd.f32 %v6736_v13, %v2949_v57 }
 0x31d   : > { %v2971_v52 = vmax.f32 %v2963_v9, 0.0 }
 0x31f   : > { %2979 = vst [vmem:[#allocation3 + $0x38] sm:$0x1f] %v2971_v52  ;;  %v4545_v52 = vld [vmem:[%s6941_s9 + $0x8] sm:$0xff]  }
 0x326   : > { %v2985_v15 = vld [vmem:[#allocation3 + $0x1] ss:$8 sm:$0xf0]  ;;  %v2993_v0 = vld [vmem:[#allocation3 + $0x3] ss:$8 sm:$0xf0] }
 0x327   : > { %v2986_v6 = vor.u32 %v2985_v15, %v2984_v3  ;;  %v2994_v33 = vor.u32 %v2993_v0, %v2992_v47  ;;  %v2981_v40 = vld [vmem:[#allocation3] ss:$8 sm:$0xf0]  ;;  %v2989_v45 = vld [vmem:[#allocation3 + $0x2] ss:$8 sm:$0xf0] }
 0x328   : > { %v2982_v26 = vor.u32 %v2981_v40, %v2980_v4  ;;  %v2990_v42 = vor.u32 %v2989_v45, %v2988_v5  ;;  %v2997_v46 = vld [vmem:[#allocation3 + $0x4] ss:$8 sm:$0xf0]  ;;  %v4056_v47 = vld [vmem:[%s6940_s8] ss:$0 sm:$0xff] }
 0x329   : > { %v3000_v31 = vpack.c.bf16 %v2986_v6, %v2986_v6  ;;  %v3002_v48 = vpack.c.bf16 %v2994_v33, %v2994_v33  ;;  %v2998_v53 = vor.u32 %v2997_v46, %v2996_v50  ;;  %v4546_v3 = vld [vmem:[%s6941_s9] sm:$0xff]  }
 0x32a   : > { %v2999_v51 = vpack.c.bf16 %v2982_v26, %v2982_v26  ;;  %v3001_v13 = vpack.c.bf16 %v2990_v42, %v2990_v42  ;;  %v4065_v45 = vld [vmem:[%s6942_s10] ss:$0 sm:$0xff] }
 0x32b   : > { %3363 = vmatprep.mubr.bf16.mxu0 %v3000_v31  ;;  %3403 = vmatprep.mubr.bf16.mxu1 %v3002_v48  ;;  %v3003_v14 = vpack.c.bf16 %v2998_v53, %v2998_v53 }
 0x32c   : > { %3364 = vmatmul.mubr.bf16.vlgmr.msra.gmra.mxu0 %v2999_v51  ;;  %3404 = vmatmul.mubr.bf16.vlgmr.msra.gmra.mxu1 %v3001_v13 }
 0x32d   : > { %4150 = vmatpush3.bf16.msra.mxu0 %v4523_v10  ;;  %4165 = vmatprep.mubr.msk.bf16.mxu0 %vm4696_vm0, %v7045_v18 }
 0x32e   : > { %4151 = vmatprep.subr.bf16.mxu0 %v7045_v18  ;;  %4185 = vmatprep.mubr.msk.bf16.mxu1 %vm4696_vm0, %v7045_v18 }
 0x32f   : > { %4170 = vmatpush3.bf16.msra.mxu1 %v4531_v35 }
 0x330   : > { %4171 = vmatprep.subr.bf16.mxu1 %v7045_v18 }
 0x331   : > { %4152 = vmatpush3.bf16.msra.mxu0 %v4524_v24 }
 0x332   : > { %4153 = vmatprep.subr.bf16.mxu0 %v7045_v18 }
 0x333   : > { %4172 = vmatpush3.bf16.msra.mxu1 %v4532_v61 }
 0x334   : > { %4173 = vmatprep.subr.bf16.mxu1 %v7045_v18 }
 0x335   : > { %4154 = vmatpush3.bf16.msra.mxu0 %v4525_v54 }
 0x336   : > { %4155 = vmatprep.subr.bf16.mxu0 %v7045_v18 }
 0x337   : > { %4174 = vmatpush3.bf16.msra.mxu1 %v4533_v29 }
 0x338   : > { %4175 = vmatprep.subr.bf16.mxu1 %v7045_v18 }
 0x339   : > { %4156 = vmatpush3.bf16.msra.mxu0 %v4526_v8 }
 0x33a   : > { %4157 = vmatprep.subr.bf16.mxu0 %v7045_v18 }
 0x33b   : > { %4176 = vmatpush3.bf16.msra.mxu1 %v4534_v38 }
 0x33c   : > { %4177 = vmatprep.subr.bf16.mxu1 %v7045_v18 }
 0x33d   : > { %4158 = vmatpush3.bf16.msra.mxu0 %v4527_v12 }
 0x33e   : > { %4159 = vmatprep.subr.bf16.mxu0 %v7045_v18 }
 0x33f   : > { %4178 = vmatpush3.bf16.msra.mxu1 %v4535_v7 }
 0x340   : > { %4179 = vmatprep.subr.bf16.mxu1 %v7045_v18 }
 0x341   : > { %4160 = vmatpush3.bf16.msra.mxu0 %v4528_v34 }
 0x342   : > { %4161 = vmatprep.subr.bf16.mxu0 %v7045_v18 }
 0x343   : > { %4180 = vmatpush3.bf16.msra.mxu1 %v4536_v17 }
 0x344   : > { %4181 = vmatprep.subr.bf16.mxu1 %v7045_v18 }
 0x345   : > { %4162 = vmatpush3.bf16.msra.mxu0 %v4529_v21 }
 0x346   : > { %4163 = vmatprep.subr.bf16.mxu0 %v7045_v18 }
 0x347   : > { %4182 = vmatpush3.bf16.msra.mxu1 %v4537_v56 }
 0x348   : > { %4183 = vmatprep.subr.bf16.mxu1 %v7045_v18 }
 0x349   : > { %4164 = vmatpush3.bf16.msra.mxu0 %v4530_v49 }
 0x34a   : > { %4189 = vmatprep.subr.bf16.mxu0 %v7045_v18 }
 0x34b   : > { %4184 = vmatpush3.bf16.msra.mxu1 %v4538_v28 }
 0x34c   : > { %4166 = vmatmul.mubr.bf16.vlgmr.msra.gmra.mxu0 %v3003_v14 }
 0x34d   : > { %4205 = vmatprep.mubr.msk.bf16.mxu0 %vm4696_vm0, %v7045_v18  ;;  %4190 = vmatpush3.bf16.msra.mxu0 %v4539_v25 }
 0x34e   : > { %4191 = vmatprep.subr.bf16.mxu0 %v7045_v18 }
 0x351   : > { %4192 = vmatpush3.bf16.msra.mxu0 %v4540_v37 }
 0x352   : > { %4193 = vmatprep.subr.bf16.mxu0 %v7045_v18 }
 0x355   : > { %4194 = vmatpush3.bf16.msra.mxu0 %v4541_v1 }
 0x356   : > { %4195 = vmatprep.subr.bf16.mxu0 %v7045_v18 }
 0x359   : > { %4196 = vmatpush3.bf16.msra.mxu0 %v4542_v41 }
 0x35a   : > { %4197 = vmatprep.subr.bf16.mxu0 %v7045_v18 }
 0x35d   : > { %4198 = vmatpush3.bf16.msra.mxu0 %v4543_v11 }
 0x35e   : > { %4199 = vmatprep.subr.bf16.mxu0 %v7045_v18 }
 0x361   : > { %4200 = vmatpush3.bf16.msra.mxu0 %v4544_v19 }
 0x362   : > { %4201 = vmatprep.subr.bf16.mxu0 %v7045_v18 }
 0x365   : > { %4202 = vmatpush3.bf16.msra.mxu0 %v4545_v52 }
 0x366   : > { %4203 = vmatprep.subr.bf16.mxu0 %v7045_v18 }
 0x369   : > { %4204 = vmatpush3.bf16.msra.mxu0 %v4546_v3 }
 0x3ec   : > { %v4094_v55 = vpop.f32.mrf.mxu0  ;;  %v4116_v59 = vpop.f32.mrf.mxu1 }
 0x3ee   : > { %v4095_v20 = vpop.f32.mrf.mxu0  ;;  %v4117_v43 = vpop.f32.mrf.mxu1 }
 0x3ef   : > { %v4096_v58 = vadd.f32 %v4095_v20, %v4094_v55  ;;  %v4118_v62 = vadd.f32 %v4117_v43, %v4116_v59 }
 0x3f0   : > { %v4097_v30 = vpop.f32.mrf.mxu0  ;;  %v4119_v2 = vpop.f32.mrf.mxu1 }
 0x3f1   : > { %v3366_v39 = vadd.f32 %v4096_v58, %v4015_v36 }
 0x3f2   : > { %v4098_v16 = vpop.f32.mrf.mxu0  ;;  %v4120_v23 = vpop.f32.mrf.mxu1 }
 0x3f3   : > { %v3406_v22 = vadd.f32 %v4118_v62, %v3366_v39 }
 0x40c   : > { %v3445_v32 = vpop.f32.mrf.mxu0 }
 0x40d   : > { %v3446_v60 = vadd.f32 %v3445_v32, %v3406_v22 }
 0x40e   : > { %v4167_v27 = vpop.f32.mrf.mxu0 }
 0x40f   : > { %v3451_v44 = vmax.f32 %v3446_v60, 0.0 }
 0x410   : > { %v3448_v63 = vpop.f32.mrf.mxu0 }
 0x411   : > { %v3452_v57 = vpack.c.bf16 %v3451_v44, %v3451_v44 }
 0x412   : > { %v4168_v9 = vpop.f32.mrf.mxu0 }
 0x413   : > { %4186 = vmatmul.mubr.bf16.vlgmr.msra.gmra.mxu1 %v3452_v57 }
 0x4d3   : > { %v3558_v4 = vpop.f32.mrf.mxu1 }
 0x4d4   : > { %v3559_v5 = vadd.f32 %v4056_v47, %v3558_v4 }
 0x4d5   : > { %v4187_v15 = vpop.f32.mrf.mxu1 }
 0x4d6   : > { %v3564_v0 = vmax.f32 %v3559_v5, 0.0 }
 0x4d7   : > { %v3561_v6 = vpop.f32.mrf.mxu1 }
 0x4d8   : > { %v3565_v33 = vpack.c.bf16 %v3564_v0, %v3564_v0 }
 0x4d9   : > { %v4188_v40 = vpop.f32.mrf.mxu1 }
 0x4da   : > { %4206 = vmatmul.mubr.bf16.vlgmr.msra.gmra.mxu0 %v3565_v33 }
 0x59a   : > { %v3671_v26 = vpop.f32.mrf.mxu0 }
 0x59b   : > { %v3672_v42 = vadd.f32 %v4065_v45, %v3671_v26 }
 0x59c   : > { %v4207_v31 = vpop.f32.mrf.mxu0 }
 0x59d   : > { %3677 = vst [vmem:[%s380_s25] sm:$0xff] %v3672_v42 }
 0x59e   : > { %v3674_v48 = vpop.f32.mrf.mxu0 }
 0x59f   : > { %4645 = shalt.err (!%p4642_p3)
}
 0x5a0   : > { %s4646_s24 = scalar_lea.hbm %s6891_s13, 128  ;;  %s4650_s12 = scalar_lea.hbm %s6943_s11, 256 }
 0x5a1   : > { %p4647_p4 = scmp.ne.s32.totalorder %s6891_s13, %s4646_s24  ;;  %p4651_p9 = scmp.lt.s32.totalorder %s6891_s13, %s6943_s11 }
 0x5a2   : > { %p4652_p10 = scmp.lt.s32.totalorder %s4650_s12, %s4646_s24 }
 0x5a3   : > { %p4648_p7 = pnand %p4647_p4, %p4796_p5 }
 0x5a4   : > { %p4653_p11 = por %p4652_p10, %p4651_p9 }
 0x5a5   : > { %p4649_p8 = pneg %p4648_p7 }
 0x5a7   : > { %p4654_p12 = pnand %p4653_p11, %p4649_p8 }
 0x5a9   : > { %4657 = shalt.err (!%p4654_p12)
}
 0x5aa   : > { %4209 = dma.vmem_to_hbm [thread:$0]  (%p4796_p5), %s6893_s15, 128, %s6891_s13, %s3679_s29   ;;  %v4208_v10 = vpop.f32.mrf.mxu0 }
 0x5ab PF: > { %p4215_p13 = scmp.ge.s32.totalorder %s4692_s20, 2  ;;  %s3704_s22 = sand.u32 1, %s4680_s17  }
 0x5ac   : > { %s3705_s0 = scalar_lea.sflag [#allocation5], %s3704_s22 }
 0x5ad   : > { %p4212_p0 = pnand %p4215_p13, %p4800_p6 }
 0x5af   : > { %p4213_p1 = pneg %p4212_p0 }
 0x5b1   : > { %4675 = dma.done.wait (%p4213_p1), %s3705_s0, 128  }
 0x5b2   : > { %4677 = vsyncadd (%p4213_p1), %s3705_s0, 4294967168  ;;  %p21_p2 = scmp.ge.s32.totalorder %s4783_s23, 4   ;;  %s7046_s17 = smov %s4684_s18 }
 0x5b3   : > { %s7047_s18 = smov %s4688_s19  ;;  %s7048_s19 = smov %s4794_s26 }
 0x5b4   : > { %s7049_s20 = smov %s4783_s23  ;;  %23 = sbr.rel (!%p21_p2) target bundleno = 5 (0x5), region = 245 }
 0x5b9   :  { %3710 = vsyncpa [#allocation5], 1 }
 0x5ba   :  { %3712 = vsyncpa [#allocation5 + $0x1], 1 }

</bundles_post_ra>
